<compile_context>
chip_gen: v6e
topology: v6e:2x2x1
jax: 0.10.0
libtpu: 0.0.40
codegen_flags: <defaults>
</compile_context>

<pallas_src>
from functools import partial

import jax
import jax.numpy as jnp
from jax import lax
from jax.experimental import pallas as pl
from jax.experimental.pallas import tpu as pltpu


# ---------------------------------------------------------------------------
# Fused kernel: processes `bt` batch elements per grid step.
# ---------------------------------------------------------------------------
def encoder_kernel(x_ref, w1_ref, b1_ref, w234_ref, b234_ref, o_ref, pool_scr,
                   *, seq_len):
    """Fused 4-layer conv encoder for bt stacked batch elements.

    x_ref:    (bt*L, 1)       f32  input column (batch elements stacked on rows)
    w1_ref:   (3, 1, 64)      f32  layer-1 taps (BN scale folded); tap 0 = x[l-1]
    b1_ref:   (1, 64)         f32  layer-1 folded bias
    w234_ref: (3, 3, 64, 64)  bf16 layers 2-4 per-tap weights [layer, tap, ci, co]
    b234_ref: (3, 1, 64)      f32  layers 2-4 folded biases
    o_ref:    (bt*L//16, 64)  f32  final pooled activations (time-major rows)
    pool_scr: (bt*L, 64)      f32  shared VMEM scratch for MaxPool strided reads
    """
    f32 = jnp.float32
    n = x_ref.shape[0]                                     # bt * L

    def pos_in_element(rows, l_cur):
        idx = lax.broadcasted_iota(jnp.int32, (rows, 1), 0)
        if (l_cur & (l_cur - 1)) == 0:                     # power of two
            return idx & (l_cur - 1)
        return idx % l_cur

    def shift_prev(v, pos):
        """v[r] -> v[r-1]; zero at each batch element's first row."""
        return jnp.where(pos == 0, jnp.zeros((), v.dtype),
                         pltpu.roll(v, shift=1, axis=0))

    def shift_next(v, pos, l_cur):
        """v[r] -> v[r+1]; zero at each batch element's last row."""
        return jnp.where(pos == l_cur - 1, jnp.zeros((), v.dtype),
                         pltpu.roll(v, shift=v.shape[0] - 1, axis=0))

    def max_pool2(y):
        """MaxPool1d(2) over row pairs (pairs never cross a batch boundary
        because every per-element length is even).  Pair-max in registers,
        then ONE store + ONE stride-2 read of the even rows."""
        rows = y.shape[0]
        m = jnp.maximum(y, pltpu.roll(y, shift=rows - 1, axis=0))
        pool_scr[pl.ds(0, rows), :] = m
        return pool_scr[pl.ds(0, rows // 2, stride=2), :]

    # ---- layer 1 (C_in == 1): VPU broadcast-multiplies, no MXU ----
    x = x_ref[...].astype(f32)                             # (n, 1)
    pos = pos_in_element(n, seq_len)
    y = (shift_prev(x, pos) * w1_ref[0] + x * w1_ref[1]
         + shift_next(x, pos, seq_len) * w1_ref[2] + b1_ref[...])
    a = max_pool2(jnp.maximum(y, 0.0))                     # (n//2, 64) f32

    # ---- layers 2..4: shifted-output form, three K=64 bf16 matmuls each ----
    l_cur = seq_len // 2
    for i in range(w234_ref.shape[0]):
        rows = a.shape[0]
        a_bf = a.astype(jnp.bfloat16)                      # single cast per layer
        p0 = jnp.dot(a_bf, w234_ref[i, 0], preferred_element_type=f32)
        p1 = jnp.dot(a_bf, w234_ref[i, 1], preferred_element_type=f32)
        p2 = jnp.dot(a_bf, w234_ref[i, 2], preferred_element_type=f32)
        pos = pos_in_element(rows, l_cur)
        # y[l] = P0[l-1] + P1[l] + P2[l+1]  (zero outside each element)
        y = shift_prev(p0, pos) + p1 + shift_next(p2, pos, l_cur) + b234_ref[i]
        a = max_pool2(jnp.maximum(y, 0.0))
        l_cur //= 2

    # One whole-block, lane-contiguous store (no per-batch masked slices).
    o_ref[...] = a.astype(o_ref.dtype)


# ---------------------------------------------------------------------------
# Host-side wrapper.
# ---------------------------------------------------------------------------
def _num_tensorcores():
    """2 TensorCores on v7x, 1 on v5e/v6e (fallback: 1)."""
    try:
        kind = jax.devices()[0].device_kind.lower()
    except Exception:
        return 1
    return 2 if ("v7" in kind or "7x" in kind) else 1


def _pick_block_batch(batch, seq_len, l_f, num_tc, vmem_budget_bytes=24 << 20):
    """Largest bt (divisor of batch) that (a) leaves >= num_tc grid steps when
    possible, (b) keeps a per-step VMEM estimate under budget, and (c) keeps
    the block specs legal ((bt*l_f) % 8 unless the block spans the full dim)."""
    def vmem_est(bt):
        rows = bt * seq_len
        col_in = 2 * rows * 512        # (rows,1) f32 lane-padded, double-buffered
        scratch = rows * 512           # (rows,64) f32 pool scratch (128-lane pad)
        live = 2 * rows * 512          # live intermediates (rough headroom)
        out = 2 * bt * l_f * 512       # output block, double-buffered
        return col_in + scratch + live + out + (1 << 20)   # + weights/bias

    def legal(bt):
        if batch % bt:
            return False
        if bt != batch and (bt * l_f) % 8 != 0:
            return False
        return vmem_est(bt) <= vmem_budget_bytes

    candidates = [bt for bt in range(1, batch + 1) if legal(bt)]
    preferred = [bt for bt in candidates if batch // bt >= num_tc]
    pool = preferred or candidates or [batch]
    return max(pool)


@jax.jit
def encoder_forward(x_ncl, params):
    """x_ncl: (B, 1, L) PyTorch NCW f32. Returns (B, 64 * L // 16)."""
    w1, b1, w234, b234 = params
    B, C, L = x_ncl.shape
    n_layers = 1 + w234.shape[0]
    assert C == 1 and L % (2 ** n_layers) == 0
    c_out = w1.shape[-1]
    l_f = L // (2 ** n_layers)
    bt = _pick_block_batch(B, L, l_f, _num_tensorcores())

    # C_in == 1, so NCW -> "time-major column" is a free reshape (no copy).
    x_col = x_ncl.reshape(B * L, 1)

    out2d = pl.pallas_call(
        partial(encoder_kernel, seq_len=L),
        out_shape=jax.ShapeDtypeStruct((B * l_f, c_out), jnp.float32),
        grid_spec=pltpu.PrefetchScalarGridSpec(
            num_scalar_prefetch=0,
            grid=(B // bt,),
            in_specs=[
                pl.BlockSpec((bt * L, 1), lambda g: (g, 0)),
                pl.BlockSpec(w1.shape, lambda g: (0, 0, 0)),
                pl.BlockSpec(b1.shape, lambda g: (0, 0)),
                pl.BlockSpec(w234.shape, lambda g: (0, 0, 0, 0)),
                pl.BlockSpec(b234.shape, lambda g: (0, 0, 0)),
            ],
            out_specs=pl.BlockSpec((bt * l_f, c_out), lambda g: (g, 0)),
            scratch_shapes=[pltpu.VMEM((bt * L, c_out), jnp.float32)],
        ),
        compiler_params=pltpu.CompilerParams(
            dimension_semantics=("parallel",),
            vmem_limit_bytes=32 * 1024 * 1024,
        ),
    )(x_col, w1, b1, w234, b234)

    # PyTorch flattens the NCW tensor channel-major: (B, Lf, C) -> (B, C, Lf).
    # Tiny (B, 4, 64) host transpose; a consumer accepting time-major (B, Lf, C)
    # could drop it and make the whole forward a single launch.
    return jnp.transpose(out2d.reshape(B, l_f, c_out), (0, 2, 1)).reshape(B, -1)


# ---------------------------------------------------------------------------
# Parameters (deterministic, PyTorch-init-style), pre-folded for the kernel.
# ---------------------------------------------------------------------------
def init_encoder_params(key, *, z_dim=64, n_layers=4, eps=1e-5):
    """Inference-mode BatchNorm (running_mean=0, running_var=1) is folded:
    scale goes into the conv weights, shift into the bias."""
    c_in = 1
    w_first = b_first = None
    w_rest, b_rest = [], []
    for layer in range(n_layers):
        key, kw, kb, kg, kbt = jax.random.split(key, 5)
        fan_in = c_in * 3
        bound = 1.0 / float(fan_in) ** 0.5
        # (3, C_in, C_out): tap 0 pairs with x[l-1] (PyTorch kernel pos 0).
        w = jax.random.uniform(kw, (3, c_in, z_dim), jnp.float32, -bound, bound)
        conv_b = jax.random.uniform(kb, (z_dim,), jnp.float32, -bound, bound)
        gamma = jax.random.uniform(kg, (z_dim,), jnp.float32, 0.5, 1.5)
        beta = jax.random.uniform(kbt, (z_dim,), jnp.float32, -0.5, 0.5)
        running_mean = jnp.zeros((z_dim,), jnp.float32)
        running_var = jnp.ones((z_dim,), jnp.float32)
        scale = gamma / jnp.sqrt(running_var + eps)
        w_folded = w * scale                                   # fold BN scale
        bias_folded = (scale * (conv_b - running_mean) + beta).reshape(1, z_dim)
        if layer == 0:
            w_first = w_folded                                 # (3, 1, 64) f32
            b_first = bias_folded
        else:
            w_rest.append(w_folded.astype(jnp.bfloat16))       # (3, 64, 64) bf16
            b_rest.append(bias_folded)
        c_in = z_dim
    return (w_first, b_first, jnp.stack(w_rest, 0), jnp.stack(b_rest, 0))


# ---------------------------------------------------------------------------
# Pure-JAX reference (same folded params / same bf16 casts) for validation.
# ---------------------------------------------------------------------------
def _reference_forward(x_ncl, params):
    w1, b1, w234, b234 = params
    B, _, L = x_ncl.shape
    a = x_ncl.reshape(B, L, 1).astype(jnp.float32)

    def shift_prev(t):
        return jnp.pad(t, ((0, 0), (1, 0), (0, 0)))[:, :-1, :]

    def shift_next(t):
        return jnp.pad(t, ((0, 0), (0, 1), (0, 0)))[:, 1:, :]

    # layer 1 (elementwise)
    y = shift_prev(a) * w1[0] + a * w1[1] + shift_next(a) * w1[2] + b1
    y = jnp.maximum(y, 0.0)
    l_cur = L // 2
    a = jnp.max(y.reshape(B, l_cur, 2, -1), axis=2)
    # layers 2..4 (shifted-output form, bf16 operands, f32 accumulation)
    for i in range(w234.shape[0]):
        a_bf = a.astype(jnp.bfloat16)
        p = jnp.einsum("blc,tcd->tbld", a_bf, w234[i],
                       preferred_element_type=jnp.float32)
        y = shift_prev(p[0]) + p[1] + shift_next(p[2]) + b234[i]
        y = jnp.maximum(y, 0.0)
        l_cur //= 2
        a = jnp.max(y.reshape(B, l_cur, 2, -1), axis=2)
    return jnp.transpose(a, (0, 2, 1)).reshape(B, -1)


if __name__ == "__main__":
    key = jax.random.PRNGKey(0)
    key, kx, kp = jax.random.split(key, 3)

    B, C, L = 8, 1, 64                         # L must be divisible by 16
    x = jax.random.normal(kx, (B, C, L), dtype=jnp.float32)
    params = init_encoder_params(kp)

    out = jax.block_until_ready(encoder_forward(x, params))

    assert out.shape == (B, 64 * (L // 16)), out.shape
    assert bool(jnp.all(jnp.isfinite(out)))

    ref = _reference_forward(x, params)
    max_err = float(jnp.max(jnp.abs(out - ref)))
    assert jnp.allclose(out, ref, rtol=1e-2, atol=1e-2), max_err

    print("KERNEL_OK")
</pallas_src>

<mosaic_0001>
module attributes {stable_mosaic.version = 11 : i64} {
  func.func @encoder_kernel(%arg0: i32, %arg1: memref<512x1xf32, #tpu.memory_space<vmem>>, %arg2: memref<3x1x64xf32, #tpu.memory_space<vmem>>, %arg3: memref<1x64xf32, #tpu.memory_space<vmem>>, %arg4: memref<3x3x64x64xbf16, #tpu.memory_space<vmem>>, %arg5: memref<3x1x64xf32, #tpu.memory_space<vmem>>, %arg6: memref<32x64xf32, #tpu.memory_space<vmem>>, %arg7: memref<512x64xf32, #tpu.memory_space<vmem>>) attributes {dimension_semantics = [#tpu.dimension_semantics<parallel>], iteration_bounds = array<i64: 1>, scalar_prefetch = 0 : i64, scratch_operands = 1 : i64, tpu.core_type = #tpu.core_type<tc>, window_params = [{transform_indices = @transform_0, window_bounds = array<i64: 512, 1>}, {pipeline_mode = #tpu.pipeline_mode<synchronous>, transform_indices = @transform_1, window_bounds = array<i64: 3, 1, 64>}, {pipeline_mode = #tpu.pipeline_mode<synchronous>, transform_indices = @transform_2, window_bounds = array<i64: 1, 64>}, {pipeline_mode = #tpu.pipeline_mode<synchronous>, transform_indices = @transform_3, window_bounds = array<i64: 3, 3, 64, 64>}, {pipeline_mode = #tpu.pipeline_mode<synchronous>, transform_indices = @transform_4, window_bounds = array<i64: 3, 1, 64>}, {transform_indices = @transform_5, window_bounds = array<i64: 32, 64>}]} {
    %c0 = arith.constant 0 : index
    %c0_0 = arith.constant 0 : index
    %0 = vector.load %arg1[%c0, %c0_0] : memref<512x1xf32, #tpu.memory_space<vmem>>, vector<512x1xf32>
    %1 = tpu.iota {dimensions = array<i32: 0>} : vector<512x1xi32>
    %c63_i32 = arith.constant 63 : i32
    %2 = vector.broadcast %c63_i32 : i32 to vector<512x1xi32>
    %3 = arith.andi %1, %2 : vector<512x1xi32>
    %c0_i32 = arith.constant 0 : i32
    %4 = vector.broadcast %c0_i32 : i32 to vector<512x1xi32>
    %5 = arith.cmpi eq, %3, %4 : vector<512x1xi32>
    %c1_i32 = arith.constant 1 : i32
    %6 = tpu.dynamic_rotate %0 by %c1_i32 dim 0 : vector<512x1xf32>, i32 -> vector<512x1xf32>
    %cst = arith.constant 0.000000e+00 : f32
    %7 = vector.broadcast %cst : f32 to vector<512x1xf32>
    %8 = arith.select %5, %7, %6 : vector<512x1xi1>, vector<512x1xf32>
    %c0_1 = arith.constant 0 : index
    %c0_2 = arith.constant 0 : index
    %c0_3 = arith.constant 0 : index
    %9 = vector.load %arg2[%c0_1, %c0_2, %c0_3] : memref<3x1x64xf32, #tpu.memory_space<vmem>>, vector<1x1x64xf32>
    %10 = vector.shape_cast %9 : vector<1x1x64xf32> to vector<1x64xf32>
    %11 = vector.broadcast %8 : vector<512x1xf32> to vector<512x64xf32>
    %12 = vector.broadcast %10 : vector<1x64xf32> to vector<512x64xf32>
    %13 = arith.mulf %11, %12 : vector<512x64xf32>
    %c1 = arith.constant 1 : index
    %c0_4 = arith.constant 0 : index
    %c0_5 = arith.constant 0 : index
    %14 = vector.load %arg2[%c1, %c0_4, %c0_5] : memref<3x1x64xf32, #tpu.memory_space<vmem>>, vector<1x1x64xf32>
    %15 = vector.shape_cast %14 : vector<1x1x64xf32> to vector<1x64xf32>
    %16 = vector.broadcast %0 : vector<512x1xf32> to vector<512x64xf32>
    %17 = vector.broadcast %15 : vector<1x64xf32> to vector<512x64xf32>
    %18 = arith.mulf %16, %17 : vector<512x64xf32>
    %19 = arith.addf %13, %18 : vector<512x64xf32>
    %c63_i32_6 = arith.constant 63 : i32
    %20 = vector.broadcast %c63_i32_6 : i32 to vector<512x1xi32>
    %21 = arith.cmpi eq, %3, %20 : vector<512x1xi32>
    %c511_i32 = arith.constant 511 : i32
    %22 = tpu.dynamic_rotate %0 by %c511_i32 dim 0 : vector<512x1xf32>, i32 -> vector<512x1xf32>
    %cst_7 = arith.constant 0.000000e+00 : f32
    %23 = vector.broadcast %cst_7 : f32 to vector<512x1xf32>
    %24 = arith.select %21, %23, %22 : vector<512x1xi1>, vector<512x1xf32>
    %c2 = arith.constant 2 : index
    %c0_8 = arith.constant 0 : index
    %c0_9 = arith.constant 0 : index
    %25 = vector.load %arg2[%c2, %c0_8, %c0_9] : memref<3x1x64xf32, #tpu.memory_space<vmem>>, vector<1x1x64xf32>
    %26 = vector.shape_cast %25 : vector<1x1x64xf32> to vector<1x64xf32>
    %27 = vector.broadcast %24 : vector<512x1xf32> to vector<512x64xf32>
    %28 = vector.broadcast %26 : vector<1x64xf32> to vector<512x64xf32>
    %29 = arith.mulf %27, %28 : vector<512x64xf32>
    %30 = arith.addf %19, %29 : vector<512x64xf32>
    %c0_10 = arith.constant 0 : index
    %c0_11 = arith.constant 0 : index
    %31 = vector.load %arg3[%c0_10, %c0_11] : memref<1x64xf32, #tpu.memory_space<vmem>>, vector<1x64xf32>
    %32 = vector.broadcast %31 : vector<1x64xf32> to vector<512x64xf32>
    %33 = arith.addf %30, %32 : vector<512x64xf32>
    %cst_12 = arith.constant 0.000000e+00 : f32
    %34 = vector.broadcast %cst_12 : f32 to vector<512x64xf32>
    %35 = arith.maximumf %33, %34 : vector<512x64xf32>
    %c511_i32_13 = arith.constant 511 : i32
    %36 = tpu.dynamic_rotate %35 by %c511_i32_13 dim 0 : vector<512x64xf32>, i32 -> vector<512x64xf32>
    %37 = arith.maximumf %35, %36 : vector<512x64xf32>
    %c0_14 = arith.constant 0 : index
    %c0_15 = arith.constant 0 : index
    %38 = vector.load %arg7[%c0_14, %c0_15] : memref<512x64xf32, #tpu.memory_space<vmem>>, vector<512x64xf32>
    tpu.vector_store %arg7[%c0_14, %c0_15], %37 {strides = array<i32>} : memref<512x64xf32, #tpu.memory_space<vmem>>, vector<512x64xf32>,
    %c0_16 = arith.constant 0 : index
    %c0_17 = arith.constant 0 : index
    %39 = tpu.strided_load %arg7[%c0_16, %c0_17] {strides = array<i32: 2, 1>} : memref<512x64xf32, #tpu.memory_space<vmem>>, vector<256x64xf32>
    %40 = arith.truncf %39 : vector<256x64xf32> to vector<256x64xbf16>
    %c0_18 = arith.constant 0 : index
    %c0_19 = arith.constant 0 : index
    %c0_20 = arith.constant 0 : index
    %c0_21 = arith.constant 0 : index
    %41 = vector.load %arg4[%c0_18, %c0_19, %c0_20, %c0_21] : memref<3x3x64x64xbf16, #tpu.memory_space<vmem>>, vector<1x1x64x64xbf16>
    %42 = vector.shape_cast %41 : vector<1x1x64x64xbf16> to vector<64x64xbf16>
    %cst_22 = arith.constant dense<0.000000e+00> : vector<256x64xf32>
    %43 = tpu.matmul %40, %42, %cst_22 {dimension_numbers = #tpu.dot_dimension_numbers<[1], [0], [0], [1], [0, 0, 1, 1], [], []>} : vector<256x64xbf16>, vector<64x64xbf16>, vector<256x64xf32> -> vector<256x64xf32>
    %c0_23 = arith.constant 0 : index
    %c1_24 = arith.constant 1 : index
    %c0_25 = arith.constant 0 : index
    %c0_26 = arith.constant 0 : index
    %44 = vector.load %arg4[%c0_23, %c1_24, %c0_25, %c0_26] : memref<3x3x64x64xbf16, #tpu.memory_space<vmem>>, vector<1x1x64x64xbf16>
    %45 = vector.shape_cast %44 : vector<1x1x64x64xbf16> to vector<64x64xbf16>
    %cst_27 = arith.constant dense<0.000000e+00> : vector<256x64xf32>
    %46 = tpu.matmul %40, %45, %cst_27 {dimension_numbers = #tpu.dot_dimension_numbers<[1], [0], [0], [1], [0, 0, 1, 1], [], []>} : vector<256x64xbf16>, vector<64x64xbf16>, vector<256x64xf32> -> vector<256x64xf32>
    %c0_28 = arith.constant 0 : index
    %c2_29 = arith.constant 2 : index
    %c0_30 = arith.constant 0 : index
    %c0_31 = arith.constant 0 : index
    %47 = vector.load %arg4[%c0_28, %c2_29, %c0_30, %c0_31] : memref<3x3x64x64xbf16, #tpu.memory_space<vmem>>, vector<1x1x64x64xbf16>
    %48 = vector.shape_cast %47 : vector<1x1x64x64xbf16> to vector<64x64xbf16>
    %cst_32 = arith.constant dense<0.000000e+00> : vector<256x64xf32>
    %49 = tpu.matmul %40, %48, %cst_32 {dimension_numbers = #tpu.dot_dimension_numbers<[1], [0], [0], [1], [0, 0, 1, 1], [], []>} : vector<256x64xbf16>, vector<64x64xbf16>, vector<256x64xf32> -> vector<256x64xf32>
    %50 = tpu.iota {dimensions = array<i32: 0>} : vector<256x1xi32>
    %c31_i32 = arith.constant 31 : i32
    %51 = vector.broadcast %c31_i32 : i32 to vector<256x1xi32>
    %52 = arith.andi %50, %51 : vector<256x1xi32>
    %c0_i32_33 = arith.constant 0 : i32
    %53 = vector.broadcast %c0_i32_33 : i32 to vector<256x1xi32>
    %54 = arith.cmpi eq, %52, %53 : vector<256x1xi32>
    %c1_i32_34 = arith.constant 1 : i32
    %55 = tpu.dynamic_rotate %43 by %c1_i32_34 dim 0 : vector<256x64xf32>, i32 -> vector<256x64xf32>
    %cst_35 = arith.constant 0.000000e+00 : f32
    %56 = vector.shape_cast %54 : vector<256x1xi1> to vector<256x1xi1>
    %57 = vector.broadcast %56 : vector<256x1xi1> to vector<256x64xi1>
    %58 = vector.broadcast %cst_35 : f32 to vector<256x64xf32>
    %59 = arith.select %57, %58, %55 : vector<256x64xi1>, vector<256x64xf32>
    %60 = arith.addf %59, %46 : vector<256x64xf32>
    %c31_i32_36 = arith.constant 31 : i32
    %61 = vector.broadcast %c31_i32_36 : i32 to vector<256x1xi32>
    %62 = arith.cmpi eq, %52, %61 : vector<256x1xi32>
    %c255_i32 = arith.constant 255 : i32
    %63 = tpu.dynamic_rotate %49 by %c255_i32 dim 0 : vector<256x64xf32>, i32 -> vector<256x64xf32>
    %cst_37 = arith.constant 0.000000e+00 : f32
    %64 = vector.shape_cast %62 : vector<256x1xi1> to vector<256x1xi1>
    %65 = vector.broadcast %64 : vector<256x1xi1> to vector<256x64xi1>
    %66 = vector.broadcast %cst_37 : f32 to vector<256x64xf32>
    %67 = arith.select %65, %66, %63 : vector<256x64xi1>, vector<256x64xf32>
    %68 = arith.addf %60, %67 : vector<256x64xf32>
    %c0_38 = arith.constant 0 : index
    %c0_39 = arith.constant 0 : index
    %c0_40 = arith.constant 0 : index
    %69 = vector.load %arg5[%c0_38, %c0_39, %c0_40] : memref<3x1x64xf32, #tpu.memory_space<vmem>>, vector<1x1x64xf32>
    %70 = vector.shape_cast %69 : vector<1x1x64xf32> to vector<1x64xf32>
    %71 = vector.broadcast %70 : vector<1x64xf32> to vector<256x64xf32>
    %72 = arith.addf %68, %71 : vector<256x64xf32>
    %cst_41 = arith.constant 0.000000e+00 : f32
    %73 = vector.broadcast %cst_41 : f32 to vector<256x64xf32>
    %74 = arith.maximumf %72, %73 : vector<256x64xf32>
    %c255_i32_42 = arith.constant 255 : i32
    %75 = tpu.dynamic_rotate %74 by %c255_i32_42 dim 0 : vector<256x64xf32>, i32 -> vector<256x64xf32>
    %76 = arith.maximumf %74, %75 : vector<256x64xf32>
    %c0_43 = arith.constant 0 : index
    %c0_44 = arith.constant 0 : index
    %77 = vector.load %arg7[%c0_43, %c0_44] : memref<512x64xf32, #tpu.memory_space<vmem>>, vector<256x64xf32>
    tpu.vector_store %arg7[%c0_43, %c0_44], %76 {strides = array<i32>} : memref<512x64xf32, #tpu.memory_space<vmem>>, vector<256x64xf32>,
    %c0_45 = arith.constant 0 : index
    %c0_46 = arith.constant 0 : index
    %78 = tpu.strided_load %arg7[%c0_45, %c0_46] {strides = array<i32: 2, 1>} : memref<512x64xf32, #tpu.memory_space<vmem>>, vector<128x64xf32>
    %79 = arith.truncf %78 : vector<128x64xf32> to vector<128x64xbf16>
    %c1_47 = arith.constant 1 : index
    %c0_48 = arith.constant 0 : index
    %c0_49 = arith.constant 0 : index
    %c0_50 = arith.constant 0 : index
    %80 = vector.load %arg4[%c1_47, %c0_48, %c0_49, %c0_50] : memref<3x3x64x64xbf16, #tpu.memory_space<vmem>>, vector<1x1x64x64xbf16>
    %81 = vector.shape_cast %80 : vector<1x1x64x64xbf16> to vector<64x64xbf16>
    %cst_51 = arith.constant dense<0.000000e+00> : vector<128x64xf32>
    %82 = tpu.matmul %79, %81, %cst_51 {dimension_numbers = #tpu.dot_dimension_numbers<[1], [0], [0], [1], [0, 0, 1, 1], [], []>} : vector<128x64xbf16>, vector<64x64xbf16>, vector<128x64xf32> -> vector<128x64xf32>
    %c1_52 = arith.constant 1 : index
    %c1_53 = arith.constant 1 : index
    %c0_54 = arith.constant 0 : index
    %c0_55 = arith.constant 0 : index
    %83 = vector.load %arg4[%c1_52, %c1_53, %c0_54, %c0_55] : memref<3x3x64x64xbf16, #tpu.memory_space<vmem>>, vector<1x1x64x64xbf16>
    %84 = vector.shape_cast %83 : vector<1x1x64x64xbf16> to vector<64x64xbf16>
    %cst_56 = arith.constant dense<0.000000e+00> : vector<128x64xf32>
    %85 = tpu.matmul %79, %84, %cst_56 {dimension_numbers = #tpu.dot_dimension_numbers<[1], [0], [0], [1], [0, 0, 1, 1], [], []>} : vector<128x64xbf16>, vector<64x64xbf16>, vector<128x64xf32> -> vector<128x64xf32>
    %c1_57 = arith.constant 1 : index
    %c2_58 = arith.constant 2 : index
    %c0_59 = arith.constant 0 : index
    %c0_60 = arith.constant 0 : index
    %86 = vector.load %arg4[%c1_57, %c2_58, %c0_59, %c0_60] : memref<3x3x64x64xbf16, #tpu.memory_space<vmem>>, vector<1x1x64x64xbf16>
    %87 = vector.shape_cast %86 : vector<1x1x64x64xbf16> to vector<64x64xbf16>
    %cst_61 = arith.constant dense<0.000000e+00> : vector<128x64xf32>
    %88 = tpu.matmul %79, %87, %cst_61 {dimension_numbers = #tpu.dot_dimension_numbers<[1], [0], [0], [1], [0, 0, 1, 1], [], []>} : vector<128x64xbf16>, vector<64x64xbf16>, vector<128x64xf32> -> vector<128x64xf32>
    %89 = tpu.iota {dimensions = array<i32: 0>} : vector<128x1xi32>
    %c15_i32 = arith.constant 15 : i32
    %90 = vector.broadcast %c15_i32 : i32 to vector<128x1xi32>
    %91 = arith.andi %89, %90 : vector<128x1xi32>
    %c0_i32_62 = arith.constant 0 : i32
    %92 = vector.broadcast %c0_i32_62 : i32 to vector<128x1xi32>
    %93 = arith.cmpi eq, %91, %92 : vector<128x1xi32>
    %c1_i32_63 = arith.constant 1 : i32
    %94 = tpu.dynamic_rotate %82 by %c1_i32_63 dim 0 : vector<128x64xf32>, i32 -> vector<128x64xf32>
    %cst_64 = arith.constant 0.000000e+00 : f32
    %95 = vector.shape_cast %93 : vector<128x1xi1> to vector<128x1xi1>
    %96 = vector.broadcast %95 : vector<128x1xi1> to vector<128x64xi1>
    %97 = vector.broadcast %cst_64 : f32 to vector<128x64xf32>
    %98 = arith.select %96, %97, %94 : vector<128x64xi1>, vector<128x64xf32>
    %99 = arith.addf %98, %85 : vector<128x64xf32>
    %c15_i32_65 = arith.constant 15 : i32
    %100 = vector.broadcast %c15_i32_65 : i32 to vector<128x1xi32>
    %101 = arith.cmpi eq, %91, %100 : vector<128x1xi32>
    %c127_i32 = arith.constant 127 : i32
    %102 = tpu.dynamic_rotate %88 by %c127_i32 dim 0 : vector<128x64xf32>, i32 -> vector<128x64xf32>
    %cst_66 = arith.constant 0.000000e+00 : f32
    %103 = vector.shape_cast %101 : vector<128x1xi1> to vector<128x1xi1>
    %104 = vector.broadcast %103 : vector<128x1xi1> to vector<128x64xi1>
    %105 = vector.broadcast %cst_66 : f32 to vector<128x64xf32>
    %106 = arith.select %104, %105, %102 : vector<128x64xi1>, vector<128x64xf32>
    %107 = arith.addf %99, %106 : vector<128x64xf32>
    %c1_67 = arith.constant 1 : index
    %c0_68 = arith.constant 0 : index
    %c0_69 = arith.constant 0 : index
    %108 = vector.load %arg5[%c1_67, %c0_68, %c0_69] : memref<3x1x64xf32, #tpu.memory_space<vmem>>, vector<1x1x64xf32>
    %109 = vector.shape_cast %108 : vector<1x1x64xf32> to vector<1x64xf32>
    %110 = vector.broadcast %109 : vector<1x64xf32> to vector<128x64xf32>
    %111 = arith.addf %107, %110 : vector<128x64xf32>
    %cst_70 = arith.constant 0.000000e+00 : f32
    %112 = vector.broadcast %cst_70 : f32 to vector<128x64xf32>
    %113 = arith.maximumf %111, %112 : vector<128x64xf32>
    %c127_i32_71 = arith.constant 127 : i32
    %114 = tpu.dynamic_rotate %113 by %c127_i32_71 dim 0 : vector<128x64xf32>, i32 -> vector<128x64xf32>
    %115 = arith.maximumf %113, %114 : vector<128x64xf32>
    %c0_72 = arith.constant 0 : index
    %c0_73 = arith.constant 0 : index
    %116 = vector.load %arg7[%c0_72, %c0_73] : memref<512x64xf32, #tpu.memory_space<vmem>>, vector<128x64xf32>
    tpu.vector_store %arg7[%c0_72, %c0_73], %115 {strides = array<i32>} : memref<512x64xf32, #tpu.memory_space<vmem>>, vector<128x64xf32>,
    %c0_74 = arith.constant 0 : index
    %c0_75 = arith.constant 0 : index
    %117 = tpu.strided_load %arg7[%c0_74, %c0_75] {strides = array<i32: 2, 1>} : memref<512x64xf32, #tpu.memory_space<vmem>>, vector<64x64xf32>
    %118 = arith.truncf %117 : vector<64x64xf32> to vector<64x64xbf16>
    %c2_76 = arith.constant 2 : index
    %c0_77 = arith.constant 0 : index
    %c0_78 = arith.constant 0 : index
    %c0_79 = arith.constant 0 : index
    %119 = vector.load %arg4[%c2_76, %c0_77, %c0_78, %c0_79] : memref<3x3x64x64xbf16, #tpu.memory_space<vmem>>, vector<1x1x64x64xbf16>
    %120 = vector.shape_cast %119 : vector<1x1x64x64xbf16> to vector<64x64xbf16>
    %cst_80 = arith.constant dense<0.000000e+00> : vector<64x64xf32>
    %121 = tpu.matmul %118, %120, %cst_80 {dimension_numbers = #tpu.dot_dimension_numbers<[1], [0], [0], [1], [0, 0, 1, 1], [], []>} : vector<64x64xbf16>, vector<64x64xbf16>, vector<64x64xf32> -> vector<64x64xf32>
    %c2_81 = arith.constant 2 : index
    %c1_82 = arith.constant 1 : index
    %c0_83 = arith.constant 0 : index
    %c0_84 = arith.constant 0 : index
    %122 = vector.load %arg4[%c2_81, %c1_82, %c0_83, %c0_84] : memref<3x3x64x64xbf16, #tpu.memory_space<vmem>>, vector<1x1x64x64xbf16>
    %123 = vector.shape_cast %122 : vector<1x1x64x64xbf16> to vector<64x64xbf16>
    %cst_85 = arith.constant dense<0.000000e+00> : vector<64x64xf32>
    %124 = tpu.matmul %118, %123, %cst_85 {dimension_numbers = #tpu.dot_dimension_numbers<[1], [0], [0], [1], [0, 0, 1, 1], [], []>} : vector<64x64xbf16>, vector<64x64xbf16>, vector<64x64xf32> -> vector<64x64xf32>
    %c2_86 = arith.constant 2 : index
    %c2_87 = arith.constant 2 : index
    %c0_88 = arith.constant 0 : index
    %c0_89 = arith.constant 0 : index
    %125 = vector.load %arg4[%c2_86, %c2_87, %c0_88, %c0_89] : memref<3x3x64x64xbf16, #tpu.memory_space<vmem>>, vector<1x1x64x64xbf16>
    %126 = vector.shape_cast %125 : vector<1x1x64x64xbf16> to vector<64x64xbf16>
    %cst_90 = arith.constant dense<0.000000e+00> : vector<64x64xf32>
    %127 = tpu.matmul %118, %126, %cst_90 {dimension_numbers = #tpu.dot_dimension_numbers<[1], [0], [0], [1], [0, 0, 1, 1], [], []>} : vector<64x64xbf16>, vector<64x64xbf16>, vector<64x64xf32> -> vector<64x64xf32>
    %128 = tpu.iota {dimensions = array<i32: 0>} : vector<64x1xi32>
    %c7_i32 = arith.constant 7 : i32
    %129 = vector.broadcast %c7_i32 : i32 to vector<64x1xi32>
    %130 = arith.andi %128, %129 : vector<64x1xi32>
    %c0_i32_91 = arith.constant 0 : i32
    %131 = vector.broadcast %c0_i32_91 : i32 to vector<64x1xi32>
    %132 = arith.cmpi eq, %130, %131 : vector<64x1xi32>
    %c1_i32_92 = arith.constant 1 : i32
    %133 = tpu.dynamic_rotate %121 by %c1_i32_92 dim 0 : vector<64x64xf32>, i32 -> vector<64x64xf32>
    %cst_93 = arith.constant 0.000000e+00 : f32
    %134 = vector.shape_cast %132 : vector<64x1xi1> to vector<64x1xi1>
    %135 = vector.broadcast %134 : vector<64x1xi1> to vector<64x64xi1>
    %136 = vector.broadcast %cst_93 : f32 to vector<64x64xf32>
    %137 = arith.select %135, %136, %133 : vector<64x64xi1>, vector<64x64xf32>
    %138 = arith.addf %137, %124 : vector<64x64xf32>
    %c7_i32_94 = arith.constant 7 : i32
    %139 = vector.broadcast %c7_i32_94 : i32 to vector<64x1xi32>
    %140 = arith.cmpi eq, %130, %139 : vector<64x1xi32>
    %c63_i32_95 = arith.constant 63 : i32
    %141 = tpu.dynamic_rotate %127 by %c63_i32_95 dim 0 : vector<64x64xf32>, i32 -> vector<64x64xf32>
    %cst_96 = arith.constant 0.000000e+00 : f32
    %142 = vector.shape_cast %140 : vector<64x1xi1> to vector<64x1xi1>
    %143 = vector.broadcast %142 : vector<64x1xi1> to vector<64x64xi1>
    %144 = vector.broadcast %cst_96 : f32 to vector<64x64xf32>
    %145 = arith.select %143, %144, %141 : vector<64x64xi1>, vector<64x64xf32>
    %146 = arith.addf %138, %145 : vector<64x64xf32>
    %c2_97 = arith.constant 2 : index
    %c0_98 = arith.constant 0 : index
    %c0_99 = arith.constant 0 : index
    %147 = vector.load %arg5[%c2_97, %c0_98, %c0_99] : memref<3x1x64xf32, #tpu.memory_space<vmem>>, vector<1x1x64xf32>
    %148 = vector.shape_cast %147 : vector<1x1x64xf32> to vector<1x64xf32>
    %149 = vector.broadcast %148 : vector<1x64xf32> to vector<64x64xf32>
    %150 = arith.addf %146, %149 : vector<64x64xf32>
    %cst_100 = arith.constant 0.000000e+00 : f32
    %151 = vector.broadcast %cst_100 : f32 to vector<64x64xf32>
    %152 = arith.maximumf %150, %151 : vector<64x64xf32>
    %c63_i32_101 = arith.constant 63 : i32
    %153 = tpu.dynamic_rotate %152 by %c63_i32_101 dim 0 : vector<64x64xf32>, i32 -> vector<64x64xf32>
    %154 = arith.maximumf %152, %153 : vector<64x64xf32>
    %c0_102 = arith.constant 0 : index
    %c0_103 = arith.constant 0 : index
    %155 = vector.load %arg7[%c0_102, %c0_103] : memref<512x64xf32, #tpu.memory_space<vmem>>, vector<64x64xf32>
    tpu.vector_store %arg7[%c0_102, %c0_103], %154 {strides = array<i32>} : memref<512x64xf32, #tpu.memory_space<vmem>>, vector<64x64xf32>,
    %c0_104 = arith.constant 0 : index
    %c0_105 = arith.constant 0 : index
    %156 = tpu.strided_load %arg7[%c0_104, %c0_105] {strides = array<i32: 2, 1>} : memref<512x64xf32, #tpu.memory_space<vmem>>, vector<32x64xf32>
    %c0_106 = arith.constant 0 : index
    %c0_107 = arith.constant 0 : index
    %157 = vector.load %arg6[%c0_106, %c0_107] : memref<32x64xf32, #tpu.memory_space<vmem>>, vector<32x64xf32>
    tpu.vector_store %arg6[%c0_106, %c0_107], %156 {strides = array<i32>} : memref<32x64xf32, #tpu.memory_space<vmem>>, vector<32x64xf32>,
    return
  }
  func.func @transform_0(%arg0: i32) -> (i32, i32) {
    %c0_i32 = arith.constant 0 : i32
    %c0_i32_0 = arith.constant 0 : i32
    return %arg0, %c0_i32 : i32, i32
  }
  func.func @transform_1(%arg0: i32) -> (i32, i32, i32) {
    %c0_i32 = arith.constant 0 : i32
    %c0_i32_0 = arith.constant 0 : i32
    %c0_i32_1 = arith.constant 0 : i32
    %c0_i32_2 = arith.constant 0 : i32
    return %c0_i32, %c0_i32_0, %c0_i32_1 : i32, i32, i32
  }
  func.func @transform_2(%arg0: i32) -> (i32, i32) {
    %c0_i32 = arith.constant 0 : i32
    %c0_i32_0 = arith.constant 0 : i32
    %c0_i32_1 = arith.constant 0 : i32
    return %c0_i32, %c0_i32_0 : i32, i32
  }
  func.func @transform_3(%arg0: i32) -> (i32, i32, i32, i32) {
    %c0_i32 = arith.constant 0 : i32
    %c0_i32_0 = arith.constant 0 : i32
    %c0_i32_1 = arith.constant 0 : i32
    %c0_i32_2 = arith.constant 0 : i32
    %c0_i32_3 = arith.constant 0 : i32
    return %c0_i32, %c0_i32_0, %c0_i32_1, %c0_i32_2 : i32, i32, i32, i32
  }
  func.func @transform_4(%arg0: i32) -> (i32, i32, i32) {
    %c0_i32 = arith.constant 0 : i32
    %c0_i32_0 = arith.constant 0 : i32
    %c0_i32_1 = arith.constant 0 : i32
    %c0_i32_2 = arith.constant 0 : i32
    return %c0_i32, %c0_i32_0, %c0_i32_1 : i32, i32, i32
  }
  func.func @transform_5(%arg0: i32) -> (i32, i32) {
    %c0_i32 = arith.constant 0 : i32
    %c0_i32_0 = arith.constant 0 : i32
    return %arg0, %c0_i32 : i32, i32
  }
}

</mosaic_0001>

<bundles_post_ra>
// kernel: encoder_forward.1
= control target key start
LH: loop header
LB: loop body
LE: loop exit
PB: predicated region body
PF: predicated region fallthrough
CT: control target
= control target key end

     0   :  { %v85_v0 = vlaneseq  ;;  %v5709_v1 = vmov 0   ;;  %vm2358_vm10 = vcmask 523264   ;;  %s9196_s0 = inlined_call_operand.vmem [shape: f32[512,1], index: 0, kind: input, shape index: {}]   ;;  %s9197_s3 = inlined_call_operand.vmem [shape: bf16[3,3,64,64], index: 3, kind: input, shape index: {}]   ;;  %s9198_s1 = inlined_call_operand.vmem [shape: f32[3,1,64], index: 1, kind: input, shape index: {}]   ;;  %s9199_s2 = inlined_call_operand.vmem [shape: f32[1,64], index: 2, kind: input, shape index: {}]   ;;  %s9200_s4 = inlined_call_operand.vmem [shape: f32[3,1,64], index: 4, kind: input, shape index: {}]   ;;  %s9201_s5 = inlined_call_operand.vmem [shape: f32[32,64], index: 5, kind: output, shape index: {}]  }
   0x1   :  { %5663 = vset.pattern.permute.xlu1 %v5709_v1  ;;  %5662 = vset.pattern.permute.xlu0 %v5709_v1  ;;  %v5743_v2 = vld [vmem:[%s9196_s0 + $0x8] sm:$0xff]  ;;  %v5748_v3 = vld [vmem:[%s9196_s0 + $0x10] sm:$0xff]  ;;  %v5753_v4 = vld [vmem:[%s9196_s0] sm:$0xff] }
   0x2   :  { %v5755_v5 = vshrl.u32 %v85_v0, 7  ;;  %v279_v6 = vrot.slane %v5743_v2, 7  ;;  %v280_v7 = vrot.slane %v5748_v3, 7  ;;  %v278_v8 = vrot.slane %v5753_v4, 7  ;;  %v5763_v9 = vld [vmem:[%s9196_s0 + $0x18] sm:$0xff]  ;;  %v5768_v10 = vld [vmem:[%s9196_s0 + $0x20] sm:$0xff] }
   0x3   :  { %v281_v11 = vrot.slane %v5763_v9, 7  ;;  %v282_v12 = vrot.slane %v5768_v10, 7  ;;  %v5775_v13 = vld [vmem:[%s9196_s0 + $0x1f8] sm:$0xff]  ;;  %v26_v22 = vld [vmem:[%s9196_s0 + $0x28] sm:$0xff]  ;;  %v27_v23 = vld [vmem:[%s9196_s0 + $0x30] sm:$0xff]  ;;  %v1383_v37 = vrot.slane %v5743_v2, 1 }
   0x4   :  { %vm342_vm0 = vcmp.lt.s32.totalorder %v5755_v5, 1  ;;  %v150_v14 = vand.u32 63, %v5755_v5  ;;  %v9203_v15 = vrot.slane %v5775_v13, 7  ;;  %v5800_v24 = vadd.s32 64, %v5755_v5  ;;  %v28_v25 = vld [vmem:[%s9196_s0 + $0x38] sm:$0xff]  ;;  %v29_v26 = vld [vmem:[%s9196_s0 + $0x40] sm:$0xff] }
   0x5   :  { %v404_v16 = vsel %vm342_vm0, %v279_v6, %v280_v7  ;;  %v405_v17 = vsel %vm342_vm0, %v278_v8, %v279_v6  ;;  %v403_v18 = vsel %vm342_vm0, %v280_v7, %v281_v11  ;;  %v402_v19 = vsel %vm342_vm0, %v281_v11, %v282_v12  ;;  %v5850_v55 = vld [vmem:[%s9196_s0 + $0x48] sm:$0xff]  ;;  %v5859_v60 = vld [vmem:[%s9196_s0 + $0x50] sm:$0xff]  ;;  %v5864_v61 = vld [vmem:[%s9196_s0 + $0x58] sm:$0xff] }
   0x6   :  { %484 = vperm.xlu1 %5663, %v404_v16   ;;  %479 = vperm.xlu0 %5662, %v405_v17   ;;  %vm214_vm1 = vcmp.eq.s32.totalorder %v150_v14, 0  ;;  %v406_v20 = vsel %vm342_vm0, %v9203_v15, %v278_v8  ;;  %9232 = vst [vmem:[#allocation3_spill] sm:$0xff] %v5800_v24  ;;  %v283_v27 = vrot.slane %v26_v22, 7  ;;  %v284_v28 = vrot.slane %v27_v23, 7  ;;  %v5664_v8 = vld [vmem:[%s9197_s3 + $0x18] sm:$0xff]   ;;  %v5667_v14 = vld [vmem:[%s9197_s3 + $0x30] sm:$0xff]  }
   0x7   :  { %v407_v21 = vsel %vm214_vm1, 0.0, %v406_v20  ;;  %v158_v29 = vand.u32 63, %v5800_v24  ;;  %v285_v30 = vrot.slane %v28_v25, 7  ;;  %v286_v31 = vrot.slane %v29_v26, 7  ;;  %5413 = vmatprep.subr.bf16.mxu0 %v5664_v8  ;;  %v5908_v17 = vld [vmem:[%s9196_s0 + $0x70] sm:$0xff]  ;;  %v5668_v20 = vld [vmem:[%s9197_s3 + $0x8] sm:$0xff]  }
   0x8   :  { %v400_v32 = vsel %vm342_vm0, %v283_v27, %v284_v28  ;;  %v401_v33 = vsel %vm342_vm0, %v282_v12, %v283_v27  ;;  %v1384_v38 = vrot.slane %v5748_v3, 1  ;;  %v9202_v39 = vrot.slane %v5753_v4, 1  ;;  %5414 = vmatpush3.bf16.msra.mxu0 %v5664_v8  ;;  %v5666_v12 = vld [vmem:[%s9197_s3 + $0x10] sm:$0xff]  }
   0x9   :  { %vm222_vm2 = vcmp.eq.s32.totalorder %v158_v29, 0  ;;  %v398_v34 = vsel %vm342_vm0, %v285_v30, %v286_v31  ;;  %v399_v36 = vsel %vm342_vm0, %v284_v28, %v285_v30  ;;  %vm1446_vm3 = vcmp.lt.s32.totalorder %v5755_v5, 7  ;;  %5415 = vmatprep.subr.bf16.mxu0 %v5666_v12  ;;  %v5670_v29 = vld [vmem:[%s9197_s3] sm:$0xff]   ;;  %v43_v8 = vld [vmem:[%s9196_s0 + $0xb0] sm:$0xff] }
   0xa   :  { %489 = vperm.xlu1 %5663, %v403_v18   ;;  %494 = vperm.xlu0 %5662, %v402_v19   ;;  %v415_v35 = vsel %vm222_vm2, 0.0, %v398_v34  ;;  %v1508_v40 = vsel %vm1446_vm3, %v1383_v37, %v1384_v38  ;;  %v1509_v41 = vsel %vm1446_vm3, %v9202_v39, %v1383_v37  ;;  %v1385_v42 = vrot.slane %v5763_v9, 1  ;;  %v5913_v18 = vld [vmem:[%s9196_s0 + $0x78] sm:$0xff]  ;;  %v5671_v30 = vld [vmem:[%s9197_s3 + $0x20] sm:$0xff]  }
   0xb   :  { %v1386_v43 = vrot.slane %v5768_v10, 1  ;;  %v5834_v44 = vadd.s32 56, %v5755_v5  ;;  %v1387_v47 = vrot.slane %v26_v22, 1  ;;  %v1388_v48 = vrot.slane %v27_v23, 1 }
   0xc   :  { %v1507_v46 = vsel %vm1446_vm3, %v1384_v38, %v1385_v42  ;;  %v1389_v50 = vrot.slane %v28_v25, 1  ;;  %v1390_v51 = vrot.slane %v29_v26, 1  ;;  %v287_v58 = vrot.slane %v5850_v55, 7  ;;  %5416 = vmatpush3.bf16.msra.mxu0 %v5666_v12 }
   0xd   :  { %9233 = vst [vmem:[#allocation4_spill] sm:$0xff] %v5834_v44  ;;  %v1506_v45 = vsel %vm1446_vm3, %v1385_v42, %v1386_v43  ;;  %v157_v49 = vand.u32 63, %v5834_v44  ;;  %v1504_v52 = vsel %vm1446_vm3, %v1387_v47, %v1388_v48  ;;  %v1505_v53 = vsel %vm1446_vm3, %v1386_v43, %v1387_v47  ;;  %5417 = vmatprep.subr.bf16.mxu0 %v5668_v20 }
   0xe   :  { %866 = vperm.xlu1 %5663, %v5753_v4   ;;  %474 = vperm.xlu0 %5662, %v407_v21   ;;  %v1502_v54 = vsel %vm1446_vm3, %v1389_v50, %v1390_v51  ;;  %v1503_v57 = vsel %vm1446_vm3, %v1388_v48, %v1389_v50  ;;  %v1391_v59 = vrot.slane %v5850_v55, 1  ;;  %v397_v62 = vsel %vm342_vm0, %v286_v31, %v287_v58  ;;  %v5669_v21 = vld [vmem:[%s9197_s3 + $0x28] sm:$0xff]  }
   0xf   :  { %vm1325_vm4 = vcmp.eq.s32.totalorder %v157_v49, 63  ;;  %v288_v0 = vrot.slane %v5859_v60, 7  ;;  %v289_v1 = vrot.slane %v5864_v61, 7  ;;  %v5916_v19 = vadd.s32 128, %v5755_v5 }
  0x10   :  { %v1518_v56 = vsel %vm1325_vm4, 0.0, %v1502_v54  ;;  %v1501_v63 = vsel %vm1446_vm3, %v1390_v51, %v1391_v59  ;;  %5418 = vmatpush3.bf16.msra.mxu0 %v5668_v20  ;;  %v1393_v37 = vrot.slane %v5864_v61, 1  ;;  %v1397_v47 = vrot.slane %v5913_v18, 1 }
  0x11   :  { %v396_v6 = vsel %vm342_vm0, %v287_v58, %v288_v0  ;;  %v166_v27 = vand.u32 63, %v5916_v19  ;;  %5419 = vmatprep.subr.bf16.mxu0 %v5670_v29  ;;  %v40_v58 = vld [vmem:[%s9196_s0 + $0x98] sm:$0xff] }
  0x12   :  { %876 = vperm.xlu1 %5663, %v5748_v3   ;;  %871 = vperm.xlu0 %5662, %v5743_v2   ;;  %v5877_v2 = vld [vmem:[%s9196_s0 + $0x60] sm:$0xff]  ;;  %v395_v3 = vsel %vm342_vm0, %v288_v0, %v289_v1 }
  0x13   :  { %v290_v7 = vrot.slane %v5877_v2, 7  ;;  %vm230_vm5 = vcmp.eq.s32.totalorder %v166_v27, 0  ;;  %v1394_v38 = vrot.slane %v5877_v2, 1 }
  0x14   :  { %5420 = vmatpush3.bf16.msra.mxu0 %v5670_v29 }
  0x15   :  { %v394_v11 = vsel %vm342_vm0, %v289_v1, %v290_v7 }
  0x16   :  { %886 = vperm.xlu1 %5663, %v5768_v10   ;;  %881 = vperm.xlu0 %5662, %v5763_v9   ;;  %v5665_v9 = vld [vmem:[%s9197_s3 + $0x38] sm:$0xff]   ;;  %v5893_v10 = vld [vmem:[%s9196_s0 + $0x68] sm:$0xff] }
  0x17   :  { %5453 = vmatprep.subr.bf16.mxu1 %v5665_v9  ;;  %v291_v16 = vrot.slane %v5893_v10, 7  ;;  %v1395_v43 = vrot.slane %v5893_v10, 1 }
  0x18   :  { %5454 = vmatpush3.bf16.msra.mxu1 %v5665_v9  ;;  %v44_v9 = vld [vmem:[%s9196_s0 + $0xb8] sm:$0xff] }
  0x19   :  { %5455 = vmatprep.subr.bf16.mxu1 %v5667_v14  ;;  %v1497_v50 = vsel %vm1446_vm3, %v1394_v38, %v1395_v43 }
  0x1a   :  { %504 = vperm.xlu1 %5663, %v400_v32   ;;  %499 = vperm.xlu0 %5662, %v401_v33  }
  0x1c   :  { %5456 = vmatpush3.bf16.msra.mxu1 %v5667_v14  ;;  %v300_v14 = vrot.slane %v43_v8, 7 }
  0x1d   :  { %5457 = vmatprep.subr.bf16.mxu1 %v5669_v21 }
  0x1e   :  { %514 = vperm.xlu1 %5663, %v415_v35   ;;  %509 = vperm.xlu0 %5662, %v399_v36   ;;  %v1392_v35 = vrot.slane %v5859_v60, 1 }
  0x20   :  { %5458 = vmatpush3.bf16.msra.mxu1 %v5669_v21  ;;  %v1500_v36 = vsel %vm1446_vm3, %v1391_v59, %v1392_v35  ;;  %v1499_v42 = vsel %vm1446_vm3, %v1392_v35, %v1393_v37 }
  0x21   :  { %5459 = vmatprep.subr.bf16.mxu1 %v5671_v30 }
  0x22   :  { %896 = vperm.xlu1 %5663, %v27_v23   ;;  %891 = vperm.xlu0 %5662, %v26_v22   ;;  %v5927_v22 = vld [vmem:[%s9196_s0 + $0x80] sm:$0xff]  ;;  %v393_v23 = vsel %vm342_vm0, %v290_v7, %v291_v16 }
  0x23   :  { %v294_v28 = vrot.slane %v5927_v22, 7  ;;  %v1398_v48 = vrot.slane %v5927_v22, 1 }
  0x24   :  { %5460 = vmatpush3.bf16.msra.mxu1 %v5671_v30 }
  0x25   :  { %v1494_v51 = vsel %vm1446_vm3, %v1397_v47, %v1398_v48 }
  0x26   :  { %906 = vperm.xlu1 %5663, %v29_v26   ;;  %901 = vperm.xlu0 %5662, %v28_v25   ;;  %v292_v25 = vrot.slane %v5908_v17, 7  ;;  %v293_v26 = vrot.slane %v5913_v18, 7 }
  0x28   :  { %v391_v31 = vsel %vm342_vm0, %v292_v25, %v293_v26  ;;  %v392_v32 = vsel %vm342_vm0, %v291_v16, %v292_v25  ;;  %v390_v33 = vsel %vm342_vm0, %v293_v26, %v294_v28  ;;  %v301_v16 = vrot.slane %v44_v9, 7 }
  0x29   :  { %v423_v34 = vsel %vm230_vm5, 0.0, %v390_v33  ;;  %v6046_v33 = vadd.s32 184, %v5755_v5 }
  0x2a   :  { %1584 = vperm.xlu1 %5663, %v1508_v40   ;;  %1579 = vperm.xlu0 %5662, %v1509_v41   ;;  %v5961_v40 = vadd.s32 120, %v5755_v5  ;;  %v1498_v41 = vsel %vm1446_vm3, %v1393_v37, %v1394_v38  ;;  %v383_v20 = vsel %vm342_vm0, %v300_v14, %v301_v16 }
  0x2c   :  { %9234 = vst [vmem:[#allocation5_spill] sm:$0xff] %v5961_v40 }
  0x2e   :  { %1594 = vperm.xlu1 %5663, %v1506_v45   ;;  %1589 = vperm.xlu0 %5662, %v1507_v46   ;;  %v1396_v45 = vrot.slane %v5908_v17, 1  ;;  %v165_v46 = vand.u32 63, %v5961_v40 }
  0x30   :  { %v1496_v49 = vsel %vm1446_vm3, %v1395_v43, %v1396_v45  ;;  %vm1333_vm6 = vcmp.eq.s32.totalorder %v165_v46, 63  ;;  %v1495_v54 = vsel %vm1446_vm3, %v1396_v45, %v1397_v47  ;;  %v1405_v43 = vrot.slane %v44_v9, 1 }
  0x32   :  { %1604 = vperm.xlu1 %5663, %v1504_v52   ;;  %1599 = vperm.xlu0 %5662, %v1505_v53   ;;  %v38_v52 = vld [vmem:[%s9196_s0 + $0x88] sm:$0xff]  ;;  %v1526_v53 = vsel %vm1333_vm6, 0.0, %v1494_v51 }
  0x33   :  { %v6066_v51 = vld [vmem:[%s9196_s0 + $0xc8] sm:$0xff] }
  0x36   :  { %1614 = vperm.xlu1 %5663, %v1518_v56   ;;  %1609 = vperm.xlu0 %5662, %v1503_v57   ;;  %v1399_v56 = vrot.slane %v38_v52, 1  ;;  %v39_v57 = vld [vmem:[%s9196_s0 + $0x90] sm:$0xff] }
  0x37   :  { %v1400_v27 = vrot.slane %v39_v57, 1 }
  0x39   :  { %v1492_v30 = vsel %vm1446_vm3, %v1399_v56, %v1400_v27 }
  0x3a   :  { %519 = vperm.xlu1 %5663, %v397_v62   ;;  %1619 = vperm.xlu0 %5662, %v1501_v63   ;;  %v297_v62 = vrot.slane %v40_v58, 7  ;;  %v5997_v63 = vld [vmem:[%s9196_s0 + $0xa0] sm:$0xff] }
  0x3e   :  { %529 = vperm.xlu1 %5663, %v395_v3   ;;  %524 = vperm.xlu0 %5662, %v396_v6   ;;  %v42_v6 = vld [vmem:[%s9196_s0 + $0xa8] sm:$0xff] }
  0x3f   :  { %v299_v7 = vrot.slane %v42_v6, 7  ;;  %v1403_v38 = vrot.slane %v42_v6, 1 }
  0x41   :  { %v384_v21 = vsel %vm342_vm0, %v299_v7, %v300_v14 }
  0x42   :  { %911 = vperm.xlu1 %5663, %v5850_v55   ;;  %534 = vperm.xlu0 %5662, %v394_v11   ;;  %v295_v55 = vrot.slane %v38_v52, 7  ;;  %v6021_v11 = vld [vmem:[%s9196_s0 + $0xc0] sm:$0xff] }
  0x43   :  { %v1406_v45 = vrot.slane %v6021_v11, 1 }
  0x44   :  { %v389_v59 = vsel %vm342_vm0, %v294_v28, %v295_v55 }
  0x46   :  { %921 = vperm.xlu1 %5663, %v5864_v61   ;;  %916 = vperm.xlu0 %5662, %v5859_v60   ;;  %v1493_v60 = vsel %vm1446_vm3, %v1398_v48, %v1399_v56  ;;  %v296_v61 = vrot.slane %v39_v57, 7  ;;  %v303_v56 = vrot.slane %v6066_v51, 7 }
  0x48   :  { %v387_v0 = vsel %vm342_vm0, %v296_v61, %v297_v62  ;;  %v388_v1 = vsel %vm342_vm0, %v295_v55, %v296_v61 }
  0x4a   :  { %539 = vperm.xlu1 %5663, %v393_v23   ;;  %926 = vperm.xlu0 %5662, %v5877_v2   ;;  %v298_v2 = vrot.slane %v5997_v63, 7 }
  0x4c   :  { %v386_v3 = vsel %vm342_vm0, %v297_v62, %v298_v2  ;;  %v385_v12 = vsel %vm342_vm0, %v298_v2, %v299_v7  ;;  %v6099_v2 = vld [vmem:[%s9196_s0 + $0xe0] sm:$0xff] }
  0x4e   :  { %549 = vperm.xlu1 %5663, %v391_v31   ;;  %544 = vperm.xlu0 %5662, %v392_v32   ;;  %v1401_v31 = vrot.slane %v40_v58, 1  ;;  %v1402_v32 = vrot.slane %v5997_v63, 1 }
  0x50   :  { %v1491_v37 = vsel %vm1446_vm3, %v1400_v27, %v1401_v31  ;;  %v6142_v27 = vld [vmem:[%s9196_s0 + $0xf8] sm:$0xff] }
  0x52   :  { %931 = vperm.xlu1 %5663, %v5893_v10   ;;  %554 = vperm.xlu0 %5662, %v423_v34   ;;  %v6016_v10 = vadd.s32 192, %v5755_v5 }
  0x54   :  { %9235 = vst [vmem:[#allocation6_spill] sm:$0xff] %v6016_v10 }
  0x56   :  { %941 = vperm.xlu1 %5663, %v5913_v18   ;;  %936 = vperm.xlu0 %5662, %v5908_v17   ;;  %v174_v17 = vand.u32 63, %v6016_v10  ;;  %v302_v18 = vrot.slane %v6021_v11, 7 }
  0x58   :  { %vm238_vm7 = vcmp.eq.s32.totalorder %v174_v17, 0  ;;  %v381_v62 = vsel %vm342_vm0, %v302_v18, %v303_v56  ;;  %v6119_v17 = vld [vmem:[%s9198_s1 + $0x1] ss:$0 sm:$0xff] }
  0x5a   :  { %1624 = vperm.xlu1 %5663, %v1500_v36   ;;  %946 = vperm.xlu0 %5662, %v5927_v22   ;;  %v382_v22 = vsel %vm342_vm0, %v301_v16, %v302_v18  ;;  %v1490_v36 = vsel %vm1446_vm3, %v1401_v31, %v1402_v32  ;;  %v6114_v16 = vld [vmem:[%s9196_s0 + $0xe8] sm:$0xff]  ;;  %v6124_v18 = vld [vmem:[%s9196_s0 + $0x100] sm:$0xff] }
  0x5b   :  { %v431_v23 = vsel %vm238_vm7, 0.0, %v382_v22  ;;  %v307_v22 = vrot.slane %v6114_v16, 7 }
  0x5e   :  { %1634 = vperm.xlu1 %5663, %v1498_v41   ;;  %1629 = vperm.xlu0 %5662, %v1499_v42   ;;  %v1404_v41 = vrot.slane %v43_v8, 1  ;;  %v173_v42 = vand.u32 63, %v6046_v33 }
  0x60   :  { %v1488_v48 = vsel %vm1446_vm3, %v1403_v38, %v1404_v41  ;;  %vm1341_vm8 = vcmp.eq.s32.totalorder %v173_v42, 63  ;;  %v1487_v55 = vsel %vm1446_vm3, %v1404_v41, %v1405_v43  ;;  %v6154_v42 = vld [vmem:[%s9198_s1 + $0x2] ss:$0 sm:$0xff] }
  0x62   :  { %1644 = vperm.xlu1 %5663, %v1496_v49   ;;  %1639 = vperm.xlu0 %5662, %v1497_v50   ;;  %v1489_v49 = vsel %vm1446_vm3, %v1402_v32, %v1403_v38  ;;  %v1486_v50 = vsel %vm1446_vm3, %v1405_v43, %v1406_v45  ;;  %v310_v38 = vrot.slane %v6124_v18, 7 }
  0x66   :  { %1654 = vperm.xlu1 %5663, %v1526_v53   ;;  %1649 = vperm.xlu0 %5662, %v1495_v54   ;;  %v1534_v54 = vsel %vm1341_vm8, 0.0, %v1486_v50 }
  0x6a   :  { %559 = vperm.xlu1 %5663, %v389_v59   ;;  %1659 = vperm.xlu0 %5662, %v1493_v60   ;;  %v6082_v59 = vld [vmem:[%s9196_s0 + $0xd8] sm:$0xff] }
  0x6e   :  { %569 = vperm.xlu1 %5663, %v387_v0   ;;  %564 = vperm.xlu0 %5662, %v388_v1   ;;  %v305_v1 = vrot.slane %v6082_v59, 7 }
  0x72   :  { %951 = vperm.xlu1 %5663, %v38_v52   ;;  %574 = vperm.xlu0 %5662, %v386_v3  }
  0x76   :  { %961 = vperm.xlu1 %5663, %v40_v58   ;;  %956 = vperm.xlu0 %5662, %v39_v57   ;;  %v1407_v57 = vrot.slane %v6066_v51, 1  ;;  %v6077_v58 = vld [vmem:[%s9196_s0 + $0xd0] sm:$0xff] }
  0x77   :  { %v304_v0 = vrot.slane %v6077_v58, 7 }
  0x79   :  { %v379_v7 = vsel %vm342_vm0, %v304_v0, %v305_v1 }
  0x7a   :  { %579 = vperm.xlu1 %5663, %v385_v12   ;;  %966 = vperm.xlu0 %5662, %v5997_v63   ;;  %v1485_v63 = vsel %vm1446_vm3, %v1406_v45, %v1407_v57 }
  0x7e   :  { %589 = vperm.xlu1 %5663, %v383_v20   ;;  %584 = vperm.xlu0 %5662, %v384_v21   ;;  %v6131_v21 = vld [vmem:[%s9198_s1] ss:$0 sm:$0xff] }
  0x81   :  { %v6034_v25 = vpop.permute.xlu1 %484  ;;  %v6036_v26 = vpop.permute.xlu0 %479 }
  0x82   :  { %971 = vperm.xlu1 %5663, %v42_v6   ;;  %594 = vperm.xlu0 %5662, %v431_v23   ;;  %v6137_v23 = vld [vmem:[%s9196_s0 + $0xf0] sm:$0xff] }
  0x83   :  { %v308_v43 = vrot.slane %v6137_v23, 7 }
  0x85   :  { %v6038_v28 = vpop.permute.xlu1 %489  ;;  %v6040_v29 = vpop.permute.xlu0 %494 }
  0x86   :  { %981 = vperm.xlu1 %5663, %v44_v9   ;;  %976 = vperm.xlu0 %5662, %v43_v8   ;;  %v380_v8 = vsel %vm342_vm0, %v303_v56, %v304_v0  ;;  %v306_v9 = vrot.slane %v6099_v2, 7 }
  0x88   :  { %v378_v20 = vsel %vm342_vm0, %v305_v1, %v306_v9  ;;  %v377_v45 = vsel %vm342_vm0, %v306_v9, %v307_v22  ;;  %v6188_v1 = vld [vmem:[%s9199_s2] ss:$0 sm:$0xff] }
  0x89   :  { %v867_v34 = vpop.permute.xlu1 %866  ;;  %v475_v35 = vpop.permute.xlu0 %474 }
  0x8a   :  { %1664 = vperm.xlu1 %5663, %v1492_v30   ;;  %986 = vperm.xlu0 %5662, %v6021_v11   ;;  %v118_v11 = vadd.s32 256, %v5755_v5  ;;  %v1190_v31 = vmul.f32 %v6119_v17, %v867_v34  ;;  %v798_v32 = vmul.f32 %v6131_v21, %v475_v35  ;;  %v309_v34 = vrot.slane %v6142_v27, 7 }
  0x8b   :  { %v799_v35 = vmul.f32 %v6131_v21, %v6036_v26 }
  0x8c   :  { %v182_v30 = vand.u32 63, %v118_v11  ;;  %v6173_v26 = vsel %vm342_vm0, %v309_v34, %v310_v38 }
  0x8d   :  { %v6055_v46 = vpop.permute.xlu1 %876  ;;  %v872_v47 = vpop.permute.xlu0 %871 }
  0x8e   :  { %1674 = vperm.xlu1 %5663, %v1490_v36   ;;  %1669 = vperm.xlu0 %5662, %v1491_v37   ;;  %v1191_v41 = vmul.f32 %v6119_v17, %v872_v47  ;;  %vm6162_vm9 = vcmp.eq.s32.totalorder %v182_v30, 0 }
  0x90   :  { %v1255_v56 = vadd.f32 %v1191_v41, %v799_v35 }
  0x91   :  { %v6068_v52 = vpop.permute.xlu1 %886  ;;  %v882_v53 = vpop.permute.xlu0 %881 }
  0x92   :  { %1684 = vperm.xlu1 %5663, %v1488_v48   ;;  %1679 = vperm.xlu0 %5662, %v1489_v49   ;;  %v1254_v48 = vadd.f32 %v1190_v31, %v798_v32  ;;  %v1192_v49 = vmul.f32 %v6119_v17, %v6055_v46  ;;  %v1193_v50 = vmul.f32 %v6119_v17, %v882_v53  ;;  %v1408_v32 = vrot.slane %v6077_v58, 1 }
  0x93   :  { %v800_v46 = vmul.f32 %v6131_v21, %v6034_v25  ;;  %v801_v53 = vmul.f32 %v6131_v21, %v6038_v28  ;;  %v1194_v0 = vmul.f32 %v6119_v17, %v6068_v52  ;;  %v376_v25 = vsel %vm342_vm0, %v307_v22, %v308_v43 }
  0x94   :  { %v439_v28 = vsel %vm6162_vm9, 0.0, %v6173_v26  ;;  %v802_v52 = vmul.f32 %v6131_v21, %v6040_v29 }
  0x95   :  { %v6084_v60 = vpop.permute.xlu1 %504  ;;  %v6086_v61 = vpop.permute.xlu0 %499  ;;  %v1256_v11 = vadd.f32 %v1192_v49, %v800_v46 }
  0x96   :  { %1694 = vperm.xlu1 %5663, %v1534_v54   ;;  %1689 = vperm.xlu0 %5662, %v1487_v55   ;;  %v804_v26 = vmul.f32 %v6131_v21, %v6084_v60 }
  0x99   :  { %v6101_v3 = vpop.permute.xlu1 %514  ;;  %v6103_v6 = vpop.permute.xlu0 %509 }
  0x9a   :  { %599 = vperm.xlu1 %5663, %v381_v62   ;;  %1699 = vperm.xlu0 %5662, %v1485_v63  }
  0x9d   :  { %v897_v12 = vpop.permute.xlu1 %896  ;;  %v892_v14 = vpop.permute.xlu0 %891 }
  0x9e   :  { %609 = vperm.xlu1 %5663, %v379_v7   ;;  %604 = vperm.xlu0 %5662, %v380_v8   ;;  %v375_v7 = vsel %vm342_vm0, %v308_v43, %v309_v34  ;;  %v1258_v43 = vadd.f32 %v1194_v0, %v802_v52  ;;  %v1196_v47 = vmul.f32 %v6119_v17, %v897_v12 }
  0x9f   :  { %v1195_v29 = vmul.f32 %v6119_v17, %v892_v14 }
  0xa1   :  { %v6146_v36 = vpop.permute.xlu1 %906  ;;  %v902_v37 = vpop.permute.xlu0 %901 }
  0xa2   :  { %991 = vperm.xlu1 %5663, %v6066_v51   ;;  %614 = vperm.xlu0 %5662, %v378_v20   ;;  %v1257_v20 = vadd.f32 %v1193_v50, %v801_v53  ;;  %v1197_v12 = vmul.f32 %v6119_v17, %v902_v37 }
  0xa5   :  { %v1585_v54 = vpop.permute.xlu1 %1584  ;;  %v1580_v55 = vpop.permute.xlu0 %1579 }
  0xa6   :  { %v1904_v62 = vmul.f32 %v6154_v42, %v1585_v54  ;;  %v1903_v63 = vmul.f32 %v6154_v42, %v1580_v55  ;;  %1001 = vperm.xlu1 %5663, %v6082_v59   ;;  %996 = vperm.xlu0 %5662, %v6077_v58  }
  0xa8   :  { %v1968_v8 = vadd.f32 %v1904_v62, %v1255_v56  ;;  %v1967_v9 = vadd.f32 %v1903_v63, %v1254_v48  ;;  %v1409_v48 = vrot.slane %v6082_v59, 1  ;;  %v803_v56 = vmul.f32 %v6131_v21, %v6086_v61 }
  0xa9   :  { %v1595_v30 = vpop.permute.xlu1 %1594  ;;  %v1590_v31 = vpop.permute.xlu0 %1589 }
  0xaa   :  { %v2039_v41 = vadd.f32 %v6188_v1, %v1968_v8  ;;  %v2038_v34 = vadd.f32 %v6188_v1, %v1967_v9  ;;  %v1906_v35 = vmul.f32 %v6154_v42, %v1595_v30  ;;  %v1905_v22 = vmul.f32 %v6154_v42, %v1590_v31  ;;  %619 = vperm.xlu1 %5663, %v377_v45  }
  0xab   :  { %1006 = vperm.xlu0 %5662, %v6099_v2   ;;  %v805_v45 = vmul.f32 %v6131_v21, %v6103_v6  ;;  %v1260_v8 = vadd.f32 %v1196_v47, %v804_v26  ;;  %v1259_v60 = vadd.f32 %v1195_v29, %v803_v56  ;;  %v1198_v6 = vmul.f32 %v6119_v17, %v6146_v36 }
  0xac   :  { %v2103_v49 = vmax.f32 %v2039_v41, 0.0  ;;  %v2102_v50 = vmax.f32 %v2038_v34, 0.0  ;;  %v1970_v54 = vadd.f32 %v1906_v35, %v1257_v20  ;;  %v1969_v55 = vadd.f32 %v1905_v22, %v1256_v11 }
  0xad   :  { %v1605_v14 = vpop.permute.xlu1 %1604  ;;  %v1600_v62 = vpop.permute.xlu0 %1599  ;;  %v1261_v20 = vadd.f32 %v1197_v12, %v805_v45  ;;  %v806_v36 = vmul.f32 %v6131_v21, %v6101_v3 }
  0xae   :  { %v2167_v63 = vrot.slane %v2103_v49, 1  ;;  %v6215_v46 = vrot.slane %v2102_v50, 1  ;;  %v2041_v53 = vadd.f32 %v6188_v1, %v1970_v54  ;;  %v2040_v0 = vadd.f32 %v6188_v1, %v1969_v55  ;;  %629 = vperm.xlu1 %5663, %v375_v7  }
  0xaf   :  { %v1908_v9 = vmul.f32 %v6154_v42, %v1605_v14  ;;  %v1907_v61 = vmul.f32 %v6154_v42, %v1600_v62  ;;  %624 = vperm.xlu0 %5662, %v376_v25  }
  0xb0   :  { %v2292_v37 = vsel %vm1446_vm3, %v6215_v46, %v2167_v63  ;;  %v2105_v52 = vmax.f32 %v2041_v53, 0.0  ;;  %v2104_v11 = vmax.f32 %v2040_v0, 0.0  ;;  %v1262_v0 = vadd.f32 %v1198_v6, %v806_v36 }
  0xb1   :  { %v2294_v30 = vmax.f32 %v2102_v50, %v2292_v37  ;;  %v1972_v31 = vadd.f32 %v1908_v9, %v1259_v60  ;;  %v1971_v7 = vadd.f32 %v1907_v61, %v1258_v43  ;;  %v1615_v41 = vpop.permute.xlu1 %1614  ;;  %v1610_v34 = vpop.permute.xlu0 %1609  ;;  %v1410_v43 = vrot.slane %v6099_v2, 1 }
  0xb2   :  { %v2169_v35 = vrot.slane %v2105_v52, 1  ;;  %v2168_v22 = vrot.slane %v2104_v11, 1  ;;  %v1910_v47 = vmul.f32 %v6154_v42, %v1615_v41  ;;  %v1909_v25 = vmul.f32 %v6154_v42, %v1610_v34  ;;  %1011 = vperm.xlu1 %5663, %v6114_v16  }
  0xb3   :  { %2359 = vst.msk [vmem:[#allocation2] sm:$0xff] %vm2358_vm10, %v2294_v30  ;;  %v2043_v29 = vadd.f32 %v6188_v1, %v1972_v31  ;;  %v2042_v50 = vadd.f32 %v6188_v1, %v1971_v7  ;;  %634 = vperm.xlu0 %5662, %v439_v28   ;;  %v6255_v9 = vadd.s32 248, %v5755_v5  ;;  %v1482_v51 = vsel %vm1446_vm3, %v1409_v48, %v1410_v43 }
  0xb4   :  { %v2290_v54 = vsel %vm1446_vm3, %v2168_v22, %v2169_v35  ;;  %v2291_v55 = vsel %vm1446_vm3, %v2167_v63, %v2168_v22  ;;  %v1974_v26 = vadd.f32 %v1910_v47, %v1261_v20  ;;  %v1973_v56 = vadd.f32 %v1909_v25, %v1260_v8 }
  0xb5   :  { %v2295_v45 = vmax.f32 %v2103_v49, %v2291_v55  ;;  %v2296_v12 = vmax.f32 %v2104_v11, %v2290_v54  ;;  %v2107_v3 = vmax.f32 %v2043_v29, 0.0  ;;  %v2106_v14 = vmax.f32 %v2042_v50, 0.0  ;;  %v6239_v62 = vpop.permute.xlu1 %519  ;;  %v1620_v53 = vpop.permute.xlu0 %1619 }
  0xb6   :  { %v2045_v28 = vadd.f32 %v6188_v1, %v1974_v26  ;;  %v2044_v2 = vadd.f32 %v6188_v1, %v1973_v56  ;;  %v1911_v60 = vmul.f32 %v6154_v42, %v1620_v53  ;;  %1021 = vperm.xlu1 %5663, %v6142_v27   ;;  %v1484_v8 = vsel %vm1446_vm3, %v1407_v57, %v1408_v32 }
  0xb7   :  { %2360 = vst.msk [vmem:[#allocation2 + $0x8] sm:$0xff] %vm2358_vm10, %v2295_v45  ;;  %2361 = vst.msk [vmem:[#allocation2 + $0x10] sm:$0xff] %vm2358_vm10, %v2296_v12  ;;  %v2171_v49 = vrot.slane %v2107_v3, 1  ;;  %v2170_v63 = vrot.slane %v2106_v14, 1  ;;  %1016 = vperm.xlu0 %5662, %v6137_v23   ;;  %v1483_v57 = vsel %vm1446_vm3, %v1408_v32, %v1409_v48  ;;  %v1411_v47 = vrot.slane %v6114_v16, 1 }
  0xb8   :  { %v2109_v61 = vmax.f32 %v2045_v28, 0.0  ;;  %v2108_v6 = vmax.f32 %v2044_v2, 0.0  ;;  %v1975_v37 = vadd.f32 %v1911_v60, %v1262_v0  ;;  %v1412_v25 = vrot.slane %v6137_v23, 1 }
  0xb9   :  { %v2288_v11 = vsel %vm1446_vm3, %v2170_v63, %v2171_v49  ;;  %v2289_v20 = vsel %vm1446_vm3, %v2169_v35, %v2170_v63  ;;  %v6261_v30 = vpop.permute.xlu1 %529  ;;  %v6263_v31 = vpop.permute.xlu0 %524  ;;  %v181_v59 = vand.u32 63, %v6255_v9  ;;  %v1413_v48 = vrot.slane %v6142_v27, 1 }
  0xba   :  { %v2297_v7 = vmax.f32 %v2105_v52, %v2289_v20  ;;  %v2298_v41 = vmax.f32 %v2106_v14, %v2288_v11  ;;  %v2173_v34 = vrot.slane %v2109_v61, 1  ;;  %v2172_v35 = vrot.slane %v2108_v6, 1  ;;  %1704 = vperm.xlu1 %5663, %v1484_v8   ;;  %v6317_v14 = vld [vmem:[%s9196_s0 + $0x108] sm:$0xff] }
  0xbb   :  { %v6276_v22 = vadd.f32 %v6188_v1, %v1975_v37  ;;  %1026 = vperm.xlu0 %5662, %v6124_v18   ;;  %v1414_v52 = vrot.slane %v6124_v18, 1  ;;  %v1480_v27 = vsel %vm1446_vm3, %v1411_v47, %v1412_v25  ;;  %v1481_v55 = vsel %vm1446_vm3, %v1410_v43, %v1411_v47  ;;  %v6338_v37 = vld [vmem:[%s9196_s0 + $0x118] sm:$0xff]  ;;  %v6361_v18 = vld [vmem:[%s9196_s0 + $0x120] sm:$0xff] }
  0xbc   :  { %2362 = vst.msk [vmem:[#allocation2 + $0x18] sm:$0xff] %vm2358_vm10, %v2297_v7  ;;  %2363 = vst.msk [vmem:[#allocation2 + $0x20] sm:$0xff] %vm2358_vm10, %v2298_v41  ;;  %v2286_v58 = vsel %vm1446_vm3, %v2172_v35, %v2173_v34  ;;  %v2287_v32 = vsel %vm1446_vm3, %v2171_v49, %v2172_v35  ;;  %vm6303_vm11 = vcmp.eq.s32.totalorder %v181_v59, 63  ;;  %v1479_v60 = vsel %vm1446_vm3, %v1412_v25, %v1413_v48 }
  0xbd   :  { %v2299_v36 = vmax.f32 %v2107_v3, %v2287_v32  ;;  %v2300_v16 = vmax.f32 %v2108_v6, %v2286_v58  ;;  %v2110_v23 = vmax.f32 %v6276_v22, 0.0  ;;  %v912_v29 = vpop.permute.xlu1 %911  ;;  %v6291_v50 = vpop.permute.xlu0 %534  ;;  %v1478_v56 = vsel %vm1446_vm3, %v1413_v48, %v1414_v52  ;;  %v6333_v6 = vld [vmem:[%s9196_s0 + $0x110] sm:$0xff] }
  0xbe   :  { %1714 = vperm.xlu1 %5663, %v1482_v51   ;;  %v2423_v53 = vld [vmem:[#allocation2] ss:$2 sm:$0xff]  ;;  %v1542_v28 = vsel %vm6303_vm11, 0.0, %v1478_v56  ;;  %v311_v49 = vrot.slane %v6317_v14, 7  ;;  %v1415_v63 = vrot.slane %v6317_v14, 1  ;;  %v312_v51 = vrot.slane %v6333_v6, 7 }
  0xbf   :  { %2364 = vst.msk [vmem:[#allocation2 + $0x28] sm:$0xff] %vm2358_vm10, %v2299_v36  ;;  %2365 = vst.msk [vmem:[#allocation2 + $0x30] sm:$0xff] %vm2358_vm10, %v2300_v16  ;;  %v6297_v54 = vrot.slane %v2110_v23, 1  ;;  %1709 = vperm.xlu0 %5662, %v1483_v57   ;;  %v313_v57 = vrot.slane %v6338_v37, 7  ;;  %v314_v59 = vrot.slane %v6361_v18, 7  ;;  %v126_v48 = vadd.s32 320, %v5755_v5 }
  0xc0   :  { %v373_v11 = vsel %vm342_vm0, %v310_v38, %v311_v49  ;;  %v1477_v20 = vsel %vm1446_vm3, %v1414_v52, %v1415_v63  ;;  %v372_v25 = vsel %vm342_vm0, %v311_v49, %v312_v51  ;;  %v6382_v36 = vld [vmem:[%s9196_s0 + $0x128] sm:$0xff]  ;;  %v1199_v26 = vmul.f32 %v6119_v17, %v912_v29  ;;  %v6393_v56 = vld [vmem:[%s9196_s0 + $0x130] sm:$0xff] }
  0xc1   :  { %v2285_v45 = vsel %vm1446_vm3, %v2173_v34, %v6297_v54  ;;  %v922_v12 = vpop.permute.xlu1 %921  ;;  %v6312_v3 = vpop.permute.xlu0 %916  ;;  %v371_v47 = vsel %vm342_vm0, %v312_v51, %v313_v57  ;;  %v370_v52 = vsel %vm342_vm0, %v313_v57, %v314_v59  ;;  %v1418_v22 = vrot.slane %v6361_v18, 1 }
  0xc2   :  { %v2301_v43 = vmax.f32 %v2109_v61, %v2285_v45  ;;  %1724 = vperm.xlu1 %5663, %v1480_v27   ;;  %v6398_v45 = vld [vmem:[%s9196_s0 + $0x138] sm:$0xff]  ;;  %v1200_v57 = vmul.f32 %v6119_v17, %v6312_v3 }
  0xc3   :  { %1719 = vperm.xlu0 %5662, %v1481_v55   ;;  %v2425_v0 = vld [vmem:[#allocation2 + $0x10] ss:$2 sm:$0xff]  ;;  %v6387_v55 = vld [vmem:[%s9196_s0 + $0x140] sm:$0xff] }
  0xc4   :  { %2366 = vst.msk [vmem:[#allocation2 + $0x38] sm:$0xff] %vm2358_vm10, %v2301_v43  ;;  %v6322_v2 = vpack.c.bf16 %v2425_v0, %v2423_v53  ;;  %v315_v43 = vrot.slane %v6382_v36, 7  ;;  %v190_v53 = vand.u32 63, %v126_v48  ;;  %v807_v0 = vmul.f32 %v6131_v21, %v6239_v62 }
  0xc5   :  { %v6328_v8 = vpop.permute.xlu1 %539  ;;  %v927_v61 = vpop.permute.xlu0 %926  ;;  %v318_v29 = vrot.slane %v6387_v55, 7  ;;  %v810_v48 = vmul.f32 %v6131_v21, %v6291_v50 }
  0xc6   :  { %5421 = vmatprep.mubr.msk.bf16.mxu0 %vm2358_vm10, %v6322_v2  ;;  %5461 = vmatprep.mubr.msk.bf16.mxu1 %vm2358_vm10, %v6322_v2  ;;  %v2427_v38 = vld [vmem:[#allocation2 + $0x20] ss:$2 sm:$0xff]  ;;  %v1263_v51 = vadd.f32 %v1199_v26, %v807_v0  ;;  %v369_v62 = vsel %vm342_vm0, %v314_v59, %v315_v43  ;;  %vm6417_vm12 = vcmp.eq.s32.totalorder %v190_v53, 0  ;;  %v1202_v3 = vmul.f32 %v6119_v17, %v927_v61 }
  0xc7   :  { %1734 = vperm.xlu1 %5663, %v1542_v28   ;;  %1729 = vperm.xlu0 %5662, %v1479_v60   ;;  %v1201_v28 = vmul.f32 %v6119_v17, %v922_v12 }
  0xc9   :  { %v6354_v7 = vpop.permute.xlu1 %549  ;;  %v6356_v41 = vpop.permute.xlu0 %544 }
  0xcb   :  { %639 = vperm.xlu1 %5663, %v373_v11   ;;  %1739 = vperm.xlu0 %5662, %v1477_v20   ;;  %v2429_v34 = vld [vmem:[#allocation2 + $0x30] ss:$2 sm:$0xff]  ;;  %v316_v11 = vrot.slane %v6393_v56, 7  ;;  %v317_v20 = vrot.slane %v6398_v45, 7 }
  0xcc   :  { %v6363_v35 = vpack.c.bf16 %v2429_v34, %v2427_v38  ;;  %v809_v34 = vmul.f32 %v6131_v21, %v6261_v30 }
  0xcd   :  { %v932_v58 = vpop.permute.xlu1 %931  ;;  %v6370_v32 = vpop.permute.xlu0 %554  ;;  %v366_v30 = vsel %vm342_vm0, %v317_v20, %v318_v29  ;;  %v367_v0 = vsel %vm342_vm0, %v316_v11, %v317_v20  ;;  %v368_v50 = vsel %vm342_vm0, %v315_v43, %v316_v11  ;;  %v1266_v20 = vadd.f32 %v1202_v3, %v810_v48 }
  0xce   :  { %5422 = vmatmul.mubr.msk.bf16.vlgmr.msra.gmra.mxu0 %vm2358_vm10, %v6363_v35  ;;  %5462 = vmatmul.mubr.msk.bf16.vlgmr.msra.gmra.mxu1 %vm2358_vm10, %v6363_v35  ;;  %v1203_v59 = vmul.f32 %v6119_v17, %v932_v58  ;;  %v447_v58 = vsel %vm6417_vm12, 0.0, %v366_v30  ;;  %v814_v48 = vmul.f32 %v6131_v21, %v6370_v32 }
  0xcf   :  { %649 = vperm.xlu1 %5663, %v371_v47   ;;  %644 = vperm.xlu0 %5662, %v372_v25   ;;  %v808_v47 = vmul.f32 %v6131_v21, %v6263_v31 }
  0xd1   :  { %v942_v16 = vpop.permute.xlu1 %941  ;;  %v937_v27 = vpop.permute.xlu0 %936  ;;  %v1264_v31 = vadd.f32 %v1200_v57, %v808_v47 }
  0xd3   :  { %1031 = vperm.xlu1 %5663, %v6317_v14   ;;  %654 = vperm.xlu0 %5662, %v370_v52   ;;  %v1265_v52 = vadd.f32 %v1201_v28, %v809_v34  ;;  %v1416_v28 = vrot.slane %v6333_v6, 1 }
  0xd5   :  { %v1625_v60 = vpop.permute.xlu1 %1624  ;;  %v947_v49 = vpop.permute.xlu0 %946 }
  0xd6   :  { %v1912_v38 = vmul.f32 %v6154_v42, %v1625_v60  ;;  %v1206_v32 = vmul.f32 %v6119_v17, %v947_v49 }
  0xd7   :  { %1041 = vperm.xlu1 %5663, %v6338_v37   ;;  %1036 = vperm.xlu0 %5662, %v6333_v6  }
  0xd8   :  { %v1976_v25 = vadd.f32 %v1912_v38, %v1263_v51  ;;  %v811_v38 = vmul.f32 %v6131_v21, %v6328_v8  ;;  %v812_v8 = vmul.f32 %v6131_v21, %v6356_v41  ;;  %v1417_v41 = vrot.slane %v6338_v37, 1 }
  0xd9   :  { %v1635_v26 = vpop.permute.xlu1 %1634  ;;  %v1630_v53 = vpop.permute.xlu0 %1629 }
  0xda   :  { %v2047_v61 = vadd.f32 %v6188_v1, %v1976_v25  ;;  %v1914_v60 = vmul.f32 %v6154_v42, %v1635_v26  ;;  %v1913_v51 = vmul.f32 %v6154_v42, %v1630_v53  ;;  %v813_v25 = vmul.f32 %v6131_v21, %v6354_v7 }
  0xdb   :  { %659 = vperm.xlu1 %5663, %v369_v62   ;;  %1046 = vperm.xlu0 %5662, %v6361_v18   ;;  %v1267_v62 = vadd.f32 %v1203_v59, %v811_v38  ;;  %v1205_v26 = vmul.f32 %v6119_v17, %v942_v16  ;;  %v1204_v7 = vmul.f32 %v6119_v17, %v937_v27 }
  0xdc   :  { %v2111_v57 = vmax.f32 %v2047_v61, 0.0  ;;  %v1978_v34 = vadd.f32 %v1914_v60, %v1265_v52  ;;  %v1977_v47 = vadd.f32 %v1913_v51, %v1264_v31 }
  0xdd   :  { %v1645_v53 = vpop.permute.xlu1 %1644  ;;  %v1640_v43 = vpop.permute.xlu0 %1639  ;;  %v1269_v60 = vadd.f32 %v1205_v26, %v813_v25 }
  0xde   :  { %v2175_v11 = vrot.slane %v2111_v57, 1  ;;  %v2049_v12 = vadd.f32 %v6188_v1, %v1978_v34  ;;  %v2048_v30 = vadd.f32 %v6188_v1, %v1977_v47  ;;  %v1916_v3 = vmul.f32 %v6154_v42, %v1645_v53 }
  0xdf   :  { %v1915_v52 = vmul.f32 %v6154_v42, %v1640_v43  ;;  %669 = vperm.xlu1 %5663, %v367_v0   ;;  %664 = vperm.xlu0 %5662, %v368_v50   ;;  %v1268_v53 = vadd.f32 %v1204_v7, %v812_v8  ;;  %v1270_v7 = vadd.f32 %v1206_v32, %v814_v48 }
  0xe0   :  { %v2284_v16 = vsel %vm1446_vm3, %v6297_v54, %v2175_v11  ;;  %v2113_v59 = vmax.f32 %v2049_v12, 0.0  ;;  %v2112_v31 = vmax.f32 %v2048_v30, 0.0  ;;  %v1980_v61 = vadd.f32 %v1916_v3, %v1267_v62 }
  0xe1   :  { %v2302_v51 = vmax.f32 %v2110_v23, %v2284_v16  ;;  %v1979_v27 = vadd.f32 %v1915_v52, %v1266_v20  ;;  %v1655_v38 = vpop.permute.xlu1 %1654  ;;  %v1650_v34 = vpop.permute.xlu0 %1649  ;;  %v1476_v48 = vsel %vm1446_vm3, %v1415_v63, %v1416_v28 }
  0xe2   :  { %v2177_v0 = vrot.slane %v2113_v59, 1  ;;  %v2176_v50 = vrot.slane %v2112_v31, 1  ;;  %v2051_v37 = vadd.f32 %v6188_v1, %v1980_v61  ;;  %v1918_v47 = vmul.f32 %v6154_v42, %v1655_v38 }
  0xe3   :  { %2367 = vst.msk [vmem:[#allocation2 + $0x40] sm:$0xff] %vm2358_vm10, %v2302_v51  ;;  %v2050_v54 = vadd.f32 %v6188_v1, %v1979_v27  ;;  %v1917_v25 = vmul.f32 %v6154_v42, %v1650_v34  ;;  %1051 = vperm.xlu1 %5663, %v6382_v36   ;;  %674 = vperm.xlu0 %5662, %v447_v58   ;;  %v125_v61 = vadd.s32 312, %v5755_v5 }
  0xe4   :  { %v2282_v23 = vsel %vm1446_vm3, %v2176_v50, %v2177_v0  ;;  %v2283_v49 = vsel %vm1446_vm3, %v2175_v11, %v2176_v50  ;;  %v2115_v20 = vmax.f32 %v2051_v37, 0.0  ;;  %v1982_v62 = vadd.f32 %v1918_v47, %v1269_v60 }
  0xe5   :  { %v2303_v8 = vmax.f32 %v2111_v57, %v2283_v49  ;;  %v2304_v26 = vmax.f32 %v2112_v31, %v2282_v23  ;;  %v2114_v43 = vmax.f32 %v2050_v54, 0.0  ;;  %v1981_v12 = vadd.f32 %v1917_v25, %v1268_v53  ;;  %v6474_v30 = vpop.permute.xlu1 %559  ;;  %v1660_v3 = vpop.permute.xlu0 %1659 }
  0xe6   :  { %v2179_v52 = vrot.slane %v2115_v20, 1  ;;  %v2053_v58 = vadd.f32 %v6188_v1, %v1982_v62  ;;  %v1919_v18 = vmul.f32 %v6154_v42, %v1660_v3  ;;  %v1474_v34 = vsel %vm1446_vm3, %v1417_v41, %v1418_v22 }
  0xe7   :  { %2368 = vst.msk [vmem:[#allocation2 + $0x48] sm:$0xff] %vm2358_vm10, %v2303_v8  ;;  %2369 = vst.msk [vmem:[#allocation2 + $0x50] sm:$0xff] %vm2358_vm10, %v2304_v26  ;;  %v2178_v11 = vrot.slane %v2114_v43, 1  ;;  %v2052_v16 = vadd.f32 %v6188_v1, %v1981_v12  ;;  %1061 = vperm.xlu1 %5663, %v6398_v45   ;;  %1056 = vperm.xlu0 %5662, %v6393_v56   ;;  %v1419_v53 = vrot.slane %v6382_v36, 1  ;;  %v1420_v54 = vrot.slane %v6393_v56, 1 }
  0xe8   :  { %v2117_v57 = vmax.f32 %v2053_v58, 0.0  ;;  %v1983_v31 = vadd.f32 %v1919_v18, %v1270_v7  ;;  %v189_v25 = vand.u32 63, %v125_v61  ;;  %v1421_v23 = vrot.slane %v6398_v45, 1  ;;  %v6545_v58 = vld [vmem:[%s9196_s0 + $0x148] sm:$0xff] }
  0xe9   :  { %v2280_v60 = vsel %vm1446_vm3, %v2178_v11, %v2179_v52  ;;  %v2281_v51 = vsel %vm1446_vm3, %v2177_v0, %v2178_v11  ;;  %v2116_v32 = vmax.f32 %v2052_v16, 0.0  ;;  %v6494_v27 = vpop.permute.xlu1 %569  ;;  %v6496_v38 = vpop.permute.xlu0 %564  ;;  %v1475_v0 = vsel %vm1446_vm3, %v1416_v28, %v1417_v41 }
  0xea   :  { %v2305_v14 = vmax.f32 %v2113_v59, %v2281_v51  ;;  %v2306_v50 = vmax.f32 %v2114_v43, %v2280_v60  ;;  %v2181_v37 = vrot.slane %v2117_v57, 1  ;;  %v6501_v63 = vadd.f32 %v6188_v1, %v1983_v31  ;;  %v6561_v51 = vld [vmem:[%s9196_s0 + $0x150] sm:$0xff]  ;;  %v6615_v43 = vld [vmem:[%s9196_s0 + $0x180] sm:$0xff] }
  0xeb   :  { %v2180_v47 = vrot.slane %v2116_v32, 1  ;;  %1744 = vperm.xlu1 %5663, %v1476_v48   ;;  %1066 = vperm.xlu0 %5662, %v6387_v55   ;;  %v1422_v49 = vrot.slane %v6387_v55, 1  ;;  %v1472_v45 = vsel %vm1446_vm3, %v1419_v53, %v1420_v54  ;;  %vm6536_vm13 = vcmp.eq.s32.totalorder %v189_v25, 63  ;;  %v6589_v55 = vld [vmem:[%s9196_s0 + $0x160] sm:$0xff] }
  0xec   :  { %2370 = vst.msk [vmem:[#allocation2 + $0x58] sm:$0xff] %vm2358_vm10, %v2305_v14  ;;  %2371 = vst.msk [vmem:[#allocation2 + $0x60] sm:$0xff] %vm2358_vm10, %v2306_v50  ;;  %v2118_v59 = vmax.f32 %v6501_v63, 0.0  ;;  %v319_v31 = vrot.slane %v6545_v58, 7  ;;  %v1423_v48 = vrot.slane %v6545_v58, 1  ;;  %v320_v50 = vrot.slane %v6561_v51, 7 }
  0xed   :  { %v2278_v6 = vsel %vm1446_vm3, %v2180_v47, %v2181_v37  ;;  %v2279_v28 = vsel %vm1446_vm3, %v2179_v52, %v2180_v47  ;;  %v6519_v36 = vpop.permute.xlu1 %951  ;;  %v6521_v56 = vpop.permute.xlu0 %574  ;;  %v1470_v12 = vsel %vm1446_vm3, %v1421_v23, %v1422_v49 }
  0xee   :  { %v2307_v41 = vmax.f32 %v2115_v20, %v2279_v28  ;;  %v2308_v62 = vmax.f32 %v2116_v32, %v2278_v6  ;;  %v6525_v8 = vrot.slane %v2118_v59, 1  ;;  %v1473_v20 = vsel %vm1446_vm3, %v1418_v22, %v1419_v53  ;;  %v2431_v22 = vld [vmem:[#allocation2 + $0x40] ss:$2 sm:$0xff]  ;;  %v6566_v32 = vld [vmem:[%s9196_s0 + $0x158] sm:$0xff] }
  0xef   :  { %1754 = vperm.xlu1 %5663, %v1474_v34   ;;  %1749 = vperm.xlu0 %5662, %v1475_v0   ;;  %v1550_v11 = vsel %vm6536_vm13, 0.0, %v1470_v12  ;;  %v365_v34 = vsel %vm342_vm0, %v318_v29, %v319_v31  ;;  %v1469_v14 = vsel %vm1446_vm3, %v1422_v49, %v1423_v48  ;;  %v322_v49 = vrot.slane %v6589_v55, 7 }
  0xf0   :  { %2372 = vst.msk [vmem:[#allocation2 + $0x68] sm:$0xff] %vm2358_vm10, %v2307_v41  ;;  %2373 = vst.msk [vmem:[#allocation2 + $0x70] sm:$0xff] %vm2358_vm10, %v2308_v62  ;;  %v2277_v26 = vsel %vm1446_vm3, %v2181_v37, %v6525_v8  ;;  %v321_v37 = vrot.slane %v6566_v32, 7  ;;  %v134_v41 = vadd.s32 384, %v5755_v5  ;;  %v1207_v12 = vmul.f32 %v6119_v17, %v6519_v36 }
  0xf1   :  { %v2309_v3 = vmax.f32 %v2117_v57, %v2277_v26  ;;  %v962_v7 = vpop.permute.xlu1 %961  ;;  %v957_v52 = vpop.permute.xlu0 %956  ;;  %v1471_v57 = vsel %vm1446_vm3, %v1420_v54, %v1421_v23  ;;  %v364_v23 = vsel %vm342_vm0, %v319_v31, %v320_v50  ;;  %v326_v36 = vrot.slane %v6615_v43, 7 }
  0xf2   :  { %v363_v25 = vsel %vm342_vm0, %v320_v50, %v321_v37  ;;  %v362_v62 = vsel %vm342_vm0, %v321_v37, %v322_v49  ;;  %v1209_v31 = vmul.f32 %v6119_v17, %v962_v7 }
  0xf3   :  { %2374 = vst.msk [vmem:[#allocation2 + $0x78] sm:$0xff] %vm2358_vm10, %v2309_v3  ;;  %1764 = vperm.xlu1 %5663, %v1472_v45   ;;  %1759 = vperm.xlu0 %5662, %v1473_v20   ;;  %v2433_v18 = vld [vmem:[#allocation2 + $0x50] ss:$2 sm:$0xff]  ;;  %v6610_v45 = vld [vmem:[%s9196_s0 + $0x168] sm:$0xff] }
  0xf4   :  { %v6550_v16 = vpack.c.bf16 %v2433_v18, %v2431_v22  ;;  %v6622_v3 = vld [vmem:[%s9196_s0 + $0x170] sm:$0xff]  ;;  %v6627_v22 = vld [vmem:[%s9196_s0 + $0x178] sm:$0xff]  ;;  %v323_v18 = vrot.slane %v6610_v45, 7 }
  0xf5   :  { %v6556_v61 = vpop.permute.xlu1 %579  ;;  %v967_v60 = vpop.permute.xlu0 %966  ;;  %v324_v50 = vrot.slane %v6622_v3, 7  ;;  %v325_v37 = vrot.slane %v6627_v22, 7 }
  0xf6   :  { %5425 = vmatprep.mubr.msk.bf16.mxu0 %vm2358_vm10, %v6550_v16  ;;  %5465 = vmatprep.mubr.msk.bf16.mxu1 %vm2358_vm10, %v6550_v16  ;;  %v819_v15 = vmul.f32 %v6131_v21, %v6556_v61 }
  0xf7   :  { %1774 = vperm.xlu1 %5663, %v1550_v11   ;;  %1769 = vperm.xlu0 %5662, %v1471_v57   ;;  %v2435_v53 = vld [vmem:[#allocation2 + $0x60] ss:$2 sm:$0xff]  ;;  %v198_v11 = vand.u32 63, %v134_v41  ;;  %v815_v57 = vmul.f32 %v6131_v21, %v6474_v30  ;;  %v361_v30 = vsel %vm342_vm0, %v322_v49, %v323_v18  ;;  %v816_v41 = vmul.f32 %v6131_v21, %v6496_v38 }
  0xf8   :  { %v359_v39 = vsel %vm342_vm0, %v324_v50, %v325_v37 }
  0xf9   :  { %v6582_v47 = vpop.permute.xlu1 %589  ;;  %v6584_v0 = vpop.permute.xlu0 %584  ;;  %vm6645_vm14 = vcmp.eq.s32.totalorder %v198_v11, 0 }
  0xfa   :  { %v2437_v29 = vld [vmem:[#allocation2 + $0x70] ss:$2 sm:$0xff]  ;;  %v820_v61 = vmul.f32 %v6131_v21, %v6584_v0 }
  0xfb   :  { %679 = vperm.xlu1 %5663, %v365_v34   ;;  %1779 = vperm.xlu0 %5662, %v1469_v14   ;;  %v6591_v54 = vpack.c.bf16 %v2437_v29, %v2435_v53  ;;  %v1271_v53 = vadd.f32 %v1207_v12, %v815_v57  ;;  %v1208_v29 = vmul.f32 %v6119_v17, %v957_v52 }
  0xfc   :  { %v1210_v52 = vmul.f32 %v6119_v17, %v967_v60  ;;  %v818_v12 = vmul.f32 %v6131_v21, %v6521_v56  ;;  %v360_v56 = vsel %vm342_vm0, %v323_v18, %v324_v50 }
  0xfd   :  { %v972_v6 = vpop.permute.xlu1 %971  ;;  %5426 = vmatmul.mubr.msk.bf16.gmra.mxu0 %vm2358_vm10, %v6591_v54  ;;  %5466 = vmatmul.mubr.msk.bf16.gmra.mxu1 %vm2358_vm10, %v6591_v54  ;;  %v6602_v28 = vpop.permute.xlu0 %594  ;;  %v1272_v38 = vadd.f32 %v1208_v29, %v816_v41 }
  0xfe   :  { %v1211_v49 = vmul.f32 %v6119_v17, %v972_v6 }
  0xff   :  { %689 = vperm.xlu1 %5663, %v363_v25   ;;  %684 = vperm.xlu0 %5662, %v364_v23   ;;  %v817_v23 = vmul.f32 %v6131_v21, %v6494_v27  ;;  %v358_v27 = vsel %vm342_vm0, %v325_v37, %v326_v36  ;;  %v1274_v37 = vadd.f32 %v1210_v52, %v818_v12 }
 0x100   :  { %v455_v6 = vsel %vm6645_vm14, 0.0, %v358_v27  ;;  %v822_v12 = vmul.f32 %v6131_v21, %v6602_v28 }
 0x101   :  { %v982_v26 = vpop.permute.xlu1 %981  ;;  %v977_v20 = vpop.permute.xlu0 %976  ;;  %v1273_v57 = vadd.f32 %v1209_v31, %v817_v23  ;;  %v1424_v31 = vrot.slane %v6561_v51, 1 }
 0x103   :  { %1071 = vperm.xlu1 %5663, %v6545_v58   ;;  %694 = vperm.xlu0 %5662, %v362_v62  }
 0x105   :  { %v1665_v34 = vpop.permute.xlu1 %1664  ;;  %v987_v14 = vpop.permute.xlu0 %986 }
 0x106   :  { %v1920_v25 = vmul.f32 %v6154_v42, %v1665_v34 }
 0x107   :  { %1081 = vperm.xlu1 %5663, %v6566_v32   ;;  %1076 = vperm.xlu0 %5662, %v6561_v51  }
 0x108   :  { %v1984_v62 = vadd.f32 %v1920_v25, %v1271_v53 }
 0x109   :  { %v1675_v11 = vpop.permute.xlu1 %1674  ;;  %v1670_v34 = vpop.permute.xlu0 %1669 }
 0x10a   :  { %v2055_v60 = vadd.f32 %v6188_v1, %v1984_v62  ;;  %v1922_v53 = vmul.f32 %v6154_v42, %v1675_v11  ;;  %v1921_v25 = vmul.f32 %v6154_v42, %v1670_v34  ;;  %v821_v62 = vmul.f32 %v6131_v21, %v6582_v47 }
 0x10b   :  { %699 = vperm.xlu1 %5663, %v361_v30   ;;  %1086 = vperm.xlu0 %5662, %v6589_v55   ;;  %v1275_v30 = vadd.f32 %v1211_v49, %v819_v15  ;;  %v1213_v11 = vmul.f32 %v6119_v17, %v982_v26  ;;  %v1212_v47 = vmul.f32 %v6119_v17, %v977_v20  ;;  %v1425_v15 = vrot.slane %v6566_v32, 1 }
 0x10c   :  { %v2119_v29 = vmax.f32 %v2055_v60, 0.0  ;;  %v1986_v23 = vadd.f32 %v1922_v53, %v1273_v57  ;;  %v1985_v41 = vadd.f32 %v1921_v25, %v1272_v38  ;;  %v1214_v21 = vmul.f32 %v6119_v17, %v987_v14 }
 0x10d   :  { %v1685_v34 = vpop.permute.xlu1 %1684  ;;  %v1680_v18 = vpop.permute.xlu0 %1679  ;;  %v1277_v60 = vadd.f32 %v1213_v11, %v821_v62  ;;  %v1426_v17 = vrot.slane %v6589_v55, 1 }
 0x10e   :  { %v2183_v50 = vrot.slane %v2119_v29, 1  ;;  %v2057_v7 = vadd.f32 %v6188_v1, %v1986_v23  ;;  %v2056_v27 = vadd.f32 %v6188_v1, %v1985_v41  ;;  %v1924_v52 = vmul.f32 %v6154_v42, %v1685_v34 }
 0x10f   :  { %v1923_v57 = vmul.f32 %v6154_v42, %v1680_v18  ;;  %709 = vperm.xlu1 %5663, %v359_v39   ;;  %704 = vperm.xlu0 %5662, %v360_v56   ;;  %v1276_v41 = vadd.f32 %v1212_v47, %v820_v61 }
 0x110   :  { %v2276_v0 = vsel %vm1446_vm3, %v6525_v8, %v2183_v50  ;;  %v2121_v26 = vmax.f32 %v2057_v7, 0.0  ;;  %v2120_v49 = vmax.f32 %v2056_v27, 0.0  ;;  %v1988_v38 = vadd.f32 %v1924_v52, %v1275_v30 }
 0x111   :  { %v2310_v53 = vmax.f32 %v2118_v59, %v2276_v0  ;;  %v1987_v28 = vadd.f32 %v1923_v57, %v1274_v37  ;;  %v1695_v20 = vpop.permute.xlu1 %1694  ;;  %v1690_v25 = vpop.permute.xlu0 %1689  ;;  %v1278_v27 = vadd.f32 %v1214_v21, %v822_v12  ;;  %v133_v12 = vadd.s32 376, %v5755_v5 }
 0x112   :  { %v2185_v39 = vrot.slane %v2121_v26, 1  ;;  %v2184_v56 = vrot.slane %v2120_v49, 1  ;;  %v2059_v32 = vadd.f32 %v6188_v1, %v1988_v38  ;;  %v1926_v23 = vmul.f32 %v6154_v42, %v1695_v20 }
 0x113   :  { %2375 = vst.msk [vmem:[#allocation2 + $0x80] sm:$0xff] %vm2358_vm10, %v2310_v53  ;;  %v2058_v8 = vadd.f32 %v6188_v1, %v1987_v28  ;;  %v1925_v62 = vmul.f32 %v6154_v42, %v1690_v25  ;;  %1091 = vperm.xlu1 %5663, %v6610_v45   ;;  %714 = vperm.xlu0 %5662, %v455_v6  }
 0x114   :  { %v2274_v63 = vsel %vm1446_vm3, %v2184_v56, %v2185_v39  ;;  %v2275_v59 = vsel %vm1446_vm3, %v2183_v50, %v2184_v56  ;;  %v2123_v14 = vmax.f32 %v2059_v32, 0.0  ;;  %v1990_v37 = vadd.f32 %v1926_v23, %v1277_v60 }
 0x115   :  { %v2311_v61 = vmax.f32 %v2119_v29, %v2275_v59  ;;  %v2312_v30 = vmax.f32 %v2120_v49, %v2274_v63  ;;  %v2122_v11 = vmax.f32 %v2058_v8, 0.0  ;;  %v1989_v34 = vadd.f32 %v1925_v62, %v1276_v41  ;;  %v6702_v18 = vpop.permute.xlu1 %599  ;;  %v1700_v7 = vpop.permute.xlu0 %1699 }
 0x116   :  { %v2187_v52 = vrot.slane %v2123_v14, 1  ;;  %v2061_v6 = vadd.f32 %v6188_v1, %v1990_v37  ;;  %v1927_v55 = vmul.f32 %v6154_v42, %v1700_v7  ;;  %v1468_v42 = vsel %vm1446_vm3, %v1423_v48, %v1424_v31 }
 0x117   :  { %2376 = vst.msk [vmem:[#allocation2 + $0x88] sm:$0xff] %vm2358_vm10, %v2311_v61  ;;  %2377 = vst.msk [vmem:[#allocation2 + $0x90] sm:$0xff] %vm2358_vm10, %v2312_v30  ;;  %v2186_v50 = vrot.slane %v2122_v11, 1  ;;  %v2060_v47 = vadd.f32 %v6188_v1, %v1989_v34  ;;  %1101 = vperm.xlu1 %5663, %v6627_v22   ;;  %1096 = vperm.xlu0 %5662, %v6622_v3   ;;  %v1466_v21 = vsel %vm1446_vm3, %v1425_v15, %v1426_v17  ;;  %v6777_v34 = vld [vmem:[%s9196_s0 + $0x188] sm:$0xff] }
 0x118   :  { %v2125_v29 = vmax.f32 %v2061_v6, 0.0  ;;  %v1991_v57 = vadd.f32 %v1927_v55, %v1278_v27  ;;  %v1427_v56 = vrot.slane %v6610_v45, 1  ;;  %v1428_v32 = vrot.slane %v6622_v3, 1 }
 0x119   :  { %v2272_v0 = vsel %vm1446_vm3, %v2186_v50, %v2187_v52  ;;  %v2273_v49 = vsel %vm1446_vm3, %v2185_v39, %v2186_v50  ;;  %v2124_v38 = vmax.f32 %v2060_v47, 0.0  ;;  %v6722_v60 = vpop.permute.xlu1 %609  ;;  %v6724_v53 = vpop.permute.xlu0 %604  ;;  %v1467_v39 = vsel %vm1446_vm3, %v1424_v31, %v1425_v15 }
 0x11a   :  { %v2313_v58 = vmax.f32 %v2121_v26, %v2273_v49  ;;  %v2314_v28 = vmax.f32 %v2122_v11, %v2272_v0  ;;  %v2189_v20 = vrot.slane %v2125_v29, 1  ;;  %v6729_v48 = vadd.f32 %v6188_v1, %v1991_v57  ;;  %v6798_v57 = vld [vmem:[%s9196_s0 + $0x198] sm:$0xff] }
 0x11b   :  { %v2188_v25 = vrot.slane %v2124_v38, 1  ;;  %1784 = vperm.xlu1 %5663, %v1468_v42   ;;  %1106 = vperm.xlu0 %5662, %v6615_v43   ;;  %v197_v26 = vand.u32 63, %v133_v12  ;;  %v1429_v23 = vrot.slane %v6627_v22, 1  ;;  %v1430_v41 = vrot.slane %v6615_v43, 1 }
 0x11c   :  { %2378 = vst.msk [vmem:[#allocation2 + $0x98] sm:$0xff] %vm2358_vm10, %v2313_v58  ;;  %2379 = vst.msk [vmem:[#allocation2 + $0xa0] sm:$0xff] %vm2358_vm10, %v2314_v28  ;;  %v2126_v1 = vmax.f32 %v6729_v48, 0.0  ;;  %v1464_v22 = vsel %vm1446_vm3, %v1427_v56, %v1428_v32  ;;  %v1465_v59 = vsel %vm1446_vm3, %v1426_v17, %v1427_v56  ;;  %v327_v55 = vrot.slane %v6777_v34, 7  ;;  %v6819_v58 = vld [vmem:[%s9196_s0 + $0x1a0] sm:$0xff] }
 0x11d   :  { %v2270_v51 = vsel %vm1446_vm3, %v2188_v25, %v2189_v20  ;;  %v2271_v31 = vsel %vm1446_vm3, %v2187_v52, %v2188_v25  ;;  %v6747_v45 = vpop.permute.xlu1 %991  ;;  %v6749_v3 = vpop.permute.xlu0 %614  ;;  %vm6764_vm15 = vcmp.eq.s32.totalorder %v197_v26, 63  ;;  %v1462_v37 = vsel %vm1446_vm3, %v1429_v23, %v1430_v41 }
 0x11e   :  { %v2315_v15 = vmax.f32 %v2123_v14, %v2271_v31  ;;  %v2316_v8 = vmax.f32 %v2124_v38, %v2270_v51  ;;  %v6753_v62 = vrot.slane %v2126_v1, 1  ;;  %v2439_v17 = vld [vmem:[#allocation2 + $0x80] ss:$2 sm:$0xff]  ;;  %v1558_v27 = vsel %vm6764_vm15, 0.0, %v1462_v37  ;;  %v6846_v31 = vld [vmem:[%s9196_s0 + $0x1b0] sm:$0xff] }
 0x11f   :  { %1794 = vperm.xlu1 %5663, %v1466_v21   ;;  %1789 = vperm.xlu0 %5662, %v1467_v39   ;;  %v1463_v6 = vsel %vm1446_vm3, %v1428_v32, %v1429_v23  ;;  %v9205_v50 = vrot.slane %v6777_v34, 1  ;;  %v357_v12 = vsel %vm342_vm0, %v326_v36, %v327_v55  ;;  %v329_v38 = vrot.slane %v6798_v57, 7 }
 0x120   :  { %2380 = vst.msk [vmem:[#allocation2 + $0xa8] sm:$0xff] %vm2358_vm10, %v2315_v15  ;;  %2381 = vst.msk [vmem:[#allocation2 + $0xb0] sm:$0xff] %vm2358_vm10, %v2316_v8  ;;  %v2269_v63 = vsel %vm1446_vm3, %v2189_v20, %v6753_v62  ;;  %v330_v56 = vrot.slane %v6819_v58, 7  ;;  %v6851_v15 = vld [vmem:[%s9196_s0 + $0x1b8] sm:$0xff]  ;;  %v6856_v8 = vld [vmem:[%s9196_s0 + $0x1c0] sm:$0xff] }
 0x121   :  { %v2317_v61 = vmax.f32 %v2125_v29, %v2269_v63  ;;  %v6770_v30 = vpop.permute.xlu1 %1001  ;;  %v6772_v11 = vpop.permute.xlu0 %996  ;;  %v6793_v29 = vld [vmem:[%s9196_s0 + $0x190] sm:$0xff]  ;;  %v1461_v0 = vsel %vm1446_vm3, %v1430_v41, %v9205_v50  ;;  %v6841_v41 = vld [vmem:[%s9196_s0 + $0x1a8] sm:$0xff]  ;;  %v6862_v63 = vld [vmem:[%s9198_s1 + $0x1] ss:$0 sm:$0xff] }
 0x122   :  { %v328_v49 = vrot.slane %v6793_v29, 7  ;;  %v354_v23 = vsel %vm342_vm0, %v329_v38, %v330_v56  ;;  %v331_v37 = vrot.slane %v6841_v41, 7 }
 0x123   :  { %2382 = vst.msk [vmem:[#allocation2 + $0xb8] sm:$0xff] %vm2358_vm10, %v2317_v61  ;;  %1804 = vperm.xlu1 %5663, %v1464_v22   ;;  %1799 = vperm.xlu0 %5662, %v1465_v59   ;;  %v2441_v7 = vld [vmem:[#allocation2 + $0x90] ss:$2 sm:$0xff]  ;;  %v142_v22 = vadd.s32 448, %v5755_v5  ;;  %v1215_v59 = vmul.f32 %v6862_v63, %v6747_v45  ;;  %v6871_v61 = vld [vmem:[%s9198_s1] ss:$0 sm:$0xff] }
 0x124   :  { %v6782_v52 = vpack.c.bf16 %v2441_v7, %v2439_v17  ;;  %v355_v25 = vsel %vm342_vm0, %v328_v49, %v329_v38  ;;  %v356_v39 = vsel %vm342_vm0, %v327_v55, %v328_v49  ;;  %v823_v17 = vmul.f32 %v6871_v61, %v6702_v18  ;;  %v6883_v49 = vld [vmem:[%s9198_s1 + $0x2] ss:$0 sm:$0xff] }
 0x125   :  { %v6788_v47 = vpop.permute.xlu1 %619  ;;  %v332_v7 = vrot.slane %v6846_v31, 7  ;;  %v9204_v45 = vrot.slane %v6856_v8, 7  ;;  %v206_v55 = vand.u32 63, %v142_v22 }
 0x126   :  { %5429 = vmatprep.mubr.msk.bf16.mxu0 %vm2358_vm10, %v6782_v52  ;;  %5469 = vmatprep.mubr.msk.bf16.mxu1 %vm2358_vm10, %v6782_v52  ;;  %v1007_v42 = vpop.permute.xlu0 %1006 }
 0x127   :  { %1814 = vperm.xlu1 %5663, %v1558_v27   ;;  %1809 = vperm.xlu0 %5662, %v1463_v6   ;;  %v2443_v28 = vld [vmem:[#allocation2 + $0xa0] ss:$2 sm:$0xff]  ;;  %v333_v27 = vrot.slane %v6851_v15, 7  ;;  %v1218_v22 = vmul.f32 %v6862_v63, %v1007_v42  ;;  %vm6904_vm1 = vcmp.eq.s32.totalorder %v206_v55, 0  ;;  %v827_v55 = vmul.f32 %v6871_v61, %v6788_v47 }
 0x129   :  { %v6814_v21 = vpop.permute.xlu1 %629 }
 0x12a   :  { %v6821_v43 = vpop.permute.xlu0 %624  ;;  %v2445_v36 = vld [vmem:[#allocation2 + $0xb0] ss:$2 sm:$0xff] }
 0x12b   :  { %719 = vperm.xlu1 %5663, %v357_v12   ;;  %1819 = vperm.xlu0 %5662, %v1461_v0   ;;  %v6823_v20 = vpack.c.bf16 %v2445_v36, %v2443_v28  ;;  %v1279_v12 = vadd.f32 %v1215_v59, %v823_v17  ;;  %v1217_v0 = vmul.f32 %v6862_v63, %v6770_v30 }
 0x12c   :  { %v1216_v28 = vmul.f32 %v6862_v63, %v6772_v11  ;;  %v353_v36 = vsel %vm342_vm0, %v330_v56, %v331_v37  ;;  %v825_v30 = vmul.f32 %v6871_v61, %v6722_v60  ;;  %v824_v11 = vmul.f32 %v6871_v61, %v6724_v53 }
 0x12d   :  { %v1012_v32 = vpop.permute.xlu1 %1011  ;;  %5430 = vmatmul.mubr.msk.bf16.gmra.mxu0 %vm2358_vm10, %v6823_v20  ;;  %5470 = vmatmul.mubr.msk.bf16.gmra.mxu1 %vm2358_vm10, %v6823_v20  ;;  %v826_v60 = vmul.f32 %v6871_v61, %v6749_v3 }
 0x12e   :  { %v6834_v26 = vpop.permute.xlu0 %634  ;;  %v1219_v59 = vmul.f32 %v6862_v63, %v1012_v32  ;;  %v1280_v32 = vadd.f32 %v1216_v28, %v824_v11  ;;  %v1432_v11 = vrot.slane %v6793_v29, 1 }
 0x12f   :  { %729 = vperm.xlu1 %5663, %v355_v25   ;;  %724 = vperm.xlu0 %5662, %v356_v39   ;;  %v351_v39 = vsel %vm342_vm0, %v332_v7, %v333_v27 }
 0x131   :  { %v1022_v51 = vpop.permute.xlu1 %1021 }
 0x132   :  { %v1017_v14 = vpop.permute.xlu0 %1016  ;;  %v1221_v47 = vmul.f32 %v6862_v63, %v1022_v51 }
 0x133   :  { %1111 = vperm.xlu1 %5663, %v6777_v34   ;;  %734 = vperm.xlu0 %5662, %v354_v23   ;;  %v350_v23 = vsel %vm342_vm0, %v333_v27, %v9204_v45  ;;  %v6913_v27 = vld [vmem:[%s9199_s2] ss:$0 sm:$0xff]  ;;  %v1282_v45 = vadd.f32 %v1218_v22, %v826_v60  ;;  %v1433_v22 = vrot.slane %v6798_v57, 1 }
 0x135   :  { %v1705_v6 = vpop.permute.xlu1 %1704 }
 0x136   :  { %v1928_v38 = vmul.f32 %v6883_v49, %v1705_v6  ;;  %v1027_v18 = vpop.permute.xlu0 %1026  ;;  %v1281_v6 = vadd.f32 %v1217_v0, %v825_v30  ;;  %v352_v30 = vsel %vm342_vm0, %v331_v37, %v332_v7  ;;  %v829_v37 = vmul.f32 %v6871_v61, %v6814_v21 }
 0x137   :  { %1121 = vperm.xlu1 %5663, %v6798_v57   ;;  %1116 = vperm.xlu0 %5662, %v6793_v29  }
 0x138   :  { %v1992_v25 = vadd.f32 %v1928_v38, %v1279_v12 }
 0x139   :  { %v1715_v56 = vpop.permute.xlu1 %1714 }
 0x13a   :  { %v2063_v53 = vadd.f32 %v6913_v27, %v1992_v25  ;;  %v1930_v42 = vmul.f32 %v6883_v49, %v1715_v56  ;;  %v1710_v12 = vpop.permute.xlu0 %1709  ;;  %v463_v25 = vsel %vm6904_vm1, 0.0, %v350_v23  ;;  %v1283_v56 = vadd.f32 %v1219_v59, %v827_v55 }
 0x13b   :  { %v1929_v38 = vmul.f32 %v6883_v49, %v1710_v12  ;;  %739 = vperm.xlu1 %5663, %v353_v36   ;;  %1126 = vperm.xlu0 %5662, %v6819_v58   ;;  %v1220_v59 = vmul.f32 %v6862_v63, %v1017_v14  ;;  %v1222_v55 = vmul.f32 %v6862_v63, %v1027_v18 }
 0x13c   :  { %v2127_v3 = vmax.f32 %v2063_v53, 0.0  ;;  %v1994_v0 = vadd.f32 %v1930_v42, %v1281_v6  ;;  %v828_v42 = vmul.f32 %v6871_v61, %v6821_v43 }
 0x13d   :  { %v1993_v50 = vadd.f32 %v1929_v38, %v1280_v32  ;;  %v1725_v28 = vpop.permute.xlu1 %1724 }
 0x13e   :  { %v2191_v12 = vrot.slane %v2127_v3, 1  ;;  %v2065_v36 = vadd.f32 %v6913_v27, %v1994_v0  ;;  %v1932_v53 = vmul.f32 %v6883_v49, %v1725_v28  ;;  %v1720_v6 = vpop.permute.xlu0 %1719  ;;  %v1434_v28 = vrot.slane %v6819_v58, 1 }
 0x13f   :  { %v2064_v7 = vadd.f32 %v6913_v27, %v1993_v50  ;;  %v1931_v23 = vmul.f32 %v6883_v49, %v1720_v6  ;;  %749 = vperm.xlu1 %5663, %v351_v39   ;;  %744 = vperm.xlu0 %5662, %v352_v30   ;;  %v1285_v39 = vadd.f32 %v1221_v47, %v829_v37 }
 0x140   :  { %v2268_v51 = vsel %vm1446_vm3, %v6753_v62, %v2191_v12  ;;  %v2129_v17 = vmax.f32 %v2065_v36, 0.0  ;;  %v1996_v60 = vadd.f32 %v1932_v53, %v1283_v56 }
 0x141   :  { %v2318_v50 = vmax.f32 %v2126_v1, %v2268_v51  ;;  %v2128_v21 = vmax.f32 %v2064_v7, 0.0  ;;  %v1995_v32 = vadd.f32 %v1931_v23, %v1282_v45  ;;  %v830_v1 = vmul.f32 %v6871_v61, %v6834_v26 }
 0x142   :  { %v2193_v38 = vrot.slane %v2129_v17, 1  ;;  %v6944_v14 = vadd.f32 %v6913_v27, %v1996_v60  ;;  %v1735_v0 = vpop.permute.xlu1 %1734  ;;  %v1730_v30 = vpop.permute.xlu0 %1729  ;;  %v1284_v45 = vadd.f32 %v1220_v59, %v828_v42 }
 0x143   :  { %2383 = vst.msk [vmem:[#allocation2 + $0xc0] sm:$0xff] %vm2358_vm10, %v2318_v50  ;;  %v2192_v62 = vrot.slane %v2128_v21, 1  ;;  %v2066_v56 = vadd.f32 %v6913_v27, %v1995_v32  ;;  %v1934_v43 = vmul.f32 %v6883_v49, %v1735_v0  ;;  %v1933_v48 = vmul.f32 %v6883_v49, %v1730_v30  ;;  %1131 = vperm.xlu1 %5663, %v6841_v41  }
 0x144   :  { %754 = vperm.xlu0 %5662, %v463_v25   ;;  %v2131_v18 = vmax.f32 %v6944_v14, 0.0  ;;  %v1286_v59 = vadd.f32 %v1222_v55, %v830_v1  ;;  %v1459_v1 = vsel %vm1446_vm3, %v1432_v11, %v1433_v22 }
 0x145   :  { %v2266_v47 = vsel %vm1446_vm3, %v2192_v62, %v2193_v38  ;;  %v2267_v36 = vsel %vm1446_vm3, %v2191_v12, %v2192_v62  ;;  %v2130_v53 = vmax.f32 %v2066_v56, 0.0  ;;  %v1998_v6 = vadd.f32 %v1934_v43, %v1285_v39 }
 0x146   :  { %v2319_v37 = vmax.f32 %v2127_v3, %v2267_v36  ;;  %v2320_v7 = vmax.f32 %v2128_v21, %v2266_v47  ;;  %v2195_v23 = vrot.slane %v2131_v18, 1  ;;  %v1997_v25 = vadd.f32 %v1933_v48, %v1284_v45  ;;  %v6959_v51 = vpop.permute.xlu1 %639  ;;  %v1740_v26 = vpop.permute.xlu0 %1739 }
 0x147   :  { %v2194_v60 = vrot.slane %v2130_v53, 1  ;;  %v2069_v42 = vadd.f32 %v6913_v27, %v1998_v6  ;;  %v1935_v58 = vmul.f32 %v6883_v49, %v1740_v26  ;;  %1141 = vperm.xlu1 %5663, %v6851_v15   ;;  %v9250_v12 = vrot.slane %v6777_v34, 1 }
 0x148   :  { %1136 = vperm.xlu0 %5662, %v6846_v31   ;;  %2384 = vst.msk [vmem:[#allocation2 + $0xc8] sm:$0xff] %vm2358_vm10, %v2319_v37  ;;  %2385 = vst.msk [vmem:[#allocation2 + $0xd0] sm:$0xff] %vm2358_vm10, %v2320_v7  ;;  %v2068_v3 = vadd.f32 %v6913_v27, %v1997_v25  ;;  %v141_v21 = vadd.s32 440, %v5755_v5  ;;  %v1435_v45 = vrot.slane %v6841_v41, 1  ;;  %v1436_v47 = vrot.slane %v6846_v31, 1 }
 0x149   :  { %v1460_v50 = vsel %vm1446_vm3, %v9250_v12, %v1432_v11  ;;  %v2264_v32 = vsel %vm1446_vm3, %v2194_v60, %v2195_v23  ;;  %v2265_v39 = vsel %vm1446_vm3, %v2193_v38, %v2194_v60  ;;  %v2133_v55 = vmax.f32 %v2069_v42, 0.0 }
 0x14a   :  { %v1999_v14 = vadd.f32 %v1935_v58, %v1286_v59  ;;  %v2321_v0 = vmax.f32 %v2129_v17, %v2265_v39  ;;  %v2322_v30 = vmax.f32 %v2130_v53, %v2264_v32  ;;  %v2132_v62 = vmax.f32 %v2068_v3, 0.0  ;;  %v6979_v56 = vpop.permute.xlu1 %649  ;;  %v6981_v43 = vpop.permute.xlu0 %644  ;;  %v7032_v59 = vld [vmem:[%s9196_s0 + $0x1c8] sm:$0xff] }
 0x14b   :  { %v2197_v34 = vrot.slane %v2133_v55, 1  ;;  %1824 = vperm.xlu1 %5663, %v1460_v50   ;;  %v1458_v38 = vsel %vm1446_vm3, %v1433_v22, %v1434_v28  ;;  %v205_v53 = vand.u32 63, %v141_v21  ;;  %v1437_v6 = vrot.slane %v6851_v15, 1 }
 0x14c   :  { %v6984_v48 = vadd.f32 %v6913_v27, %v1999_v14  ;;  %1146 = vperm.xlu0 %5662, %v6856_v8   ;;  %2386 = vst.msk [vmem:[#allocation2 + $0xd8] sm:$0xff] %vm2358_vm10, %v2321_v0  ;;  %2387 = vst.msk [vmem:[#allocation2 + $0xe0] sm:$0xff] %vm2358_vm10, %v2322_v30  ;;  %v2196_v17 = vrot.slane %v2132_v62, 1  ;;  %v1438_v37 = vrot.slane %v6856_v8, 1  ;;  %v1456_v15 = vsel %vm1446_vm3, %v1435_v45, %v1436_v47  ;;  %v7051_v14 = vld [vmem:[%s9196_s0 + $0x1d8] sm:$0xff] }
 0x14d   :  { %v1457_v22 = vsel %vm1446_vm3, %v1434_v28, %v1435_v45  ;;  %vm7023_vm2 = vcmp.eq.s32.totalorder %v205_v53, 63  ;;  %v1455_v12 = vsel %vm1446_vm3, %v1436_v47, %v1437_v6  ;;  %v335_v32 = vrot.slane %v7032_v59, 7  ;;  %v7072_v45 = vld [vmem:[%s9196_s0 + $0x1e0] sm:$0xff] }
 0x14e   :  { %v9206_v36 = vmax.f32 %v6984_v48, 0.0  ;;  %v2262_v7 = vsel %vm1446_vm3, %v2196_v17, %v2197_v34  ;;  %v2263_v29 = vsel %vm1446_vm3, %v2195_v23, %v2196_v17  ;;  %v1032_v57 = vpop.permute.xlu1 %1031  ;;  %v7008_v25 = vpop.permute.xlu0 %654  ;;  %v1454_v26 = vsel %vm1446_vm3, %v1437_v6, %v1438_v37 }
 0x14f   :  { %v2323_v11 = vmax.f32 %v2131_v18, %v2263_v29  ;;  %v2324_v41 = vmax.f32 %v2132_v62, %v2262_v7  ;;  %1834 = vperm.xlu1 %5663, %v1458_v38   ;;  %v2447_v58 = vld [vmem:[#allocation2 + $0xc0] ss:$2 sm:$0xff]  ;;  %v1566_v21 = vsel %vm7023_vm2, 0.0, %v1454_v26  ;;  %v1439_v39 = vrot.slane %v7032_v59, 1 }
 0x150   :  { %v7012_v31 = vrot.slane %v9206_v36, 1  ;;  %1829 = vperm.xlu0 %5662, %v1459_v1   ;;  %v9253_v62 = vrot.slane %v6856_v8, 7  ;;  %v337_v1 = vrot.slane %v7051_v14, 7 }
 0x151   :  { %2388 = vst.msk [vmem:[#allocation2 + $0xe8] sm:$0xff] %vm2358_vm10, %v2323_v11  ;;  %2389 = vst.msk [vmem:[#allocation2 + $0xf0] sm:$0xff] %vm2358_vm10, %v2324_v41  ;;  %v1453_v38 = vsel %vm1446_vm3, %v1438_v37, %v1439_v39  ;;  %v338_v11 = vrot.slane %v7072_v45, 7 }
 0x152   :  { %v2261_v18 = vsel %vm1446_vm3, %v2197_v34, %v7012_v31  ;;  %v1042_v60 = vpop.permute.xlu1 %1041  ;;  %v1037_v42 = vpop.permute.xlu0 %1036  ;;  %v349_v34 = vsel %vm342_vm0, %v9253_v62, %v335_v32 }
 0x153   :  { %v2325_v28 = vmax.f32 %v2133_v55, %v2261_v18  ;;  %1844 = vperm.xlu1 %5663, %v1456_v15   ;;  %v2449_v3 = vld [vmem:[#allocation2 + $0xd0] ss:$2 sm:$0xff]  ;;  %v7096_v18 = vld [vmem:[%s9196_s0 + $0x1e8] sm:$0xff]  ;;  %v1225_v62 = vmul.f32 %v6862_v63, %v1042_v60  ;;  %v832_v60 = vmul.f32 %v6871_v61, %v6981_v43 }
 0x154   :  { %1839 = vperm.xlu0 %5662, %v1457_v22   ;;  %v7037_v50 = vpack.c.bf16 %v2449_v3, %v2447_v58  ;;  %v7046_v55 = vld [vmem:[%s9196_s0 + $0x1d0] sm:$0xff]  ;;  %v346_v22 = vsel %vm342_vm0, %v337_v1, %v338_v11  ;;  %v1223_v58 = vmul.f32 %v6862_v63, %v1032_v57  ;;  %v339_v3 = vrot.slane %v7096_v18, 7 }
 0x155   :  { %2390 = vst.msk [vmem:[#allocation2 + $0xf8] sm:$0xff] %vm2358_vm10, %v2325_v28  ;;  %v336_v17 = vrot.slane %v7046_v55, 7  ;;  %v7103_v28 = vld [vmem:[%s9196_s0 + $0x1f0] sm:$0xff] }
 0x156   :  { %v7053_v0 = vpop.permute.xlu1 %659  ;;  %5433 = vmatprep.mubr.msk.bf16.mxu0 %vm2358_vm10, %v7037_v50  ;;  %5473 = vmatprep.mubr.msk.bf16.mxu1 %vm2358_vm10, %v7037_v50  ;;  %v1047_v30 = vpop.permute.xlu0 %1046 }
 0x157   :  { %1854 = vperm.xlu1 %5663, %v1566_v21   ;;  %v347_v37 = vsel %vm342_vm0, %v336_v17, %v337_v1  ;;  %v348_v29 = vsel %vm342_vm0, %v335_v32, %v336_v17  ;;  %v340_v21 = vrot.slane %v7103_v28, 7  ;;  %v5672_v32 = vld [vmem:[%s9197_s3 + $0x58] sm:$0xff]  }
 0x158   :  { %1849 = vperm.xlu0 %5662, %v1455_v12   ;;  %v2451_v53 = vld [vmem:[#allocation2 + $0xe0] ss:$2 sm:$0xff]  ;;  %v831_v12 = vmul.f32 %v6871_v61, %v6959_v51  ;;  %v345_v51 = vsel %vm342_vm0, %v338_v11, %v339_v3  ;;  %5493 = vmatprep.subr.bf16.mxu0 %v5672_v32 }
 0x159   :  { %5494 = vmatpush3.bf16.msra.mxu0 %v5672_v32  ;;  %v5673_v32 = vld [vmem:[%s9197_s3 + $0x50] sm:$0xff]  }
 0x15a   :  { %v7074_v47 = vpop.permute.xlu1 %669  ;;  %v7076_v8 = vpop.permute.xlu0 %664  ;;  %v1287_v17 = vadd.f32 %v1223_v58, %v831_v12  ;;  %v1226_v12 = vmul.f32 %v6862_v63, %v1047_v30  ;;  %5495 = vmatprep.subr.bf16.mxu0 %v5673_v32 }
 0x15b   :  { %759 = vperm.xlu1 %5663, %v349_v34   ;;  %v1224_v34 = vmul.f32 %v6862_v63, %v1037_v42  ;;  %v1441_v42 = vrot.slane %v7051_v14, 1 }
 0x15c   :  { %1859 = vperm.xlu0 %5662, %v1453_v38   ;;  %v2453_v6 = vld [vmem:[#allocation2 + $0xf0] ss:$2 sm:$0xff] }
 0x15d   :  { %v7078_v7 = vpack.c.bf16 %v2453_v6, %v2451_v53  ;;  %v1440_v53 = vrot.slane %v7046_v55, 1  ;;  %v833_v6 = vmul.f32 %v6871_v61, %v6979_v56  ;;  %v1288_v56 = vadd.f32 %v1224_v34, %v832_v60  ;;  %5496 = vmatpush3.bf16.msra.mxu0 %v5673_v32 }
 0x15e   :  { %v1052_v41 = vpop.permute.xlu1 %1051  ;;  %v7089_v15 = vpop.permute.xlu0 %674  ;;  %v7163_v60 = vadd.s32 504, %v5755_v5 }
 0x15f   :  { %5434 = vmatmul.mubr.msk.bf16.gmra.mxu0 %vm2358_vm10, %v7078_v7  ;;  %5474 = vmatmul.mubr.msk.bf16.gmra.mxu1 %vm2358_vm10, %v7078_v7  ;;  %v1289_v11 = vadd.f32 %v1225_v62, %v833_v6  ;;  %v1227_v43 = vmul.f32 %v6862_v63, %v1052_v41  ;;  %v1452_v30 = vsel %vm1446_vm3, %v1439_v39, %v1440_v53 }
 0x160   :  { %769 = vperm.xlu1 %5663, %v347_v37   ;;  %764 = vperm.xlu0 %5662, %v348_v29   ;;  %v1442_v37 = vrot.slane %v7072_v45, 1 }
 0x162   :  { %v1062_v23 = vpop.permute.xlu1 %1061  ;;  %v7098_v26 = vpop.permute.xlu0 %1056  ;;  %v7152_v41 = vsel %vm1446_vm3, %v1441_v42, %v1442_v37 }
 0x163   :  { %v1229_v39 = vmul.f32 %v6862_v63, %v1062_v23  ;;  %v836_v23 = vmul.f32 %v6871_v61, %v7076_v8 }
 0x164   :  { %1151 = vperm.xlu1 %5663, %v7032_v59   ;;  %774 = vperm.xlu0 %5662, %v346_v22   ;;  %v9254_v22 = vrot.slane %v5775_v13, 7 }
 0x166   :  { %v1745_v38 = vpop.permute.xlu1 %1744  ;;  %v1067_v57 = vpop.permute.xlu0 %1066  ;;  %v343_v58 = vsel %vm342_vm0, %v340_v21, %v9254_v22 }
 0x167   :  { %v1936_v1 = vmul.f32 %v6883_v49, %v1745_v38  ;;  %v1230_v8 = vmul.f32 %v6862_v63, %v1067_v57 }
 0x168   :  { %1161 = vperm.xlu1 %5663, %v7051_v14   ;;  %1156 = vperm.xlu0 %5662, %v7046_v55   ;;  %v344_v55 = vsel %vm342_vm0, %v339_v3, %v340_v21  ;;  %v834_v3 = vmul.f32 %v6871_v61, %v7008_v25  ;;  %v835_v21 = vmul.f32 %v6871_v61, %v7053_v0 }
 0x169   :  { %v2000_v29 = vadd.f32 %v1936_v1, %v1287_v17  ;;  %v7159_v0 = vsel %vm1446_vm3, %v1440_v53, %v1441_v42  ;;  %v837_v53 = vmul.f32 %v6871_v61, %v7074_v47  ;;  %v1228_v42 = vmul.f32 %v6862_v63, %v7098_v26 }
 0x16a   :  { %v1755_v14 = vpop.permute.xlu1 %1754  ;;  %v1750_v38 = vpop.permute.xlu0 %1749  ;;  %v1290_v59 = vadd.f32 %v1226_v12, %v834_v3  ;;  %v1291_v1 = vadd.f32 %v1227_v43, %v835_v21  ;;  %v9255_v47 = vmax.f32 %v6984_v48, 0.0 }
 0x16b   :  { %v2071_v36 = vadd.f32 %v6913_v27, %v2000_v29  ;;  %v1938_v17 = vmul.f32 %v6883_v49, %v1755_v14  ;;  %v1937_v13 = vmul.f32 %v6883_v49, %v1750_v38  ;;  %v1293_v14 = vadd.f32 %v1229_v39, %v837_v53 }
 0x16c   :  { %779 = vperm.xlu1 %5663, %v345_v51   ;;  %1166 = vperm.xlu0 %5662, %v7072_v45   ;;  %v1292_v48 = vadd.f32 %v1228_v42, %v836_v23 }
 0x16d   :  { %v2135_v62 = vmax.f32 %v2071_v36, 0.0  ;;  %v2002_v25 = vadd.f32 %v1938_v17, %v1289_v11  ;;  %v2001_v34 = vadd.f32 %v1937_v13, %v1288_v56 }
 0x16e   :  { %v1765_v51 = vpop.permute.xlu1 %1764  ;;  %v1760_v6 = vpop.permute.xlu0 %1759 }
 0x16f   :  { %v2199_v29 = vrot.slane %v2135_v62, 1  ;;  %v7166_v22 = vadd.f32 %v6913_v27, %v2002_v25  ;;  %v2072_v36 = vadd.f32 %v6913_v27, %v2001_v34  ;;  %v1940_v11 = vmul.f32 %v6883_v49, %v1765_v51 }
 0x170   :  { %789 = vperm.xlu1 %5663, %v343_v58   ;;  %784 = vperm.xlu0 %5662, %v344_v55   ;;  %v1939_v56 = vmul.f32 %v6883_v49, %v1760_v6 }
 0x171   :  { %v2260_v12 = vsel %vm1446_vm3, %v7012_v31, %v2199_v29  ;;  %v2137_v43 = vmax.f32 %v7166_v22, 0.0  ;;  %v2136_v58 = vmax.f32 %v2072_v36, 0.0  ;;  %v2004_v55 = vadd.f32 %v1940_v11, %v1291_v1 }
 0x172   :  { %v2326_v38 = vmax.f32 %v9255_v47, %v2260_v12  ;;  %v2003_v17 = vadd.f32 %v1939_v56, %v1290_v59  ;;  %v1775_v13 = vpop.permute.xlu1 %1774  ;;  %v1770_v26 = vpop.permute.xlu0 %1769  ;;  %v838_v31 = vmul.f32 %v6871_v61, %v7089_v15 }
 0x173   :  { %v2201_v3 = vrot.slane %v2137_v43, 1  ;;  %v2200_v21 = vrot.slane %v2136_v58, 1  ;;  %v2075_v32 = vadd.f32 %v6913_v27, %v2004_v55  ;;  %v1942_v25 = vmul.f32 %v6883_v49, %v1775_v13 }
 0x174   :  { %1176 = vperm.xlu1 %5663, %v7103_v28   ;;  %1171 = vperm.xlu0 %5662, %v7096_v18   ;;  %2391 = vst.msk [vmem:[#allocation2 + $0x100] sm:$0xff] %vm2358_vm10, %v2326_v38  ;;  %v2074_v57 = vadd.f32 %v6913_v27, %v2003_v17  ;;  %v1941_v34 = vmul.f32 %v6883_v49, %v1770_v26  ;;  %v1443_v55 = vrot.slane %v7096_v18, 1 }
 0x175   :  { %v2258_v59 = vsel %vm1446_vm3, %v2200_v21, %v2201_v3  ;;  %v2259_v1 = vsel %vm1446_vm3, %v2199_v29, %v2200_v21  ;;  %v2139_v39 = vmax.f32 %v2075_v32, 0.0  ;;  %v2006_v51 = vadd.f32 %v1942_v25, %v1293_v14  ;;  %v5704_v29 = vld [vmem:[%s9196_s0 + $0x1f8] sm:$0xff] }
 0x176   :  { %v2327_v6 = vmax.f32 %v2135_v62, %v2259_v1  ;;  %v2328_v22 = vmax.f32 %v2136_v58, %v2258_v59  ;;  %v2138_v36 = vmax.f32 %v2074_v57, 0.0  ;;  %v2005_v11 = vadd.f32 %v1941_v34, %v1292_v48  ;;  %v7197_v15 = vpop.permute.xlu1 %679  ;;  %v1780_v53 = vpop.permute.xlu0 %1779 }
 0x177   :  { %v1294_v23 = vadd.f32 %v1230_v8, %v838_v31  ;;  %v2203_v42 = vrot.slane %v2139_v39, 1  ;;  %v2077_v56 = vadd.f32 %v6913_v27, %v2006_v51  ;;  %v1943_v12 = vmul.f32 %v6883_v49, %v1780_v53 }
 0x178   :  { %1864 = vperm.xlu1 %5663, %v1452_v30   ;;  %1181 = vperm.xlu0 %5662, %v5704_v29   ;;  %2392 = vst.msk [vmem:[#allocation2 + $0x108] sm:$0xff] %vm2358_vm10, %v2327_v6  ;;  %2393 = vst.msk [vmem:[#allocation2 + $0x110] sm:$0xff] %vm2358_vm10, %v2328_v22  ;;  %v2202_v62 = vrot.slane %v2138_v36, 1  ;;  %v2076_v58 = vadd.f32 %v6913_v27, %v2005_v11  ;;  %v1444_v14 = vrot.slane %v7103_v28, 1  ;;  %v213_v30 = vand.u32 63, %v7163_v60 }
 0x179   :  { %v2141_v47 = vmax.f32 %v2077_v56, 0.0  ;;  %v2007_v38 = vadd.f32 %v1943_v12, %v1294_v23  ;;  %v1445_v8 = vrot.slane %v5704_v29, 1  ;;  %v839_v57 = vmul.f32 %v6871_v61, %v7197_v15 }
 0x17a   :  { %v2256_v17 = vsel %vm1446_vm3, %v2202_v62, %v2203_v42  ;;  %v2257_v13 = vsel %vm1446_vm3, %v2201_v3, %v2202_v62  ;;  %v2140_v26 = vmax.f32 %v2076_v58, 0.0  ;;  %v7214_v21 = vpop.permute.xlu1 %689  ;;  %v7216_v32 = vpop.permute.xlu0 %684  ;;  %v1448_v48 = vsel %vm1446_vm3, %v1443_v55, %v1444_v14  ;;  %v5674_v62 = vld [vmem:[%s9197_s3 + $0x48] sm:$0xff]  }
 0x17b   :  { %v2329_v25 = vmax.f32 %v2137_v43, %v2257_v13  ;;  %v2330_v18 = vmax.f32 %v2138_v36, %v2256_v17  ;;  %v2205_v31 = vrot.slane %v2141_v47, 1  ;;  %v7219_v28 = vadd.f32 %v6913_v27, %v2007_v38  ;;  %5497 = vmatprep.subr.bf16.mxu0 %v5674_v62 }
 0x17c   :  { %1874 = vperm.xlu1 %5663, %v7152_v41   ;;  %1869 = vperm.xlu0 %5662, %v7159_v0   ;;  %v2204_v60 = vrot.slane %v2140_v26, 1  ;;  %v1449_v3 = vsel %vm1446_vm3, %v1442_v37, %v1443_v55  ;;  %vm7232_vm4 = vcmp.eq.s32.totalorder %v213_v30, 63  ;;  %v9258_v41 = vrot.slane %v5753_v4, 1  ;;  %v5675_v30 = vld [vmem:[%s9197_s3 + $0x40] sm:$0xff]  }
 0x17d   :  { %2394 = vst.msk [vmem:[#allocation2 + $0x118] sm:$0xff] %vm2358_vm10, %v2329_v25  ;;  %2395 = vst.msk [vmem:[#allocation2 + $0x120] sm:$0xff] %vm2358_vm10, %v2330_v18  ;;  %v2142_v43 = vmax.f32 %v7219_v28, 0.0  ;;  %v1447_v22 = vsel %vm1446_vm3, %v1444_v14, %v1445_v8  ;;  %5498 = vmatpush3.bf16.msra.mxu0 %v5674_v62  ;;  %v841_v15 = vmul.f32 %v6871_v61, %v7214_v21 }
 0x17e   :  { %v1510_v0 = vsel %vm1446_vm3, %v1445_v8, %v9258_v41  ;;  %v2254_v45 = vsel %vm1446_vm3, %v2204_v60, %v2205_v31  ;;  %v2255_v37 = vsel %vm1446_vm3, %v2203_v42, %v2204_v60  ;;  %v1072_v34 = vpop.permute.xlu1 %1071  ;;  %v7244_v59 = vpop.permute.xlu0 %694  ;;  %5499 = vmatprep.subr.bf16.mxu0 %v5675_v30 }
 0x17f   :  { %v2331_v1 = vmax.f32 %v2139_v39, %v2255_v37  ;;  %v2332_v51 = vmax.f32 %v2140_v26, %v2254_v45  ;;  %v7248_v6 = vrot.slane %v2142_v43, 1  ;;  %v1574_v4 = vsel %vm7232_vm4, 0.0, %v1510_v0  ;;  %v2455_v23 = vld [vmem:[#allocation2 + $0x100] ss:$2 sm:$0xff] }
 0x180   :  { %1884 = vperm.xlu1 %5663, %v1448_v48   ;;  %1879 = vperm.xlu0 %5662, %v1449_v3  }
 0x181   :  { %2396 = vst.msk [vmem:[#allocation2 + $0x128] sm:$0xff] %vm2358_vm10, %v2331_v1  ;;  %2397 = vst.msk [vmem:[#allocation2 + $0x130] sm:$0xff] %vm2358_vm10, %v2332_v51  ;;  %v2253_v39 = vsel %vm1446_vm3, %v2205_v31, %v7248_v6  ;;  %5500 = vmatpush3.bf16.msra.mxu0 %v5675_v30  ;;  %v1231_v31 = vmul.f32 %v6862_v63, %v1072_v34 }
 0x182   :  { %v2333_v36 = vmax.f32 %v2141_v47, %v2253_v39  ;;  %v1082_v11 = vpop.permute.xlu1 %1081  ;;  %v1077_v53 = vpop.permute.xlu0 %1076 }
 0x183   :  { %v1295_v45 = vadd.f32 %v1231_v31, %v839_v57  ;;  %v1233_v37 = vmul.f32 %v6862_v63, %v1082_v11  ;;  %v1232_v51 = vmul.f32 %v6862_v63, %v1077_v53 }
 0x184   :  { %1894 = vperm.xlu1 %5663, %v1574_v4   ;;  %1889 = vperm.xlu0 %5662, %v1447_v22   ;;  %2398 = vst.msk [vmem:[#allocation2 + $0x138] sm:$0xff] %vm2358_vm10, %v2333_v36  ;;  %v2457_v42 = vld [vmem:[#allocation2 + $0x110] ss:$2 sm:$0xff]  ;;  %v840_v22 = vmul.f32 %v6871_v61, %v7216_v32  ;;  %v842_v32 = vmul.f32 %v6871_v61, %v7244_v59 }
 0x185   :  { %v7260_v56 = vpack.c.bf16 %v2457_v42, %v2455_v23  ;;  %v1297_v23 = vadd.f32 %v1233_v37, %v841_v15 }
 0x186   :  { %v700_v12 = vpop.permute.xlu1 %699  ;;  %v1087_v29 = vpop.permute.xlu0 %1086 }
 0x187   :  { %5437 = vmatprep.mubr.msk.bf16.mxu0 %vm2358_vm10, %v7260_v56  ;;  %5477 = vmatprep.mubr.msk.bf16.mxu1 %vm2358_vm10, %v7260_v56  ;;  %v1234_v53 = vmul.f32 %v6862_v63, %v1087_v29 }
 0x188   :  { %v2459_v14 = vld [vmem:[#allocation2 + $0x120] ss:$2 sm:$0xff] }
 0x189   :  { %v1298_v15 = vadd.f32 %v1234_v53, %v842_v32 }
 0x18a   :  { %v710_v58 = vpop.permute.xlu1 %709  ;;  %v705_v55 = vpop.permute.xlu0 %704 }
 0x18b   :  { %v2461_v47 = vld [vmem:[#allocation2 + $0x130] ss:$2 sm:$0xff] }
 0x18c   :  { %v7269_v38 = vpack.c.bf16 %v2461_v47, %v2459_v14  ;;  %v1296_v14 = vadd.f32 %v1232_v51, %v840_v22  ;;  %v843_v47 = vmul.f32 %v6871_v61, %v700_v12 }
 0x18e   :  { %v1092_v8 = vpop.permute.xlu1 %1091  ;;  %v7274_v17 = vpop.f32.mrf.mxu0  ;;  %5438 = vmatmul.mubr.msk.bf16.gmra.mxu0 %vm2358_vm10, %v7269_v38  ;;  %5478 = vmatmul.mubr.msk.bf16.gmra.mxu1 %vm2358_vm10, %v7269_v38 }
 0x18f   :  { %v7280_v13 = vpop.permute.xlu0 %714  ;;  %v9208_v60 = vrot.slane %v7274_v17, 7  ;;  %v1235_v39 = vmul.f32 %v6862_v63, %v1092_v8 }
 0x190   :  { %v7282_v26 = vpop.f32.mrf.mxu0 }
 0x191   :  { %v1299_v8 = vadd.f32 %v1235_v39, %v843_v47  ;;  %v844_v39 = vmul.f32 %v6871_v61, %v705_v55 }
 0x192   :  { %v1102_v25 = vpop.permute.xlu1 %1101  ;;  %v7284_v18 = vpop.f32.mrf.mxu0 }
 0x193   :  { %v3198_v48 = vrot.slane %v7284_v18, 7  ;;  %v1097_v3 = vpop.permute.xlu0 %1096  ;;  %v1237_v57 = vmul.f32 %v6862_v63, %v1102_v25 }
 0x194   :  { %v1236_v37 = vmul.f32 %v6862_v63, %v1097_v3 }
 0x195   :  { %v7297_v41 = vsel %vm342_vm0, %v9208_v60, %v3198_v48 }
 0x196   :  { %v1785_v0 = vpop.permute.xlu1 %1784 }
 0x197   :  { %v1944_v34 = vmul.f32 %v6883_v49, %v1785_v0  ;;  %v1107_v1 = vpop.permute.xlu0 %1106 }
 0x199   :  { %v2008_v4 = vadd.f32 %v1944_v34, %v1295_v45 }
 0x19a   :  { %v1795_v36 = vpop.permute.xlu1 %1794 }
 0x19b   :  { %v2079_v42 = vadd.f32 %v6913_v27, %v2008_v4  ;;  %v1946_v11 = vmul.f32 %v6883_v49, %v1795_v36  ;;  %v1790_v62 = vpop.permute.xlu0 %1789  ;;  %v845_v4 = vmul.f32 %v6871_v61, %v710_v58  ;;  %v1300_v58 = vadd.f32 %v1236_v37, %v844_v39 }
 0x19c   :  { %v1945_v21 = vmul.f32 %v6883_v49, %v1790_v62 }
 0x19d   :  { %v2143_v30 = vmax.f32 %v2079_v42, 0.0  ;;  %v2010_v31 = vadd.f32 %v1946_v11, %v1297_v23  ;;  %v1301_v23 = vadd.f32 %v1237_v57, %v845_v4 }
 0x19e   :  { %v2009_v0 = vadd.f32 %v1945_v21, %v1296_v14  ;;  %v1805_v45 = vpop.permute.xlu1 %1804 }
 0x19f   :  { %v2207_v34 = vrot.slane %v2143_v30, 1  ;;  %v2081_v51 = vadd.f32 %v6913_v27, %v2010_v31  ;;  %v1948_v12 = vmul.f32 %v6883_v49, %v1805_v45  ;;  %v1800_v29 = vpop.permute.xlu0 %1799 }
 0x1a0   :  { %v2080_v22 = vadd.f32 %v6913_v27, %v2009_v0  ;;  %v1947_v59 = vmul.f32 %v6883_v49, %v1800_v29 }
 0x1a1   :  { %v2252_v25 = vsel %vm1446_vm3, %v7248_v6, %v2207_v34  ;;  %v2145_v3 = vmax.f32 %v2081_v51, 0.0  ;;  %v2012_v36 = vadd.f32 %v1948_v12, %v1299_v8  ;;  %v1238_v6 = vmul.f32 %v6862_v63, %v1107_v1 }
 0x1a2   :  { %v2334_v42 = vmax.f32 %v2142_v43, %v2252_v25  ;;  %v2144_v11 = vmax.f32 %v2080_v22, 0.0  ;;  %v2011_v62 = vadd.f32 %v1947_v59, %v1298_v15  ;;  %v1815_v14 = vpop.permute.xlu1 %1814  ;;  %v846_v43 = vmul.f32 %v6871_v61, %v7280_v13 }
 0x1a3   :  { %v2209_v47 = vrot.slane %v2145_v3, 1  ;;  %v2083_v53 = vadd.f32 %v6913_v27, %v2012_v36  ;;  %v1950_v21 = vmul.f32 %v6883_v49, %v1815_v14  ;;  %v1810_v55 = vpop.permute.xlu0 %1809 }
 0x1a4   :  { %2399 = vst.msk [vmem:[#allocation2 + $0x140] sm:$0xff] %vm2358_vm10, %v2334_v42  ;;  %v2208_v31 = vrot.slane %v2144_v11, 1  ;;  %v2082_v32 = vadd.f32 %v6913_v27, %v2011_v62  ;;  %v1949_v28 = vmul.f32 %v6883_v49, %v1810_v55  ;;  %v1302_v59 = vadd.f32 %v1238_v6, %v846_v43 }
 0x1a5   :  { %v2147_v8 = vmax.f32 %v2083_v53, 0.0  ;;  %v2014_v57 = vadd.f32 %v1950_v21, %v1301_v23 }
 0x1a6   :  { %v2250_v0 = vsel %vm1446_vm3, %v2208_v31, %v2209_v47  ;;  %v2251_v45 = vsel %vm1446_vm3, %v2207_v34, %v2208_v31  ;;  %v2146_v37 = vmax.f32 %v2082_v32, 0.0  ;;  %v2013_v51 = vadd.f32 %v1949_v28, %v1300_v58  ;;  %v7339_v12 = vpop.permute.xlu1 %719 }
 0x1a7   :  { %v2335_v1 = vmax.f32 %v2143_v30, %v2251_v45  ;;  %v2336_v29 = vmax.f32 %v2144_v11, %v2250_v0  ;;  %v2211_v15 = vrot.slane %v2147_v8, 1  ;;  %v2085_v4 = vadd.f32 %v6913_v27, %v2014_v57  ;;  %v1820_v22 = vpop.permute.xlu0 %1819 }
 0x1a8   :  { %v2210_v13 = vrot.slane %v2146_v37, 1  ;;  %v2084_v39 = vadd.f32 %v6913_v27, %v2013_v51  ;;  %v1951_v25 = vmul.f32 %v6883_v49, %v1820_v22  ;;  %v847_v18 = vmul.f32 %v6871_v61, %v7339_v12 }
 0x1a9   :  { %2400 = vst.msk [vmem:[#allocation2 + $0x148] sm:$0xff] %vm2358_vm10, %v2335_v1  ;;  %2401 = vst.msk [vmem:[#allocation2 + $0x150] sm:$0xff] %vm2358_vm10, %v2336_v29  ;;  %v2149_v34 = vmax.f32 %v2085_v4, 0.0 }
 0x1aa   :  { %v2248_v36 = vsel %vm1446_vm3, %v2210_v13, %v2211_v15  ;;  %v2249_v30 = vsel %vm1446_vm3, %v2209_v47, %v2210_v13  ;;  %v2148_v23 = vmax.f32 %v2084_v39, 0.0  ;;  %v2015_v42 = vadd.f32 %v1951_v25, %v1302_v59  ;;  %v730_v11 = vpop.permute.xlu1 %729  ;;  %v7376_v59 = vpop.f32.mrf.mxu0 }
 0x1ab   :  { %v2337_v62 = vmax.f32 %v2145_v3, %v2249_v30  ;;  %v2338_v14 = vmax.f32 %v2146_v37, %v2248_v36  ;;  %v2213_v58 = vrot.slane %v2149_v34, 1  ;;  %v725_v53 = vpop.permute.xlu0 %724 }
 0x1ac   :  { %v2212_v21 = vrot.slane %v2148_v23, 1  ;;  %v7351_v55 = vadd.f32 %v6913_v27, %v2015_v42  ;;  %v848_v60 = vmul.f32 %v6871_v61, %v725_v53 }
 0x1ad   :  { %2402 = vst.msk [vmem:[#allocation2 + $0x158] sm:$0xff] %vm2358_vm10, %v2337_v62  ;;  %2403 = vst.msk [vmem:[#allocation2 + $0x160] sm:$0xff] %vm2358_vm10, %v2338_v14 }
 0x1ae   :  { %v2246_v6 = vsel %vm1446_vm3, %v2212_v21, %v2213_v58  ;;  %v2247_v47 = vsel %vm1446_vm3, %v2211_v15, %v2212_v21  ;;  %v9211_v31 = vmax.f32 %v7351_v55, 0.0  ;;  %v1112_v3 = vpop.permute.xlu1 %1111 }
 0x1af   :  { %v2339_v32 = vmax.f32 %v2147_v8, %v2247_v47  ;;  %v2340_v28 = vmax.f32 %v2148_v23, %v2246_v6  ;;  %v735_v43 = vpop.permute.xlu0 %734 }
 0x1b0   :  { %v7362_v57 = vrot.slane %v9211_v31, 1  ;;  %v2463_v1 = vld [vmem:[#allocation2 + $0x140] ss:$2 sm:$0xff] }
 0x1b1   :  { %2404 = vst.msk [vmem:[#allocation2 + $0x168] sm:$0xff] %vm2358_vm10, %v2339_v32  ;;  %2405 = vst.msk [vmem:[#allocation2 + $0x170] sm:$0xff] %vm2358_vm10, %v2340_v28  ;;  %v1239_v32 = vmul.f32 %v6862_v63, %v1112_v3 }
 0x1b2   :  { %v2245_v0 = vsel %vm1446_vm3, %v2213_v58, %v7362_v57  ;;  %v1122_v45 = vpop.permute.xlu1 %1121 }
 0x1b3   :  { %v2341_v37 = vmax.f32 %v2149_v34, %v2245_v0  ;;  %v1117_v51 = vpop.permute.xlu0 %1116 }
 0x1b4   :  { %v2465_v29 = vld [vmem:[#allocation2 + $0x150] ss:$2 sm:$0xff]  ;;  %v1240_v3 = vmul.f32 %v6862_v63, %v1117_v51 }
 0x1b5   :  { %2406 = vst.msk [vmem:[#allocation2 + $0x178] sm:$0xff] %vm2358_vm10, %v2341_v37  ;;  %v7370_v8 = vpack.c.bf16 %v2465_v29, %v2463_v1  ;;  %v1241_v1 = vmul.f32 %v6862_v63, %v1122_v45 }
 0x1b6   :  { %v740_v15 = vpop.permute.xlu1 %739  ;;  %v1304_v63 = vadd.f32 %v1240_v3, %v848_v60 }
 0x1b7   :  { %5441 = vmatprep.mubr.msk.bf16.mxu0 %vm2358_vm10, %v7370_v8  ;;  %5481 = vmatprep.mubr.msk.bf16.mxu1 %vm2358_vm10, %v7370_v8  ;;  %v1127_v4 = vpop.permute.xlu0 %1126 }
 0x1b8   :  { %v2467_v39 = vld [vmem:[#allocation2 + $0x160] ss:$2 sm:$0xff] }
 0x1ba   :  { %v750_v22 = vpop.permute.xlu1 %749 }
 0x1bb   :  { %v745_v13 = vpop.permute.xlu0 %744 }
 0x1bc   :  { %v2469_v25 = vld [vmem:[#allocation2 + $0x170] ss:$2 sm:$0xff] }
 0x1bd   :  { %v7378_v34 = vpop.f32.mrf.mxu0  ;;  %v7380_v36 = vpack.c.bf16 %v2469_v25, %v2467_v39  ;;  %v849_v25 = vmul.f32 %v6871_v61, %v730_v11  ;;  %v7430_v11 = vld [vmem:[%s9198_s1] ss:$0 sm:$0xff] }
 0x1be   :  { %v1132_v30 = vpop.permute.xlu1 %1131  ;;  %v9209_v58 = vrot.slane %v7378_v34, 7  ;;  %v851_v61 = vmul.f32 %v7430_v11, %v740_v15  ;;  %v7442_v15 = vld [vmem:[%s9198_s1 + $0x2] ss:$0 sm:$0xff] }
 0x1bf   :  { %5442 = vmatmul.mubr.msk.bf16.gmra.mxu0 %vm2358_vm10, %v7380_v36  ;;  %5482 = vmatmul.mubr.msk.bf16.gmra.mxu1 %vm2358_vm10, %v7380_v36  ;;  %v7386_v23 = vpop.permute.xlu0 %754  ;;  %v7388_v42 = vpop.f32.mrf.mxu0 }
 0x1c0   :  { %v9207_v62 = vrot.slane %v7388_v42, 7 }
 0x1c1   :  { %v7391_v14 = vpop.f32.mrf.mxu0 }
 0x1c2   :  { %v7400_v21 = vsel %vm342_vm0, %v3198_v48, %v9207_v62  ;;  %v1142_v6 = vpop.permute.xlu1 %1141  ;;  %v9210_v47 = vrot.slane %v7391_v14, 7  ;;  %v1303_v48 = vadd.f32 %v1239_v32, %v847_v18  ;;  %v1305_v18 = vadd.f32 %v1241_v1, %v849_v25 }
 0x1c3   :  { %v1137_v28 = vpop.permute.xlu0 %1136  ;;  %v850_v1 = vmul.f32 %v7430_v11, %v735_v43  ;;  %v853_v43 = vmul.f32 %v7430_v11, %v750_v22 }
 0x1c4   :  { %v7410_v0 = vsel %vm342_vm0, %v9209_v58, %v9210_v47  ;;  %v7422_v58 = vld [vmem:[%s9198_s1 + $0x1] ss:$0 sm:$0xff] }
 0x1c5   :  { %9259 = vst [vmem:[#allocation7_spill] sm:$0xff] %v7410_v0  ;;  %v1243_v12 = vmul.f32 %v7422_v58, %v1132_v30  ;;  %v1242_v53 = vmul.f32 %v7422_v58, %v1127_v4  ;;  %v1244_v3 = vmul.f32 %v7422_v58, %v1137_v28  ;;  %v852_v28 = vmul.f32 %v7430_v11, %v745_v13 }
 0x1c6   :  { %v1825_v37 = vpop.permute.xlu1 %1824 }
 0x1c7   :  { %v1952_v29 = vmul.f32 %v6883_v49, %v1825_v37  ;;  %v1147_v39 = vpop.permute.xlu0 %1146  ;;  %v1308_v22 = vadd.f32 %v1244_v3, %v852_v28  ;;  %v854_v3 = vmul.f32 %v7430_v11, %v7386_v23 }
 0x1c9   :  { %v2016_v62 = vadd.f32 %v1952_v29, %v1303_v48  ;;  %v1245_v29 = vmul.f32 %v7422_v58, %v1142_v6 }
 0x1ca   :  { %v1835_v32 = vpop.permute.xlu1 %1834 }
 0x1cb   :  { %v2087_v45 = vadd.f32 %v6913_v27, %v2016_v62  ;;  %v1954_v37 = vmul.f32 %v6883_v49, %v1835_v32  ;;  %v1830_v47 = vpop.permute.xlu0 %1829  ;;  %v1307_v62 = vadd.f32 %v1243_v12, %v851_v61  ;;  %v9260_v61 = vmax.f32 %v7351_v55, 0.0 }
 0x1cc   :  { %v1953_v51 = vmul.f32 %v6883_v49, %v1830_v47  ;;  %v1306_v47 = vadd.f32 %v1242_v53, %v850_v1  ;;  %v1246_v55 = vmul.f32 %v7422_v58, %v1147_v39 }
 0x1cd   :  { %v2151_v30 = vmax.f32 %v2087_v45, 0.0  ;;  %v2018_v48 = vadd.f32 %v1954_v37, %v1305_v18 }
 0x1ce   :  { %v2017_v25 = vadd.f32 %v1953_v51, %v1304_v63  ;;  %v1845_v60 = vpop.permute.xlu1 %1844  ;;  %v1309_v63 = vadd.f32 %v1245_v29, %v853_v43 }
 0x1cf   :  { %v2215_v32 = vrot.slane %v2151_v30, 1  ;;  %v2089_v31 = vadd.f32 %v6913_v27, %v2018_v48  ;;  %v1956_v49 = vmul.f32 %v7442_v15, %v1845_v60  ;;  %v1840_v4 = vpop.permute.xlu0 %1839 }
 0x1d0   :  { %v2088_v6 = vadd.f32 %v6913_v27, %v2017_v25  ;;  %v1955_v12 = vmul.f32 %v7442_v15, %v1840_v4  ;;  %v7457_v27 = vld [vmem:[%s9199_s2] ss:$0 sm:$0xff] }
 0x1d1   :  { %v2244_v18 = vsel %vm1446_vm3, %v7362_v57, %v2215_v32  ;;  %v2153_v45 = vmax.f32 %v2089_v31, 0.0  ;;  %v2020_v37 = vadd.f32 %v1956_v49, %v1307_v62 }
 0x1d2   :  { %v2342_v51 = vmax.f32 %v9260_v61, %v2244_v18  ;;  %v2152_v48 = vmax.f32 %v2088_v6, 0.0  ;;  %v2019_v53 = vadd.f32 %v1955_v12, %v1306_v47  ;;  %v1855_v1 = vpop.permute.xlu1 %1854 }
 0x1d3   :  { %v2217_v60 = vrot.slane %v2153_v45, 1  ;;  %v2091_v13 = vadd.f32 %v7457_v27, %v2020_v37  ;;  %v1958_v57 = vmul.f32 %v7442_v15, %v1855_v1  ;;  %v1850_v31 = vpop.permute.xlu0 %1849 }
 0x1d4   :  { %2407 = vst.msk [vmem:[#allocation2 + $0x180] sm:$0xff] %vm2358_vm10, %v2342_v51  ;;  %v2216_v62 = vrot.slane %v2152_v48, 1  ;;  %v2090_v29 = vadd.f32 %v7457_v27, %v2019_v53  ;;  %v1957_v25 = vmul.f32 %v7442_v15, %v1850_v31  ;;  %v1310_v53 = vadd.f32 %v1246_v55, %v854_v3 }
 0x1d5   :  { %v2155_v49 = vmax.f32 %v2091_v13, 0.0  ;;  %v2022_v4 = vadd.f32 %v1958_v57, %v1309_v63 }
 0x1d6   :  { %v2242_v47 = vsel %vm1446_vm3, %v2216_v62, %v2217_v60  ;;  %v2243_v43 = vsel %vm1446_vm3, %v2215_v32, %v2216_v62  ;;  %v2154_v6 = vmax.f32 %v2090_v29, 0.0  ;;  %v2021_v12 = vadd.f32 %v1957_v25, %v1308_v22  ;;  %v760_v28 = vpop.permute.xlu1 %759 }
 0x1d7   :  { %v2343_v39 = vmax.f32 %v2151_v30, %v2243_v43  ;;  %v2344_v18 = vmax.f32 %v2152_v48, %v2242_v47  ;;  %v2219_v37 = vrot.slane %v2155_v49, 1  ;;  %v2093_v61 = vadd.f32 %v7457_v27, %v2022_v4  ;;  %v1860_v51 = vpop.permute.xlu0 %1859 }
 0x1d8   :  { %v2218_v1 = vrot.slane %v2154_v6, 1  ;;  %v2092_v23 = vadd.f32 %v7457_v27, %v2021_v12  ;;  %v1959_v63 = vmul.f32 %v7442_v15, %v1860_v51 }
 0x1d9   :  { %2408 = vst.msk [vmem:[#allocation2 + $0x188] sm:$0xff] %vm2358_vm10, %v2343_v39  ;;  %2409 = vst.msk [vmem:[#allocation2 + $0x190] sm:$0xff] %vm2358_vm10, %v2344_v18  ;;  %v2157_v32 = vmax.f32 %v2093_v61, 0.0 }
 0x1da   :  { %v2240_v22 = vsel %vm1446_vm3, %v2218_v1, %v2219_v37  ;;  %v2241_v30 = vsel %vm1446_vm3, %v2217_v60, %v2218_v1  ;;  %v2156_v48 = vmax.f32 %v2092_v23, 0.0  ;;  %v2023_v13 = vadd.f32 %v1959_v63, %v1310_v53 }
 0x1db   :  { %v770_v57 = vpop.permute.xlu1 %769  ;;  %v2345_v31 = vmax.f32 %v2153_v45, %v2241_v30  ;;  %v2346_v55 = vmax.f32 %v2154_v6, %v2240_v22  ;;  %v2221_v62 = vrot.slane %v2157_v32, 1  ;;  %v765_v29 = vpop.permute.xlu0 %764 }
 0x1dc   :  { %v2220_v25 = vrot.slane %v2156_v48, 1  ;;  %v7481_v3 = vadd.f32 %v7457_v27, %v2023_v13  ;;  %v7506_v30 = vpop.f32.mrf.mxu0 }
 0x1dd   :  { %2410 = vst.msk [vmem:[#allocation2 + $0x198] sm:$0xff] %vm2358_vm10, %v2345_v31  ;;  %2411 = vst.msk [vmem:[#allocation2 + $0x1a0] sm:$0xff] %vm2358_vm10, %v2346_v55 }
 0x1de   :  { %v2238_v4 = vsel %vm1446_vm3, %v2220_v25, %v2221_v62  ;;  %v2239_v60 = vsel %vm1446_vm3, %v2219_v37, %v2220_v25  ;;  %v9212_v47 = vmax.f32 %v7481_v3, 0.0 }
 0x1df   :  { %v1152_v45 = vpop.permute.xlu1 %1151  ;;  %v2347_v43 = vmax.f32 %v2155_v49, %v2239_v60  ;;  %v2348_v6 = vmax.f32 %v2156_v48, %v2238_v4  ;;  %v775_v12 = vpop.permute.xlu0 %774 }
 0x1e0   :  { %v7492_v39 = vrot.slane %v9212_v47, 1  ;;  %v2471_v53 = vld [vmem:[#allocation2 + $0x180] ss:$2 sm:$0xff]  ;;  %v1247_v25 = vmul.f32 %v7422_v58, %v1152_v45 }
 0x1e1   :  { %2412 = vst.msk [vmem:[#allocation2 + $0x1a8] sm:$0xff] %vm2358_vm10, %v2347_v43  ;;  %2413 = vst.msk [vmem:[#allocation2 + $0x1b0] sm:$0xff] %vm2358_vm10, %v2348_v6  ;;  %v855_v6 = vmul.f32 %v7430_v11, %v760_v28 }
 0x1e2   :  { %v2237_v18 = vsel %vm1446_vm3, %v2221_v62, %v7492_v39 }
 0x1e3   :  { %v1162_v61 = vpop.permute.xlu1 %1161  ;;  %v2349_v37 = vmax.f32 %v2157_v32, %v2237_v18  ;;  %v1157_v51 = vpop.permute.xlu0 %1156 }
 0x1e4   :  { %v2473_v1 = vld [vmem:[#allocation2 + $0x190] ss:$2 sm:$0xff]  ;;  %v1249_v47 = vmul.f32 %v7422_v58, %v1162_v61  ;;  %v1248_v28 = vmul.f32 %v7422_v58, %v1157_v51 }
 0x1e5   :  { %2414 = vst.msk [vmem:[#allocation2 + $0x1b8] sm:$0xff] %vm2358_vm10, %v2349_v37  ;;  %v7500_v49 = vpack.c.bf16 %v2473_v1, %v2471_v53  ;;  %v9261_v53 = vrot.slane %v7391_v14, 7 }
 0x1e7   :  { %v780_v23 = vpop.permute.xlu1 %779  ;;  %5445 = vmatprep.mubr.msk.bf16.mxu0 %vm2358_vm10, %v7500_v49  ;;  %5485 = vmatprep.mubr.msk.bf16.mxu1 %vm2358_vm10, %v7500_v49  ;;  %v1167_v63 = vpop.permute.xlu0 %1166 }
 0x1e8   :  { %v2475_v32 = vld [vmem:[#allocation2 + $0x1a0] ss:$2 sm:$0xff] }
 0x1eb   :  { %v790_v22 = vpop.permute.xlu1 %789  ;;  %v785_v48 = vpop.permute.xlu0 %784 }
 0x1ec   :  { %v2477_v13 = vld [vmem:[#allocation2 + $0x1b0] ss:$2 sm:$0xff] }
 0x1ed   :  { %v5431_v31 = vpop.f32.mrf.mxu0  ;;  %v7508_v55 = vpack.c.bf16 %v2477_v13, %v2475_v32  ;;  %v1311_v13 = vadd.f32 %v1247_v25, %v855_v6  ;;  %v856_v25 = vmul.f32 %v7430_v11, %v765_v29  ;;  %v859_v29 = vmul.f32 %v7430_v11, %v780_v23 }
 0x1ee   :  { %v3205_v37 = vrot.slane %v5431_v31, 7 }
 0x1ef   :  { %v1177_v62 = vpop.permute.xlu1 %1176  ;;  %5446 = vmatmul.mubr.msk.bf16.gmra.mxu0 %vm2358_vm10, %v7508_v55  ;;  %5486 = vmatmul.mubr.msk.bf16.gmra.mxu1 %vm2358_vm10, %v7508_v55  ;;  %v1172_v4 = vpop.permute.xlu0 %1171 }
 0x1f0   :  { %v2648_v60 = vpop.f32.mrf.mxu0  ;;  %v1251_v61 = vmul.f32 %v7422_v58, %v1172_v4  ;;  %v1250_v4 = vmul.f32 %v7422_v58, %v1167_v63  ;;  %v1252_v63 = vmul.f32 %v7422_v58, %v1177_v62 }
 0x1f1   :  { %v3203_v43 = vrot.slane %v2648_v60, 7 }
 0x1f2   :  { %v7516_v18 = vpop.f32.mrf.mxu0 }
 0x1f3   :  { %v7522_v1 = vsel %vm342_vm0, %v9261_v53, %v3203_v43  ;;  %v1865_v45 = vpop.permute.xlu1 %1864  ;;  %v9218_v32 = vrot.slane %v7516_v18, 7  ;;  %v1182_v60 = vpop.permute.xlu0 %1181  ;;  %v857_v53 = vmul.f32 %v7430_v11, %v770_v57 }
 0x1f4   :  { %v1960_v40 = vmul.f32 %v7442_v15, %v1865_v45  ;;  %v2651_v44 = vpop.f32.mrf.mxu0 }
 0x1f5   :  { %v7532_v14 = vsel %vm342_vm0, %v3205_v37, %v9218_v32  ;;  %v3204_v31 = vrot.slane %v2651_v44, 7  ;;  %v1313_v0 = vadd.f32 %v1249_v47, %v857_v53 }
 0x1f6   :  { %9262 = vst [vmem:[#allocation8_spill] sm:$0xff] %v7532_v14  ;;  %v2024_v10 = vadd.f32 %v1960_v40, %v1311_v13  ;;  %v1312_v40 = vadd.f32 %v1248_v28, %v856_v25  ;;  %v858_v14 = vmul.f32 %v7430_v11, %v775_v12  ;;  %v861_v12 = vmul.f32 %v7430_v11, %v790_v22 }
 0x1f7   :  { %v7539_v6 = vsel %vm342_vm0, %v3204_v31, %v3205_v37  ;;  %v7543_v51 = vsel %vm342_vm0, %v3203_v43, %v3204_v31  ;;  %v1875_v45 = vpop.permute.xlu1 %1874  ;;  %v1870_v57 = vpop.permute.xlu0 %1869  ;;  %v1315_v43 = vadd.f32 %v1251_v61, %v859_v29 }
 0x1f8   :  { %9263 = vst [vmem:[#allocation9_spill] sm:$0xff] %v7539_v6  ;;  %9264 = vst [vmem:[#allocation10_spill] sm:$0xff] %v7543_v51  ;;  %v2095_v32 = vadd.f32 %v7457_v27, %v2024_v10  ;;  %v1962_v44 = vmul.f32 %v7442_v15, %v1875_v45  ;;  %v1961_v13 = vmul.f32 %v7442_v15, %v1870_v57 }
 0x1f9   :  { %v1253_v10 = vmul.f32 %v7422_v58, %v1182_v60  ;;  %v1314_v23 = vadd.f32 %v1250_v4, %v858_v14 }
 0x1fa   :  { %v2159_v37 = vmax.f32 %v2095_v32, 0.0  ;;  %v2026_v6 = vadd.f32 %v1962_v44, %v1313_v0  ;;  %v2025_v31 = vadd.f32 %v1961_v13, %v1312_v40 }
 0x1fb   :  { %v1885_v51 = vpop.permute.xlu1 %1884  ;;  %v1880_v25 = vpop.permute.xlu0 %1879  ;;  %v1317_v62 = vadd.f32 %v1253_v10, %v861_v12 }
 0x1fc   :  { %v2223_v47 = vrot.slane %v2159_v37, 1  ;;  %v2097_v53 = vadd.f32 %v7457_v27, %v2026_v6  ;;  %v1964_v28 = vmul.f32 %v7442_v15, %v1885_v51  ;;  %v2096_v45 = vadd.f32 %v7457_v27, %v2025_v31 }
 0x1fd   :  { %v1963_v0 = vmul.f32 %v7442_v15, %v1880_v25  ;;  %v860_v6 = vmul.f32 %v7430_v11, %v785_v48  ;;  %v9265_v51 = vmax.f32 %v7481_v3, 0.0 }
 0x1fe   :  { %v2236_v32 = vsel %vm1446_vm3, %v7492_v39, %v2223_v47  ;;  %v2161_v61 = vmax.f32 %v2097_v53, 0.0  ;;  %v2028_v60 = vadd.f32 %v1964_v28, %v1315_v43  ;;  %v2160_v14 = vmax.f32 %v2096_v45, 0.0 }
 0x1ff   :  { %v2350_v44 = vmax.f32 %v9265_v51, %v2236_v32  ;;  %v2027_v57 = vadd.f32 %v1963_v0, %v1314_v23  ;;  %v1895_v58 = vpop.permute.xlu1 %1894  ;;  %v1890_v4 = vpop.permute.xlu0 %1889  ;;  %v1316_v13 = vadd.f32 %v1252_v63, %v860_v6 }
 0x200   :  { %v2225_v40 = vrot.slane %v2161_v61, 1  ;;  %v2099_v29 = vadd.f32 %v7457_v27, %v2028_v60  ;;  %v1966_v22 = vmul.f32 %v7442_v15, %v1895_v58  ;;  %v2224_v39 = vrot.slane %v2160_v14, 1 }
 0x201   :  { %2415 = vst.msk [vmem:[#allocation2 + $0x1c0] sm:$0xff] %vm2358_vm10, %v2350_v44  ;;  %v2098_v43 = vadd.f32 %v7457_v27, %v2027_v57  ;;  %v1965_v11 = vmul.f32 %v7442_v15, %v1890_v4 }
 0x202   :  { %v2163_v3 = vmax.f32 %v2099_v29, 0.0  ;;  %v2030_v48 = vadd.f32 %v1966_v22, %v1317_v62  ;;  %v2234_v31 = vsel %vm1446_vm3, %v2224_v39, %v2225_v40  ;;  %v2235_v10 = vsel %vm1446_vm3, %v2223_v47, %v2224_v39 }
 0x203   :  { %v2162_v53 = vmax.f32 %v2098_v43, 0.0  ;;  %v2029_v28 = vadd.f32 %v1965_v11, %v1316_v13  ;;  %v2351_v25 = vmax.f32 %v2159_v37, %v2235_v10  ;;  %v2352_v23 = vmax.f32 %v2160_v14, %v2234_v31 }
 0x204   :  { %v2227_v63 = vrot.slane %v2163_v3, 1  ;;  %v2101_v45 = vadd.f32 %v7457_v27, %v2030_v48  ;;  %v9266_v31 = vrot.slane %v7516_v18, 7 }
 0x205   :  { %v2226_v0 = vrot.slane %v2162_v53, 1  ;;  %v2100_v12 = vadd.f32 %v7457_v27, %v2029_v28  ;;  %2416 = vst.msk [vmem:[#allocation2 + $0x1c8] sm:$0xff] %vm2358_vm10, %v2351_v25  ;;  %2417 = vst.msk [vmem:[#allocation2 + $0x1d0] sm:$0xff] %vm2358_vm10, %v2352_v23  ;;  %v5676_v23 = vld [vmem:[%s9197_s3 + $0x78] sm:$0xff]  }
 0x206   :  { %v2165_v15 = vmax.f32 %v2101_v45, 0.0  ;;  %5533 = vmatprep.subr.bf16.mxu1 %v5676_v23 }
 0x207   :  { %v2232_v32 = vsel %vm1446_vm3, %v2226_v0, %v2227_v63  ;;  %v2233_v47 = vsel %vm1446_vm3, %v2225_v40, %v2226_v0  ;;  %v2164_v60 = vmax.f32 %v2100_v12, 0.0  ;;  %5534 = vmatpush3.bf16.msra.mxu1 %v5676_v23  ;;  %v5678_v0 = vld [vmem:[%s9197_s3 + $0xb8] sm:$0xff]  }
 0x208   :  { %v2353_v37 = vmax.f32 %v2161_v61, %v2233_v47  ;;  %v2354_v6 = vmax.f32 %v2162_v53, %v2232_v32  ;;  %v2229_v51 = vrot.slane %v2165_v15, 1  ;;  %5581 = vmatprep.subr.bf16.mxu0 %v5678_v0 }
 0x209   :  { %v2228_v44 = vrot.slane %v2164_v60, 1 }
 0x20a   :  { %2418 = vst.msk [vmem:[#allocation2 + $0x1d8] sm:$0xff] %vm2358_vm10, %v2353_v37  ;;  %2419 = vst.msk [vmem:[#allocation2 + $0x1e0] sm:$0xff] %vm2358_vm10, %v2354_v6  ;;  %v2293_v27 = vsel %vm1446_vm3, %v2229_v51, %v6215_v46  ;;  %v5680_v6 = vld [vmem:[%s9197_s3 + $0xb0] sm:$0xff]  }
 0x20b   :  { %v2357_v14 = vmax.f32 %v2165_v15, %v2293_v27  ;;  %v2230_v57 = vsel %vm1446_vm3, %v2228_v44, %v2229_v51  ;;  %v2231_v58 = vsel %vm1446_vm3, %v2227_v63, %v2228_v44  ;;  %v5677_v63 = vld [vmem:[%s9197_s3 + $0x70] sm:$0xff]  }
 0x20c   :  { %v2355_v62 = vmax.f32 %v2163_v3, %v2231_v58  ;;  %v2356_v61 = vmax.f32 %v2164_v60, %v2230_v57  ;;  %v2479_v40 = vld [vmem:[#allocation2 + $0x1c0] ss:$2 sm:$0xff]  ;;  %5535 = vmatprep.subr.bf16.mxu1 %v5677_v63 }
 0x20d   :  { %2422 = vst.msk [vmem:[#allocation2 + $0x1f8] sm:$0xff] %vm2358_vm10, %v2357_v14  ;;  %5536 = vmatpush3.bf16.msra.mxu1 %v5677_v63  ;;  %v5679_v58 = vld [vmem:[%s9197_s3 + $0x68] sm:$0xff]  }
 0x20e   :  { %2420 = vst.msk [vmem:[#allocation2 + $0x1e8] sm:$0xff] %vm2358_vm10, %v2355_v62  ;;  %2421 = vst.msk [vmem:[#allocation2 + $0x1f0] sm:$0xff] %vm2358_vm10, %v2356_v61  ;;  %5537 = vmatprep.subr.bf16.mxu1 %v5679_v58  ;;  %v7692_v62 = vpop.f32.mrf.mxu1  ;;  %v5681_v61 = vld [vmem:[%s9197_s3 + $0xa8] sm:$0xff]  }
 0x211   :  { %v2481_v29 = vld [vmem:[#allocation2 + $0x1d0] ss:$2 sm:$0xff]  ;;  %5538 = vmatpush3.bf16.msra.mxu1 %v5679_v58  ;;  %v7752_v58 = vadd.s32 96, %v5755_v5 }
 0x212   :  { %v2500_v22 = vpack.c.bf16 %v2481_v29, %v2479_v40  ;;  %v7697_v40 = vpop.f32.mrf.mxu1  ;;  %v5682_v29 = vld [vmem:[%s9197_s3 + $0x60] sm:$0xff]  }
 0x213   :  { %5539 = vmatprep.subr.bf16.mxu1 %v5682_v29  ;;  %9270 = vst [vmem:[#allocation14_spill] sm:$0xff] %v7752_v58 }
 0x214   :  { %5449 = vmatprep.mubr.msk.bf16.mxu0 %vm2358_vm10, %v2500_v22  ;;  %5489 = vmatprep.mubr.msk.bf16.mxu1 %vm2358_vm10, %v2500_v22 }
 0x215   :  { %v2483_v46 = vld [vmem:[#allocation2 + $0x1e0] ss:$2 sm:$0xff]  ;;  %v2485_v4 = vld [vmem:[#allocation2 + $0x1f0] ss:$2 sm:$0xff]  ;;  %5540 = vmatpush3.bf16.msra.mxu1 %v5682_v29  ;;  %v3196_v29 = vrot.slane %v7376_v59, 7 }
 0x216   :  { %v2501_v13 = vpack.c.bf16 %v2485_v4, %v2483_v46  ;;  %v5464_v46 = vpop.f32.mrf.mxu1 }
 0x218   :  { %5450 = vmatmul.mubr.msk.bf16.gmra.mxu0 %vm2358_vm10, %v2501_v13  ;;  %5490 = vmatmul.mubr.msk.bf16.gmra.mxu1 %vm2358_vm10, %v2501_v13  ;;  %v2813_v4 = vpop.f32.mrf.mxu1 }
 0x219   :  { %5501 = vmatprep.mubr.msk.bf16.mxu0 %vm2358_vm10, %v6322_v2 }
 0x21f   :  { %v5435_v39 = vpop.f32.mrf.mxu0 }
 0x220   :  { %5502 = vmatmul.mubr.msk.bf16.vlgmr.msra.gmra.mxu0 %vm2358_vm10, %v6363_v35  ;;  %v3209_v48 = vrot.slane %v5435_v39, 7 }
 0x221   :  { %5505 = vmatprep.mubr.msk.bf16.mxu0 %vm2358_vm10, %v6550_v16  ;;  %v2664_v43 = vpop.f32.mrf.mxu0  ;;  %5582 = vmatpush3.bf16.msra.mxu0 %v5678_v0 }
 0x222   :  { %v3207_v11 = vrot.slane %v2664_v43, 7  ;;  %5583 = vmatprep.subr.bf16.mxu0 %v5680_v6 }
 0x223   :  { %v5436_v3 = vpop.f32.mrf.mxu0 }
 0x224   :  { %v7607_v10 = vsel %vm342_vm0, %v9266_v31, %v3207_v11  ;;  %v3210_v53 = vrot.slane %v5436_v3, 7 }
 0x225   :  { %v2667_v28 = vpop.f32.mrf.mxu0  ;;  %5584 = vmatpush3.bf16.msra.mxu0 %v5680_v6  ;;  %v7746_v6 = vadd.s32 32, %v5755_v5 }
 0x226   :  { %v7611_v2 = vsel %vm342_vm0, %v3209_v48, %v3210_v53  ;;  %v3208_v35 = vrot.slane %v2667_v28, 7  ;;  %5585 = vmatprep.subr.bf16.mxu0 %v5681_v61 }
 0x227   :  { %9269 = vst [vmem:[#allocation13_spill] sm:$0xff] %v7746_v6 }
 0x228   :  { %v7615_v16 = vsel %vm342_vm0, %v3208_v35, %v3209_v48  ;;  %v7619_v25 = vsel %vm342_vm0, %v3207_v11, %v3208_v35  ;;  %5506 = vmatmul.mubr.msk.bf16.gmra.mxu0 %vm2358_vm10, %v6591_v54 }
 0x229   :  { %5509 = vmatprep.mubr.msk.bf16.mxu0 %vm2358_vm10, %v6782_v52  ;;  %5586 = vmatpush3.bf16.msra.mxu0 %v5681_v61 }
 0x230   :  { %5510 = vmatmul.mubr.msk.bf16.gmra.mxu0 %vm2358_vm10, %v6823_v20 }
 0x231   :  { %5513 = vmatprep.mubr.msk.bf16.mxu0 %vm2358_vm10, %v7037_v50 }
 0x238   :  { %5514 = vmatmul.mubr.msk.bf16.gmra.mxu0 %vm2358_vm10, %v7078_v7 }
 0x239   :  { %5517 = vmatprep.mubr.msk.bf16.mxu0 %vm2358_vm10, %v7260_v56 }
 0x240   :  { %5518 = vmatmul.mubr.msk.bf16.gmra.mxu0 %vm2358_vm10, %v7269_v38 }
 0x241   :  { %5521 = vmatprep.mubr.msk.bf16.mxu0 %vm2358_vm10, %v7370_v8 }
 0x248   :  { %5522 = vmatmul.mubr.msk.bf16.gmra.mxu0 %vm2358_vm10, %v7380_v36 }
 0x249   :  { %5525 = vmatprep.mubr.msk.bf16.mxu0 %vm2358_vm10, %v7500_v49 }
 0x24e   :  { %v5439_v54 = vpop.f32.mrf.mxu0 }
 0x24f   :  { %v3213_v7 = vrot.slane %v5439_v54, 7  ;;  %v7714_v54 = vld [vmem:[%s9197_s3 + $0x98] sm:$0xff]  }
 0x250   :  { %5526 = vmatmul.mubr.msk.bf16.gmra.mxu0 %vm2358_vm10, %v7508_v55  ;;  %v2680_v52 = vpop.f32.mrf.mxu0  ;;  %9267 = vst [vmem:[#allocation11_spill] sm:$0xff] %v7714_v54  ;;  %5557 = vmatprep.subr.bf16.mxu1 %v7714_v54  ;;  %v7797_v54 = vadd.f32 %v5464_v46, %v7297_v41 }
 0x251   :  { %5529 = vmatprep.mubr.msk.bf16.mxu0 %vm2358_vm10, %v2500_v22  ;;  %v3211_v20 = vrot.slane %v2680_v52, 7  ;;  %v5683_v22 = vld [vmem:[%s9197_s3 + $0xa0] sm:$0xff]  }
 0x252   :  { %v5440_v50 = vpop.f32.mrf.mxu0  ;;  %5587 = vmatprep.subr.bf16.mxu0 %v5683_v22 }
 0x253   :  { %v7646_v56 = vsel %vm342_vm0, %v3210_v53, %v3211_v20  ;;  %v3214_v38 = vrot.slane %v5440_v50, 7  ;;  %5588 = vmatpush3.bf16.msra.mxu0 %v5683_v22  ;;  %v3139_v22 = vand.u32 31, %v5800_v24  ;;  %v114_v24 = vadd.s32 224, %v5755_v5 }
 0x254   :  { %v2683_v8 = vpop.f32.mrf.mxu0 }
 0x255   :  { %v7650_v36 = vsel %vm342_vm0, %v3213_v7, %v3214_v38  ;;  %v3212_v49 = vrot.slane %v2683_v8, 7  ;;  %vm7776_vm6 = vcmp.eq.s32.totalorder %v3139_v22, 0  ;;  %v3147_v22 = vand.u32 31, %v5916_v19 }
 0x256   :  { %v3331_v19 = vsel %vm7776_vm6, 0.0, %v7522_v1 }
 0x257   :  { %v7654_v55 = vsel %vm342_vm0, %v3212_v49, %v3213_v7  ;;  %v7658_v18 = vsel %vm342_vm0, %v3211_v20, %v3212_v49  ;;  %vm7825_vm8 = vcmp.eq.s32.totalorder %v3147_v22, 0 }
 0x258   :  { %5530 = vmatmul.mubr.msk.bf16.gmra.mxu0 %vm2358_vm10, %v2501_v13  ;;  %v5467_v13 = vpop.f32.mrf.mxu1 }
 0x25a   :  { %v2826_v39 = vpop.f32.mrf.mxu1 }
 0x25c   :  { %v5468_v43 = vpop.f32.mrf.mxu1 }
 0x25e   :  { %v2829_v11 = vpop.f32.mrf.mxu1 }
 0x260   :  { %v7705_v3 = vpop.f32.mrf.mxu1 }
 0x262   :  { %v7707_v48 = vpop.f32.mrf.mxu1 }
 0x264   :  { %v7709_v53 = vpop.f32.mrf.mxu1 }
 0x27f   :  { %v5443_v45 = vpop.f32.mrf.mxu0 }
 0x280   :  { %v3217_v47 = vrot.slane %v5443_v45, 7 }
 0x281   :  { %v2696_v12 = vpop.f32.mrf.mxu0 }
 0x282   :  { %v3215_v15 = vrot.slane %v2696_v12, 7 }
 0x283   :  { %v5444_v32 = vpop.f32.mrf.mxu0 }
 0x284   :  { %v7672_v60 = vsel %vm342_vm0, %v3214_v38, %v3215_v15  ;;  %v3218_v37 = vrot.slane %v5444_v32, 7  ;;  %v7721_v38 = vpop.f32.mrf.mxu1 }
 0x285   :  { %v2699_v51 = vpop.f32.mrf.mxu0 }
 0x286   :  { %v7679_v44 = vsel %vm342_vm0, %v3217_v47, %v3218_v37  ;;  %v3216_v27 = vrot.slane %v2699_v51, 7  ;;  %v7727_v63 = vpop.f32.mrf.mxu1 }
 0x288   :  { %v7683_v14 = vsel %vm342_vm0, %v3216_v27, %v3217_v47  ;;  %v7687_v57 = vsel %vm342_vm0, %v3215_v15, %v3216_v27  ;;  %v2858_v12 = vpop.f32.mrf.mxu1  ;;  %v3135_v27 = vand.u32 31, %v7746_v6 }
 0x28a   :  { %v7737_v15 = vpop.f32.mrf.mxu1  ;;  %vm7760_vm5 = vcmp.eq.s32.totalorder %v3135_v27, 0 }
 0x28b   :  { %v3327_v27 = vsel %vm7760_vm5, 0.0, %v7400_v21 }
 0x28c   :  { %v7739_v32 = vpop.f32.mrf.mxu1 }
 0x28e   :  { %v7741_v47 = vpop.f32.mrf.mxu1 }
 0x2af   :  { %v5447_v31 = vpop.f32.mrf.mxu0 }
 0x2b0   :  { %v3221_v20 = vrot.slane %v5447_v31, 7 }
 0x2b1   :  { %v2712_v28 = vpop.f32.mrf.mxu0 }
 0x2b2   :  { %v3219_v35 = vrot.slane %v2712_v28, 7  ;;  %v9277_v28 = vrot.slane %v7388_v42, 7  ;;  %v7808_v42 = vadd.f32 %v3327_v27, %v2826_v39  ;;  %v9284_v27 = vld [vmem:[#allocation8_spill] sm:$0xff] }
 0x2b3   :  { %v5448_v52 = vpop.f32.mrf.mxu0 }
 0x2b4   :  { %v7718_v50 = vsel %vm342_vm0, %v3218_v37, %v3219_v35  ;;  %v3222_v7 = vrot.slane %v5448_v52, 7  ;;  %v7743_v37 = vpop.f32.mrf.mxu1  ;;  %v3195_v52 = vrot.slane %v7282_v26, 7  ;;  %v106_v26 = vadd.s32 160, %v5755_v5 }
 0x2b5   :  { %v2715_v8 = vpop.f32.mrf.mxu0 }
 0x2b6   :  { %v7725_v49 = vsel %vm342_vm0, %v3221_v20, %v3222_v7  ;;  %v3220_v23 = vrot.slane %v2715_v8, 7  ;;  %v7748_v51 = vpop.f32.mrf.mxu1  ;;  %v9273_v8 = vrot.slane %v7274_v17, 7  ;;  %v3257_v59 = vsel %vm342_vm0, %v3195_v52, %v3196_v29 }
 0x2b7   :  { %v7806_v17 = vadd.f32 %v3257_v59, %v2813_v4 }
 0x2b8   :  { %v7731_v45 = vsel %vm342_vm0, %v3220_v23, %v3221_v20  ;;  %v7735_v0 = vsel %vm342_vm0, %v3219_v35, %v3220_v23  ;;  %v7754_v61 = vpop.f32.mrf.mxu1  ;;  %v3200_v35 = vrot.slane %v7506_v30, 7  ;;  %v3143_v20 = vand.u32 31, %v7752_v58 }
 0x2b9   :  { %9268 = vst [vmem:[#allocation12_spill] sm:$0xff] %v7735_v0  ;;  %v3256_v23 = vsel %vm342_vm0, %v3196_v29, %v9273_v8  ;;  %v9276_v8 = vrot.slane %v7378_v34, 7  ;;  %v9286_v34 = vld [vmem:[#allocation9_spill] sm:$0xff] }
 0x2ba   :  { %v7758_v31 = vpop.f32.mrf.mxu1  ;;  %v3253_v21 = vsel %vm342_vm0, %v9277_v28, %v3200_v35  ;;  %v7800_v0 = vadd.f32 %v7692_v62, %v3256_v23  ;;  %vm7802_vm7 = vcmp.eq.s32.totalorder %v3143_v20, 0  ;;  %v9280_v28 = vld [vmem:[#allocation7_spill] sm:$0xff]  ;;  %v3151_v20 = vand.u32 31, %v106_v26 }
 0x2bb   :  { %v3252_v29 = vsel %vm342_vm0, %v3200_v35, %v9276_v8  ;;  %v7814_v41 = vadd.f32 %v5468_v43, %v9280_v28  ;;  %v7818_v62 = vadd.f32 %v3253_v21, %v2829_v11  ;;  %v3335_v4 = vsel %vm7802_vm7, 0.0, %v7607_v10 }
 0x2bc   :  { %v7781_v30 = vpop.f32.mrf.mxu1  ;;  %v7816_v46 = vadd.f32 %v5467_v13, %v3252_v29  ;;  %v7835_v13 = vadd.f32 %v3331_v19, %v7707_v48  ;;  %v3131_v43 = vand.u32 31, %v5755_v5  ;;  %v7840_v10 = vadd.s32 24, %v5755_v5  ;;  %v9285_v29 = vld [vmem:[#allocation6_spill] sm:$0xff] }
 0x2bd   :  { %v7844_v26 = vadd.f32 %v7709_v53, %v9284_v27  ;;  %v3155_v21 = vand.u32 31, %v9285_v29  ;;  %v7850_v48 = vadd.f32 %v7705_v3, %v9286_v34  ;;  %v7856_v28 = vadd.f32 %v3335_v4, %v2858_v12 }
 0x2be   :  { %v5484_v23 = vpop.f32.mrf.mxu1  ;;  %9283 = vst [vmem:[#allocation7_spill] sm:$0xff] %v7840_v10  ;;  %vm7858_vm9 = vcmp.eq.s32.totalorder %v3151_v20, 0  ;;  %v3159_v29 = vand.u32 31, %v114_v24  ;;  %vm7877_vm11 = vcmp.eq.s32.totalorder %v3131_v43, 0  ;;  %v3134_v24 = vand.u32 31, %v7840_v10 }
 0x2bf   :  { %v7889_v34 = vadd.s32 88, %v5755_v5  ;;  %v7897_v43 = vadd.f32 %v7727_v63, %v7615_v16  ;;  %vm7903_vm12 = vcmp.eq.s32.totalorder %v3155_v21, 0  ;;  %v7920_v16 = vadd.f32 %v7658_v18, %v7754_v61  ;;  %v9300_v18 = vld [vmem:[#allocation4_spill] sm:$0xff] }
 0x2c0   :  { %v2893_v53 = vpop.f32.mrf.mxu1  ;;  %v3343_v63 = vsel %vm7858_vm9, 0.0, %v7672_v60  ;;  %vm7927_vm13 = vcmp.eq.s32.totalorder %v3159_v29, 0  ;;  %vm7931_vm14 = vcmp.eq.s32.totalorder %v3134_v24, 31  ;;  %v3138_v61 = vand.u32 31, %v9300_v18  ;;  %v9305_v18 = vld [vmem:[#allocation12_spill] sm:$0xff] }
 0x2c1   :  { %v7946_v29 = vadd.s32 152, %v5755_v5  ;;  %v7949_v20 = vadd.f32 %v3343_v63, %v7781_v30  ;;  %v7957_v11 = vadd.f32 %v5484_v23, %v7679_v44  ;;  %v9301_v63 = vld [vmem:[#allocation5_spill] sm:$0xff] }
 0x2c2   :  { %v7875_v12 = vpop.f32.mrf.mxu1  ;;  %vm7984_vm15 = vcmp.eq.s32.totalorder %v3138_v61, 31 }
 0x2d8   :  { %v7783_v58 = vpop.f32.mrf.mxu0 }
 0x2da   :  { %v2728_v8 = vpop.f32.mrf.mxu0 }
 0x2db   :  { %v3223_v35 = vrot.slane %v2728_v8, 7  ;;  %v9287_v8 = vld [vmem:[#allocation10_spill] sm:$0xff] }
 0x2dc   :  { %v7820_v6 = vpop.f32.mrf.mxu0  ;;  %v7854_v19 = vadd.f32 %v9287_v8, %v7721_v38 }
 0x2dd   :  { %v7832_v1 = vsel %vm342_vm0, %v3222_v7, %v3223_v35  ;;  %v9224_v7 = vrot.slane %v7783_v58, 7  ;;  %v9292_v4 = vrot.slane %v7820_v6, 7 }
 0x2de   :  { %v2731_v59 = vpop.f32.mrf.mxu0 }
 0x2df   :  { %v3224_v22 = vrot.slane %v2731_v59, 7  ;;  %v3339_v59 = vsel %vm7825_vm8, 0.0, %v7646_v56  ;;  %v3258_v56 = vsel %vm342_vm0, %v9292_v4, %v3195_v52  ;;  %v7912_v4 = vadd.f32 %v7748_v51, %v7650_v36  ;;  %v2906_v36 = vpop.f32.mrf.mxu1 }
 0x2e0   :  { %v5503_v27 = vpop.f32.mrf.mxu0  ;;  %v7908_v8 = vadd.f32 %v3339_v59, %v7743_v37 }
 0x2e1   :  { %v7869_v3 = vsel %vm342_vm0, %v3224_v22, %v9224_v7  ;;  %v7873_v38 = vsel %vm342_vm0, %v3223_v35, %v3224_v22  ;;  %v7893_v35 = vadd.f32 %v7737_v15, %v7611_v2  ;;  %v7901_v22 = vadd.f32 %v7619_v25, %v7739_v32 }
 0x2e2   :  { %v7885_v39 = vpop.f32.mrf.mxu0  ;;  %v7916_v2 = vadd.f32 %v7741_v47, %v7654_v55  ;;  %v3323_v15 = vsel %vm7877_vm11, 0.0, %v3258_v56  ;;  %v3421_v32 = vrot.slane %v5503_v27, 1  ;;  %v7943_v27 = vld [vmem:[%s9200_s4] ss:$0 sm:$0xff]  ;;  %v7954_v7 = vadd.s32 216, %v5755_v5 }
 0x2e3   :  { %9293 = vst [vmem:[#allocation8_spill] sm:$0xff] %v7885_v39  ;;  %v9225_v60 = vrot.slane %v7885_v39, 1  ;;  %v3355_v56 = vadd.f32 %v3323_v15, %v7697_v40  ;;  %v3347_v40 = vsel %vm7903_vm12, 0.0, %v7718_v50 }
 0x2e4   :  { %v5504_v25 = vpop.f32.mrf.mxu0 }
 0x2e5   :  { %v3422_v37 = vrot.slane %v5504_v25, 1 }
 0x2e6   :  { %v3007_v55 = vpop.f32.mrf.mxu0 }
 0x2e7   :  { %v3479_v21 = vsel %vm1446_vm3, %v3421_v32, %v3422_v37  ;;  %v3420_v59 = vrot.slane %v3007_v55, 1 }
 0x2e8   :  { %v3581_v24 = vadd.f32 %v3479_v21, %v7800_v0  ;;  %v5507_v25 = vpop.f32.mrf.mxu0  ;;  %v5488_v0 = vpop.f32.mrf.mxu1 }
 0x2e9   :  { %v3480_v55 = vsel %vm1446_vm3, %v3420_v59, %v3421_v32  ;;  %v3481_v30 = vsel %vm1446_vm3, %v9225_v60, %v3420_v59  ;;  %v7975_v32 = vadd.f32 %v7758_v31, %v7683_v14  ;;  %v7978_v59 = vadd.f32 %v7687_v57, %v2893_v53 }
 0x2ea   :  { %v7970_v15 = vadd.f32 %v7943_v27, %v3581_v24  ;;  %v3579_v44 = vadd.f32 %v3481_v30, %v3355_v56  ;;  %v3580_v23 = vadd.f32 %v3480_v55, %v7806_v17  ;;  %v3020_v21 = vpop.f32.mrf.mxu0  ;;  %v7989_v31 = vadd.f32 %v3347_v40, %v2906_v36 }
 0x2eb   :  { %v3423_v60 = vrot.slane %v3020_v21, 1  ;;  %v3425_v57 = vrot.slane %v5507_v25, 1  ;;  %v7994_v30 = vadd.f32 %v5488_v0, %v7725_v49  ;;  %v8000_v14 = vadd.f32 %v7875_v12, %v7731_v45 }
 0x2ec   :  { %v3652_v50 = vmax.f32 %v7970_v15, 0.0  ;;  %v3618_v52 = vadd.f32 %v7943_v27, %v3579_v44  ;;  %v3619_v24 = vadd.f32 %v7943_v27, %v3580_v23  ;;  %v5508_v56 = vpop.f32.mrf.mxu0  ;;  %v2909_v15 = vpop.f32.mrf.mxu1  ;;  %v3351_v45 = vsel %vm7927_vm13, 0.0, %v7832_v1 }
 0x2ed   :  { %v3478_v53 = vsel %vm1446_vm3, %v3422_v37, %v3423_v60  ;;  %v3426_v55 = vrot.slane %v5508_v56, 1  ;;  %9304 = vst [vmem:[#allocation6_spill] sm:$0xff] %v7994_v30 }
 0x2ee   :  { %v3650_v44 = vmax.f32 %v3618_v52, 0.0  ;;  %v3651_v23 = vmax.f32 %v3619_v24, 0.0  ;;  %v3550_v61 = vsel %vm7931_vm14, 0.0, %v3478_v53  ;;  %v3023_v21 = vpop.f32.mrf.mxu0  ;;  %v8005_v40 = vpop.f32.mrf.mxu1  ;;  %v3684_v49 = vrot.slane %v3652_v50, 1 }
 0x2ef   :  { %v3582_v36 = vadd.f32 %v3550_v61, %v7797_v54  ;;  %v3475_v37 = vsel %vm1446_vm3, %v3425_v57, %v3426_v55  ;;  %v3424_v25 = vrot.slane %v3023_v21, 1 }
 0x2f0   :  { %v8007_v0 = vrot.slane %v3650_v44, 1  ;;  %v3683_v52 = vrot.slane %v3651_v23, 1  ;;  %v3585_v47 = vadd.f32 %v3475_v37, %v7816_v46  ;;  %v5511_v24 = vpop.f32.mrf.mxu0 }
 0x2f1   :  { %v3621_v12 = vadd.f32 %v7943_v27, %v3582_v36  ;;  %v3476_v54 = vsel %vm1446_vm3, %v3424_v25, %v3425_v57  ;;  %v3477_v56 = vsel %vm1446_vm3, %v3423_v60, %v3424_v25  ;;  %v8029_v60 = vadd.f32 %v9305_v18, %v2909_v15  ;;  %v2922_v25 = vpop.f32.mrf.mxu1 }
 0x2f2   :  { %v3743_v53 = vsel %vm1446_vm3, %v3683_v52, %v3684_v49  ;;  %v3744_v46 = vsel %vm1446_vm3, %v8007_v0, %v3683_v52  ;;  %v8024_v61 = vadd.f32 %v7943_v27, %v3585_v47  ;;  %v3583_v1 = vadd.f32 %v3477_v56, %v7808_v42  ;;  %v3036_v51 = vpop.f32.mrf.mxu0 }
 0x2f3   :  { %v3746_v21 = vmax.f32 %v3650_v44, %v3744_v46  ;;  %v3747_v36 = vmax.f32 %v3651_v23, %v3743_v53  ;;  %v3653_v37 = vmax.f32 %v3621_v12, 0.0  ;;  %v3584_v57 = vadd.f32 %v3476_v54, %v7818_v62 }
 0x2f4   :  { %v3622_v10 = vadd.f32 %v7943_v27, %v3583_v1  ;;  %v3429_v30 = vrot.slane %v5511_v24, 1  ;;  %v3427_v39 = vrot.slane %v3036_v51, 1  ;;  %v5512_v52 = vpop.f32.mrf.mxu0  ;;  %v3656_v44 = vmax.f32 %v8024_v61, 0.0  ;;  %v5492_v51 = vpop.f32.mrf.mxu1 }
 0x2f5   :  { %3778 = vst.msk [vmem:[#allocation2] sm:$0xff] %vm2358_vm10, %v3746_v21  ;;  %3779 = vst.msk [vmem:[#allocation2 + $0x8] sm:$0xff] %vm2358_vm10, %v3747_v36  ;;  %v3685_v42 = vrot.slane %v3653_v37, 1  ;;  %v3623_v23 = vadd.f32 %v7943_v27, %v3584_v57  ;;  %v3430_v47 = vrot.slane %v5512_v52, 1  ;;  %v9306_v62 = vand.u32 31, %v7889_v34 }
 0x2f6   :  { %v8042_v15 = vadd.f32 %v3351_v45, %v2922_v25  ;;  %v9309_v24 = vrot.slane %v7820_v6, 7  ;;  %v9310_v12 = vrot.slane %v7783_v58, 7  ;;  %v3654_v56 = vmax.f32 %v3622_v10, 0.0  ;;  %v3039_v46 = vpop.f32.mrf.mxu0 }
 0x2f7   :  { %vm8038_vm1 = vcmp.eq.s32.totalorder %v9306_v62, 31  ;;  %v3474_v53 = vsel %vm1446_vm3, %v3426_v55, %v3427_v39  ;;  %v3742_v61 = vsel %vm1446_vm3, %v3684_v49, %v3685_v42  ;;  %v3655_v1 = vmax.f32 %v3623_v23, 0.0 }
 0x2f8   :  { %v3227_v54 = vsel %vm342_vm0, %v9310_v12, %v9309_v24  ;;  %v3554_v45 = vsel %vm7984_vm15, 0.0, %v3474_v53  ;;  %v3471_v6 = vsel %vm1446_vm3, %v3429_v30, %v3430_v47  ;;  %v3748_v58 = vmax.f32 %v3652_v50, %v3742_v61  ;;  %v5515_v57 = vpop.f32.mrf.mxu0 }
 0x2f9   :  { %v3686_v21 = vrot.slane %v3654_v56, 1  ;;  %v3586_v36 = vadd.f32 %v3554_v45, %v7814_v41  ;;  %v3589_v10 = vadd.f32 %v3471_v6, %v7850_v48  ;;  %v8060_v55 = vadd.f32 %v5492_v51, %v3227_v54 }
 0x2fa   :  { %v3688_v25 = vrot.slane %v3656_v44, 1  ;;  %v3687_v52 = vrot.slane %v3655_v1, 1  ;;  %v3428_v49 = vrot.slane %v3039_v46, 1  ;;  %3780 = vst.msk [vmem:[#allocation2 + $0x10] sm:$0xff] %vm2358_vm10, %v3748_v58  ;;  %v3433_v41 = vrot.slane %v5515_v57, 1  ;;  %v3052_v62 = vpop.f32.mrf.mxu0 }
 0x2fb   :  { %v3741_v17 = vsel %vm1446_vm3, %v3685_v42, %v3686_v21  ;;  %v8066_v23 = vadd.f32 %v7943_v27, %v3586_v36  ;;  %v8069_v50 = vadd.f32 %v7943_v27, %v3589_v10  ;;  %v3431_v58 = vrot.slane %v3052_v62, 1 }
 0x2fc   :  { %v3739_v48 = vsel %vm1446_vm3, %v3687_v52, %v3688_v25  ;;  %v3740_v24 = vsel %vm1446_vm3, %v3686_v21, %v3687_v52  ;;  %v3749_v12 = vmax.f32 %v3653_v37, %v3741_v17  ;;  %v3472_v54 = vsel %vm1446_vm3, %v3428_v49, %v3429_v30  ;;  %v5516_v45 = vpop.f32.mrf.mxu0 }
 0x2fd   :  { %v3750_v53 = vmax.f32 %v3654_v56, %v3740_v24  ;;  %v3751_v42 = vmax.f32 %v3655_v1, %v3739_v48  ;;  %v3657_v46 = vmax.f32 %v8066_v23, 0.0  ;;  %v3660_v61 = vmax.f32 %v8069_v50, 0.0 }
 0x2fe   :  { %3781 = vst.msk [vmem:[#allocation2 + $0x18] sm:$0xff] %vm2358_vm10, %v3749_v12  ;;  %v3473_v6 = vsel %vm1446_vm3, %v3427_v39, %v3428_v49  ;;  %v3588_v51 = vadd.f32 %v3472_v54, %v7854_v19  ;;  %v3434_v21 = vrot.slane %v5516_v45, 1  ;;  %v8085_v37 = vadd.f32 %v8005_v40, %v7869_v3  ;;  %v3055_v36 = vpop.f32.mrf.mxu0 }
 0x2ff   :  { %3782 = vst.msk [vmem:[#allocation2 + $0x20] sm:$0xff] %vm2358_vm10, %v3750_v53  ;;  %3783 = vst.msk [vmem:[#allocation2 + $0x28] sm:$0xff] %vm2358_vm10, %v3751_v42  ;;  %v3689_v30 = vrot.slane %v3657_v46, 1  ;;  %v3692_v56 = vrot.slane %v3660_v61, 1  ;;  %v3587_v1 = vadd.f32 %v3473_v6, %v7835_v13  ;;  %v9311_v39 = vand.u32 31, %v9301_v63 }
 0x300   :  { %v3627_v3 = vadd.f32 %v7943_v27, %v3588_v51  ;;  %v3470_v40 = vsel %vm1446_vm3, %v3430_v47, %v3431_v58  ;;  %v3467_v10 = vsel %vm1446_vm3, %v3433_v41, %v3434_v21  ;;  %v3432_v57 = vrot.slane %v3055_v36, 1  ;;  %v5519_v23 = vpop.f32.mrf.mxu0 }
 0x301   :  { %vm8094_vm2 = vcmp.eq.s32.totalorder %v9311_v39, 31  ;;  %v3738_v52 = vsel %vm1446_vm3, %v3688_v25, %v3689_v30  ;;  %v3626_v13 = vadd.f32 %v7943_v27, %v3587_v1  ;;  %v3558_v49 = vsel %vm8038_vm1, 0.0, %v3470_v40 }
 0x302   :  { %v3593_v17 = vadd.f32 %v3467_v10, %v7897_v43  ;;  %v3752_v62 = vmax.f32 %v3656_v44, %v3738_v52  ;;  %v3659_v48 = vmax.f32 %v3627_v3, 0.0  ;;  %v3590_v24 = vadd.f32 %v3558_v49, %v7844_v26  ;;  %v3068_v53 = vpop.f32.mrf.mxu0 }
 0x303   :  { %v3468_v47 = vsel %vm1446_vm3, %v3432_v57, %v3433_v41  ;;  %v3658_v12 = vmax.f32 %v3626_v13, 0.0  ;;  %v3469_v25 = vsel %vm1446_vm3, %v3431_v58, %v3432_v57  ;;  %v3437_v42 = vrot.slane %v5519_v23, 1 }
 0x304   :  { %v8113_v54 = vadd.f32 %v7943_v27, %v3593_v17  ;;  %v3592_v18 = vadd.f32 %v3468_v47, %v7901_v22  ;;  %3784 = vst.msk [vmem:[#allocation2 + $0x30] sm:$0xff] %vm2358_vm10, %v3752_v62  ;;  %v3691_v43 = vrot.slane %v3659_v48, 1  ;;  %v3629_v44 = vadd.f32 %v7943_v27, %v3590_v24  ;;  %v8123_v1 = vpop.f32.mrf.mxu0  ;;  %v9320_v62 = vld [vmem:[#allocation11_spill] sm:$0xff] }
 0x305   :  { %v3591_v26 = vadd.f32 %v3469_v25, %v7856_v28  ;;  %v3690_v45 = vrot.slane %v3658_v12, 1  ;;  %v3435_v51 = vrot.slane %v3068_v53, 1  ;;  %v3438_v39 = vrot.slane %v8123_v1, 1  ;;  %v3811_v50 = vld [vmem:[#allocation2 + $0x10] ss:$2 sm:$0xff] }
 0x306   :  { %v3664_v41 = vmax.f32 %v8113_v54, 0.0  ;;  %v3631_v6 = vadd.f32 %v7943_v27, %v3592_v18  ;;  %v3735_v22 = vsel %vm1446_vm3, %v3691_v43, %v3692_v56  ;;  %v3661_v58 = vmax.f32 %v3629_v44, 0.0  ;;  %v3071_v57 = vpop.f32.mrf.mxu0 }
 0x307   :  { %v3630_v36 = vadd.f32 %v7943_v27, %v3591_v26  ;;  %v3736_v28 = vsel %vm1446_vm3, %v3690_v45, %v3691_v43  ;;  %v3737_v3 = vsel %vm1446_vm3, %v3689_v30, %v3690_v45  ;;  %v3755_v40 = vmax.f32 %v3659_v48, %v3735_v22 }
 0x308   :  { %v8135_v10 = vrot.slane %v3664_v41, 1  ;;  %v3753_v52 = vmax.f32 %v3657_v46, %v3737_v3  ;;  %v3754_v13 = vmax.f32 %v3658_v12, %v3736_v28  ;;  %v3693_v49 = vrot.slane %v3661_v58, 1  ;;  %v8150_v47 = vpop.f32.mrf.mxu0 }
 0x309   :  { %v3662_v17 = vmax.f32 %v3630_v36, 0.0  ;;  %v9314_v23 = vand.u32 31, %v7946_v29  ;;  %3787 = vst.msk [vmem:[#allocation2 + $0x48] sm:$0xff] %vm2358_vm10, %v3755_v40  ;;  %v3663_v24 = vmax.f32 %v3631_v6, 0.0  ;;  %v3466_v30 = vsel %vm1446_vm3, %v3434_v21, %v3435_v51  ;;  %v2925_v36 = vpop.f32.mrf.mxu1  ;;  %v3810_v40 = vld [vmem:[#allocation2] ss:$2 sm:$0xff] }
 0x30a   :  { %v3463_v46 = vsel %vm1446_vm3, %v3437_v42, %v3438_v39  ;;  %v3436_v48 = vrot.slane %v3071_v57, 1  ;;  %3785 = vst.msk [vmem:[#allocation2 + $0x38] sm:$0xff] %vm2358_vm10, %v3753_v52  ;;  %3786 = vst.msk [vmem:[#allocation2 + $0x40] sm:$0xff] %vm2358_vm10, %v3754_v13  ;;  %v3734_v29 = vsel %vm1446_vm3, %v3692_v56, %v3693_v49  ;;  %v3562_v25 = vsel %vm8094_vm2, 0.0, %v3466_v30  ;;  %v3084_v26 = vpop.f32.mrf.mxu0 }
 0x30b   :  { %vm8139_vm4 = vcmp.eq.s32.totalorder %v9314_v23, 31  ;;  %v3694_v12 = vrot.slane %v3662_v17, 1  ;;  %v3597_v21 = vadd.f32 %v3463_v46, %v7916_v2  ;;  %v3756_v18 = vmax.f32 %v3660_v61, %v3734_v29 }
 0x30c   :  { %v3695_v53 = vrot.slane %v3663_v24, 1  ;;  %v3594_v43 = vadd.f32 %v3562_v25, %v7893_v35  ;;  %v3464_v44 = vsel %vm1446_vm3, %v3436_v48, %v3437_v42  ;;  %v3465_v19 = vsel %vm1446_vm3, %v3435_v51, %v3436_v48  ;;  %v8179_v22 = vpop.f32.mrf.mxu0 }
 0x30d   :  { %v3733_v45 = vsel %vm1446_vm3, %v3693_v49, %v3694_v12  ;;  %v8167_v56 = vadd.f32 %v7943_v27, %v3597_v21  ;;  %v3596_v2 = vadd.f32 %v3464_v44, %v7920_v16  ;;  %3788 = vst.msk [vmem:[#allocation2 + $0x50] sm:$0xff] %vm2358_vm10, %v3756_v18  ;;  %v3595_v3 = vadd.f32 %v3465_v19, %v7908_v8  ;;  %v5685_v44 = vld [vmem:[%s9197_s3 + $0x90] sm:$0xff]  }
 0x30e   :  { %v3731_v35 = vsel %vm1446_vm3, %v3695_v53, %v8135_v10  ;;  %v3732_v61 = vsel %vm1446_vm3, %v3694_v12, %v3695_v53  ;;  %v3757_v42 = vmax.f32 %v3661_v58, %v3733_v45  ;;  %v3633_v6 = vadd.f32 %v7943_v27, %v3594_v43  ;;  %v3087_v49 = vpop.f32.mrf.mxu0 }
 0x30f   :  { %v3758_v28 = vmax.f32 %v3662_v17, %v3732_v61  ;;  %v3759_v51 = vmax.f32 %v3663_v24, %v3731_v35  ;;  %v3668_v16 = vmax.f32 %v8167_v56, 0.0  ;;  %v8184_v57 = vadd.f32 %v7873_v38, %v2925_v36  ;;  %v3812_v24 = vld [vmem:[#allocation2 + $0x20] ss:$2 sm:$0xff] }
 0x310   :  { %3789 = vst.msk [vmem:[#allocation2 + $0x58] sm:$0xff] %vm2358_vm10, %v3757_v42  ;;  %v3665_v52 = vmax.f32 %v3633_v6, 0.0  ;;  %v3635_v58 = vadd.f32 %v7943_v27, %v3596_v2  ;;  %v8188_v13 = vpack.c.bf16 %v3811_v50, %v3810_v40  ;;  %v3634_v17 = vadd.f32 %v7943_v27, %v3595_v3  ;;  %v5527_v21 = vpop.f32.mrf.mxu0 }
 0x311   :  { %3790 = vst.msk [vmem:[#allocation2 + $0x60] sm:$0xff] %vm2358_vm10, %v3758_v28  ;;  %3791 = vst.msk [vmem:[#allocation2 + $0x68] sm:$0xff] %vm2358_vm10, %v3759_v51  ;;  %v3441_v8 = vrot.slane %v8150_v47, 1  ;;  %v3439_v23 = vrot.slane %v3084_v26, 1  ;;  %v3442_v38 = vrot.slane %v8179_v22, 1  ;;  %v9317_v30 = vand.u32 31, %v6046_v33 }
 0x312   :  { %v3697_v48 = vrot.slane %v3665_v52, 1  ;;  %v8203_v29 = vrot.slane %v3668_v16, 1  ;;  %v3667_v12 = vmax.f32 %v3635_v58, 0.0  ;;  %5541 = vmatprep.mubr.msk.bf16.mxu1 %vm2358_vm10, %v8188_v13  ;;  %5589 = vmatprep.mubr.msk.bf16.mxu0 %vm2358_vm10, %v8188_v13  ;;  %v3440_v47 = vrot.slane %v3087_v49, 1  ;;  %v3813_v25 = vld [vmem:[#allocation2 + $0x30] ss:$2 sm:$0xff]  ;;  %v8228_v19 = vpop.f32.mrf.mxu0 }
 0x313   :  { %vm8197_vm5 = vcmp.eq.s32.totalorder %v9317_v30, 31  ;;  %v3666_v33 = vmax.f32 %v3634_v17, 0.0  ;;  %v3462_v18 = vsel %vm1446_vm3, %v3438_v39, %v3439_v23  ;;  %v3459_v53 = vsel %vm1446_vm3, %v3441_v8, %v3442_v38 }
 0x314   :  { %v8217_v43 = vpack.c.bf16 %v3813_v25, %v3812_v24  ;;  %v3730_v26 = vsel %vm1446_vm3, %v8135_v10, %v3697_v48  ;;  %v3699_v45 = vrot.slane %v3667_v12, 1  ;;  %v3566_v1 = vsel %vm8139_vm4, 0.0, %v3462_v18 }
 0x315   :  { %v3601_v39 = vadd.f32 %v3459_v53, %v7975_v32  ;;  %v3760_v2 = vmax.f32 %v3664_v41, %v3730_v26  ;;  %v3698_v50 = vrot.slane %v3666_v33, 1  ;;  %v3598_v35 = vadd.f32 %v3566_v1, %v7912_v4  ;;  %v8248_v41 = vpop.f32.mrf.mxu0  ;;  %v5687_v1 = vld [vmem:[%s9197_s3 + $0x80] sm:$0xff]  }
 0x316   :  { %v3460_v61 = vsel %vm1446_vm3, %v3440_v47, %v3441_v8  ;;  %5542 = vmatmul.mubr.msk.bf16.vlgmr.msra.gmra.mxu1 %vm2358_vm10, %v8217_v43  ;;  %5590 = vmatmul.mubr.msk.bf16.vlgmr.msra.gmra.mxu0 %vm2358_vm10, %v8217_v43  ;;  %v3727_v32 = vsel %vm1446_vm3, %v3699_v45, %v8203_v29  ;;  %v3461_v54 = vsel %vm1446_vm3, %v3439_v23, %v3440_v47  ;;  %v3445_v24 = vrot.slane %v5527_v21, 1  ;;  %v3814_v47 = vld [vmem:[#allocation2 + $0x40] ss:$2 sm:$0xff] }
 0x317   :  { %v8243_v10 = vadd.f32 %v7943_v27, %v3601_v39  ;;  %v3600_v4 = vadd.f32 %v3460_v61, %v7978_v59  ;;  %5558 = vmatpush3.bf16.msra.mxu1 %v9320_v62  ;;  %3792 = vst.msk [vmem:[#allocation2 + $0x70] sm:$0xff] %vm2358_vm10, %v3760_v2  ;;  %v3728_v42 = vsel %vm1446_vm3, %v3698_v50, %v3699_v45  ;;  %v5686_v59 = vld [vmem:[%s9197_s3 + $0x88] sm:$0xff]   ;;  %v3103_v49 = vpop.f32.mrf.mxu0  ;;  %v3815_v17 = vld [vmem:[#allocation2 + $0x50] ss:$2 sm:$0xff]  ;;  %v3443_v30 = vrot.slane %v8228_v19, 1 }
 0x318   :  { %v3729_v6 = vsel %vm1446_vm3, %v3697_v48, %v3698_v50  ;;  %v3763_v36 = vmax.f32 %v3667_v12, %v3727_v32  ;;  %v3637_v28 = vadd.f32 %v7943_v27, %v3598_v35  ;;  %5559 = vmatprep.subr.bf16.mxu1 %v5685_v44  ;;  %v3762_v3 = vmax.f32 %v3666_v33, %v3728_v42 }
 0x319   :  { %v3761_v51 = vmax.f32 %v3665_v52, %v3729_v6  ;;  %v3672_v40 = vmax.f32 %v8243_v10, 0.0  ;;  %v3599_v58 = vadd.f32 %v3461_v54, %v7949_v20  ;;  %v3639_v23 = vadd.f32 %v7943_v27, %v3600_v4  ;;  %v8273_v25 = vpop.f32.mrf.mxu0 }
 0x31a   :  { %3795 = vst.msk [vmem:[#allocation2 + $0x88] sm:$0xff] %vm2358_vm10, %v3763_v36  ;;  %v3669_v8 = vmax.f32 %v3637_v28, 0.0  ;;  %3794 = vst.msk [vmem:[#allocation2 + $0x80] sm:$0xff] %vm2358_vm10, %v3762_v3  ;;  %v3446_v48 = vrot.slane %v8248_v41, 1  ;;  %v3444_v12 = vrot.slane %v3103_v49, 1  ;;  %v9321_v21 = vand.u32 31, %v7954_v7 }
 0x31b   :  { %3793 = vst.msk [vmem:[#allocation2 + $0x78] sm:$0xff] %vm2358_vm10, %v3761_v51  ;;  %v8269_v52 = vrot.slane %v3672_v40, 1  ;;  %v3638_v20 = vadd.f32 %v7943_v27, %v3599_v58  ;;  %5560 = vmatpush3.bf16.msra.mxu1 %v5685_v44  ;;  %v3671_v53 = vmax.f32 %v3639_v23, 0.0  ;;  %v3458_v26 = vsel %vm1446_vm3, %v3442_v38, %v3443_v30  ;;  %v8296_v19 = vpop.f32.mrf.mxu0 }
 0x31c   :  { %vm8277_vm6 = vcmp.eq.s32.totalorder %v9321_v21, 31  ;;  %v3701_v18 = vrot.slane %v3669_v8, 1  ;;  %v8285_v45 = vpack.c.bf16 %v3815_v17, %v3814_v47  ;;  %5561 = vmatprep.subr.bf16.mxu1 %v5686_v59  ;;  %v3570_v39 = vsel %vm8197_vm5, 0.0, %v3458_v26 }
 0x31d   :  { %v3670_v7 = vmax.f32 %v3638_v20, 0.0  ;;  %v3455_v44 = vsel %vm1446_vm3, %v3445_v24, %v3446_v48  ;;  %v3456_v22 = vsel %vm1446_vm3, %v3444_v12, %v3445_v24  ;;  %v9324_v38 = vand.u32 31, %v6255_v9  ;;  %v5532_v4 = vpop.f32.mrf.mxu0  ;;  %v3816_v20 = vld [vmem:[#allocation2 + $0x60] ss:$2 sm:$0xff] }
 0x31e   :  { %v3726_v50 = vsel %vm1446_vm3, %v8203_v29, %v3701_v18  ;;  %v3703_v46 = vrot.slane %v3671_v53, 1  ;;  %v3602_v35 = vadd.f32 %v3570_v39, %v7957_v11  ;;  %v3605_v61 = vadd.f32 %v3455_v44, %v8000_v14  ;;  %5545 = vmatprep.mubr.msk.bf16.mxu1 %vm2358_vm10, %v8285_v45  ;;  %5593 = vmatprep.mubr.msk.bf16.mxu0 %vm2358_vm10, %v8285_v45 }
 0x31f   :  { %vm8300_vm7 = vcmp.eq.s32.totalorder %v9324_v38, 31  ;;  %v3764_v9 = vmax.f32 %v3668_v16, %v3726_v50  ;;  %v3702_v32 = vrot.slane %v3670_v7, 1  ;;  %v3457_v54 = vsel %vm1446_vm3, %v3443_v30, %v3444_v12  ;;  %5562 = vmatpush3.bf16.msra.mxu1 %v5686_v59  ;;  %v3119_v6 = vpop.f32.mrf.mxu0 }
 0x320   :  { %v3604_v29 = vadd.f32 %v3456_v22, %v8029_v60  ;;  %v3723_v11 = vsel %vm1446_vm3, %v3703_v46, %v8269_v52  ;;  %v3641_v14 = vadd.f32 %v7943_v27, %v3602_v35  ;;  %v8323_v41 = vadd.f32 %v7943_v27, %v3605_v61  ;;  %5563 = vmatprep.subr.bf16.mxu1 %v5687_v1 }
 0x321   :  { %v3603_v56 = vadd.f32 %v3457_v54, %v7989_v31  ;;  %3796 = vst.msk [vmem:[#allocation2 + $0x90] sm:$0xff] %vm2358_vm10, %v3764_v9  ;;  %v3724_v16 = vsel %vm1446_vm3, %v3702_v32, %v3703_v46  ;;  %v3725_v60 = vsel %vm1446_vm3, %v3701_v18, %v3702_v32  ;;  %v3767_v62 = vmax.f32 %v3671_v53, %v3723_v11 }
 0x322   :  { %v3643_v42 = vadd.f32 %v7943_v27, %v3604_v29  ;;  %v3765_v36 = vmax.f32 %v3669_v8, %v3725_v60  ;;  %v3766_v28 = vmax.f32 %v3670_v7, %v3724_v16  ;;  %v3673_v59 = vmax.f32 %v3641_v14, 0.0  ;;  %v3817_v3 = vld [vmem:[#allocation2 + $0x70] ss:$2 sm:$0xff]  ;;  %v3818_v14 = vld [vmem:[#allocation2 + $0x80] ss:$2 sm:$0xff] }
 0x323   :  { %v3676_v51 = vmax.f32 %v8323_v41, 0.0  ;;  %3799 = vst.msk [vmem:[#allocation2 + $0xa8] sm:$0xff] %vm2358_vm10, %v3767_v62  ;;  %v3642_v31 = vadd.f32 %v7943_v27, %v3603_v56  ;;  %v3449_v49 = vrot.slane %v8273_v25, 1  ;;  %v3447_v17 = vrot.slane %v8296_v19, 1  ;;  %5564 = vmatpush3.bf16.msra.mxu1 %v5687_v1  ;;  %v9327_v1 = vld [vmem:[#allocation8_spill] sm:$0xff]  ;;  %v9329_v19 = vld [vmem:[#allocation6_spill] sm:$0xff] }
 0x324   :  { %v3675_v58 = vmax.f32 %v3643_v42, 0.0  ;;  %3797 = vst.msk [vmem:[#allocation2 + $0x98] sm:$0xff] %vm2358_vm10, %v3765_v36  ;;  %3798 = vst.msk [vmem:[#allocation2 + $0xa0] sm:$0xff] %vm2358_vm10, %v3766_v28  ;;  %v3705_v8 = vrot.slane %v3673_v59, 1  ;;  %v3450_v24 = vrot.slane %v5532_v4, 1  ;;  %v3448_v30 = vrot.slane %v3119_v6, 1 }
 0x325   :  { %v3708_v23 = vrot.slane %v3676_v51, 1  ;;  %v3674_v12 = vmax.f32 %v3642_v31, 0.0  ;;  %v3454_v21 = vsel %vm1446_vm3, %v3446_v48, %v3447_v17  ;;  %v8343_v25 = vpack.c.bf16 %v3817_v3, %v3816_v20 }
 0x326   :  { %v3707_v47 = vrot.slane %v3675_v58, 1  ;;  %v3722_v18 = vsel %vm1446_vm3, %v8269_v52, %v3705_v8  ;;  %v3574_v53 = vsel %vm8277_vm6, 0.0, %v3454_v21  ;;  %v3451_v26 = vsel %vm1446_vm3, %v3449_v49, %v3450_v24 }
 0x327   :  { %v9328_v7 = vrot.slane %v9327_v1, 1  ;;  %v3768_v48 = vmax.f32 %v3672_v40, %v3722_v18  ;;  %v3706_v44 = vrot.slane %v3674_v12, 1  ;;  %v3606_v52 = vadd.f32 %v3574_v53, %v9329_v19  ;;  %5546 = vmatmul.mubr.msk.bf16.gmra.mxu1 %vm2358_vm10, %v8343_v25  ;;  %5594 = vmatmul.mubr.msk.bf16.gmra.mxu0 %vm2358_vm10, %v8343_v25  ;;  %v8472_v19 = vld [vmem:[%s9197_s3 + $0xf8] sm:$0xff]  }
 0x328   :  { %v3719_v22 = vsel %vm1446_vm3, %v3707_v47, %v3708_v23  ;;  %v3609_v50 = vadd.f32 %v3451_v26, %v8085_v37  ;;  %v3452_v10 = vsel %vm1446_vm3, %v3448_v30, %v3449_v49  ;;  %v3453_v32 = vsel %vm1446_vm3, %v3447_v17, %v3448_v30 }
 0x329   :  { %v3482_v39 = vsel %vm1446_vm3, %v3450_v24, %v9328_v7  ;;  %v3771_v33 = vmax.f32 %v3675_v58, %v3719_v22  ;;  %3800 = vst.msk [vmem:[#allocation2 + $0xb0] sm:$0xff] %vm2358_vm10, %v3768_v48  ;;  %v3720_v40 = vsel %vm1446_vm3, %v3706_v44, %v3707_v47  ;;  %v3721_v46 = vsel %vm1446_vm3, %v3705_v8, %v3706_v44  ;;  %v8455_v48 = vld [vmem:[%s9197_s3 + $0x108] sm:$0xff]   ;;  %v5694_v44 = vld [vmem:[%s9197_s3 + $0xc0] sm:$0xff]  }
 0x32a   :  { %v3578_v38 = vsel %vm8300_vm7, 0.0, %v3482_v39  ;;  %v3645_v35 = vadd.f32 %v7943_v27, %v3606_v52  ;;  %v3769_v9 = vmax.f32 %v3673_v59, %v3721_v46  ;;  %v3770_v2 = vmax.f32 %v3674_v12, %v3720_v40  ;;  %v5691_v39 = vld [vmem:[%s9197_s3 + $0xc8] sm:$0xff]   ;;  %v8465_v22 = vld [vmem:[%s9197_s3 + $0x100] sm:$0xff]  }
 0x32b   :  { %v3610_v61 = vadd.f32 %v3578_v38, %v8060_v55  ;;  %3803 = vst.msk [vmem:[#allocation2 + $0xc8] sm:$0xff] %vm2358_vm10, %v3771_v33  ;;  %v3648_v37 = vadd.f32 %v7943_v27, %v3609_v50  ;;  %v3607_v4 = vadd.f32 %v3453_v32, %v8042_v15  ;;  %v3608_v11 = vadd.f32 %v3452_v10, %v8184_v57  ;;  %v3819_v56 = vld [vmem:[#allocation2 + $0x90] ss:$2 sm:$0xff]  ;;  %v3820_v24 = vld [vmem:[#allocation2 + $0xa0] ss:$2 sm:$0xff] }
 0x32c   :  { %v3677_v54 = vmax.f32 %v3645_v35, 0.0  ;;  %3801 = vst.msk [vmem:[#allocation2 + $0xb8] sm:$0xff] %vm2358_vm10, %v3769_v9  ;;  %3802 = vst.msk [vmem:[#allocation2 + $0xc0] sm:$0xff] %vm2358_vm10, %v3770_v2  ;;  %v3830_v16 = vpack.c.bf16 %v3819_v56, %v3818_v14 }
 0x32d   :  { %v3649_v29 = vadd.f32 %v7943_v27, %v3610_v61  ;;  %v3680_v55 = vmax.f32 %v3648_v37, 0.0  ;;  %v3646_v42 = vadd.f32 %v7943_v27, %v3607_v4  ;;  %v3647_v6 = vadd.f32 %v7943_v27, %v3608_v11 }
 0x32e   :  { %v3709_v60 = vrot.slane %v3677_v54, 1  ;;  %5549 = vmatprep.mubr.msk.bf16.mxu1 %vm2358_vm10, %v3830_v16  ;;  %5597 = vmatprep.mubr.msk.bf16.mxu0 %vm2358_vm10, %v3830_v16  ;;  %v8509_v11 = vadd.s32 8, %v5755_v5 }
 0x32f   :  { %v3681_v62 = vmax.f32 %v3649_v29, 0.0  ;;  %v3712_v36 = vrot.slane %v3680_v55, 1  ;;  %v3678_v28 = vmax.f32 %v3646_v42, 0.0  ;;  %v3679_v59 = vmax.f32 %v3647_v6, 0.0  ;;  %v9331_v42 = vld [vmem:[#allocation7_spill] sm:$0xff] }
 0x330   :  { %v3718_v15 = vsel %vm1446_vm3, %v3708_v23, %v3709_v60  ;;  %v8504_v29 = vadd.s32 16, %v5755_v5  ;;  %v4251_v6 = vand.u32 15, %v9331_v42 }
 0x331   :  { %v3713_v57 = vrot.slane %v3681_v62, 1  ;;  %v3772_v3 = vmax.f32 %v3676_v51, %v3718_v15  ;;  %v3710_v58 = vrot.slane %v3678_v28, 1  ;;  %v3711_v49 = vrot.slane %v3679_v59, 1  ;;  %v9332_v15 = vld [vmem:[#allocation13_spill] sm:$0xff] }
 0x332   :  { %vm8540_vm9 = vcmp.eq.s32.totalorder %v4251_v6, 15 }
 0x333   :  { %v3714_v31 = vsel %vm1446_vm3, %v3712_v36, %v3713_v57  ;;  %v3745_v27 = vsel %vm1446_vm3, %v3713_v57, %v8007_v0  ;;  %3804 = vst.msk [vmem:[#allocation2 + $0xd0] sm:$0xff] %vm2358_vm10, %v3772_v3  ;;  %v3715_v23 = vsel %vm1446_vm3, %v3711_v49, %v3712_v36  ;;  %v3716_v41 = vsel %vm1446_vm3, %v3710_v58, %v3711_v49  ;;  %v3821_v30 = vld [vmem:[#allocation2 + $0xb0] ss:$2 sm:$0xff]  ;;  %v3822_v18 = vld [vmem:[#allocation2 + $0xc0] ss:$2 sm:$0xff] }
 0x334   :  { %v3776_v17 = vmax.f32 %v3680_v55, %v3714_v31  ;;  %v3777_v8 = vmax.f32 %v3681_v62, %v3745_v27  ;;  %v3717_v51 = vsel %vm1446_vm3, %v3709_v60, %v3710_v58  ;;  %v3774_v20 = vmax.f32 %v3678_v28, %v3716_v41 }
 0x335   :  { %v3773_v0 = vmax.f32 %v3677_v54, %v3717_v51  ;;  %v3775_v12 = vmax.f32 %v3679_v59, %v3715_v23  ;;  %v3831_v47 = vpack.c.bf16 %v3821_v30, %v3820_v24  ;;  %v8519_v60 = vadd.s32 48, %v5755_v5  ;;  %v9342_v30 = vld [vmem:[#allocation4_spill] sm:$0xff] }
 0x336   :  { %3808 = vst.msk [vmem:[#allocation2 + $0xf0] sm:$0xff] %vm2358_vm10, %v3776_v17  ;;  %3809 = vst.msk [vmem:[#allocation2 + $0xf8] sm:$0xff] %vm2358_vm10, %v3777_v8  ;;  %v4249_v36 = vand.u32 15, %v8509_v11  ;;  %v4252_v57 = vand.u32 15, %v9332_v15  ;;  %v8527_v28 = vadd.s32 40, %v5755_v5  ;;  %v96_v3 = vadd.s32 80, %v5755_v5 }
 0x337   :  { %3805 = vst.msk [vmem:[#allocation2 + $0xd8] sm:$0xff] %vm2358_vm10, %v3773_v0  ;;  %3806 = vst.msk [vmem:[#allocation2 + $0xe0] sm:$0xff] %vm2358_vm10, %v3774_v20  ;;  %5550 = vmatmul.mubr.msk.bf16.gmra.mxu1 %vm2358_vm10, %v3831_v47  ;;  %5598 = vmatmul.mubr.msk.bf16.gmra.mxu0 %vm2358_vm10, %v3831_v47  ;;  %v95_v31 = vadd.s32 72, %v5755_v5  ;;  %v4254_v49 = vand.u32 15, %v8519_v60  ;;  %v4248_v24 = vand.u32 15, %v5755_v5  ;;  %v4255_v0 = vand.u32 15, %v9342_v30 }
 0x338   :  { %3807 = vst.msk [vmem:[#allocation2 + $0xe8] sm:$0xff] %vm2358_vm10, %v3775_v12  ;;  %9330 = vst [vmem:[#allocation9_spill] sm:$0xff] %v8519_v60  ;;  %vm8544_vm11 = vcmp.eq.s32.totalorder %v4249_v36, 15  ;;  %vm8548_vm12 = vcmp.eq.s32.totalorder %v4252_v57, 0  ;;  %v4253_v41 = vand.u32 15, %v8527_v28  ;;  %v9343_v20 = vld [vmem:[#allocation3_spill] sm:$0xff] }
 0x339   :  { %9333 = vst [vmem:[#allocation10_spill] sm:$0xff] %v8527_v28  ;;  %v4256_v12 = vand.u32 15, %v9343_v20  ;;  %vm8569_vm13 = vcmp.eq.s32.totalorder %v4254_v49, 0  ;;  %vm8582_vm14 = vcmp.eq.s32.totalorder %v4248_v24, 0  ;;  %vm8620_vm1 = vcmp.eq.s32.totalorder %v4255_v0, 15 }
 0x33a   :  { %vm8592_vm15 = vcmp.eq.s32.totalorder %v4253_v41, 15 }
 0x33b   :  { %vm8624_vm2 = vcmp.eq.s32.totalorder %v4256_v12, 0 }
 0x33d   :  { %v3825_v21 = vld [vmem:[#allocation2 + $0xf0] ss:$2 sm:$0xff] }
 0x33e   :  { %v3823_v53 = vld [vmem:[#allocation2 + $0xd0] ss:$2 sm:$0xff] }
 0x33f   :  { %v3824_v26 = vld [vmem:[#allocation2 + $0xe0] ss:$2 sm:$0xff]  ;;  %v3832_v1 = vpack.c.bf16 %v3823_v53, %v3822_v18  ;;  %v4258_v18 = vand.u32 15, %v96_v3  ;;  %v4257_v53 = vand.u32 15, %v95_v31 }
 0x340   :  { %v3833_v7 = vpack.c.bf16 %v3825_v21, %v3824_v26  ;;  %v8563_v26 = vadd.s32 104, %v5755_v5 }
 0x341   :  { %5553 = vmatprep.mubr.msk.bf16.mxu1 %vm2358_vm10, %v3832_v1  ;;  %5601 = vmatprep.mubr.msk.bf16.mxu0 %vm2358_vm10, %v3832_v1  ;;  %vm8645_vm4 = vcmp.eq.s32.totalorder %v4258_v18, 0  ;;  %vm8649_vm5 = vcmp.eq.s32.totalorder %v4257_v53, 15 }
 0x342   :  { %5554 = vmatmul.mubr.msk.bf16.gmra.mxu1 %vm2358_vm10, %v3833_v7  ;;  %5602 = vmatmul.mubr.msk.bf16.gmra.mxu0 %vm2358_vm10, %v3833_v7 }
 0x343   :  { %5565 = vmatprep.mubr.msk.bf16.mxu1 %vm2358_vm10, %v8188_v13  ;;  %v5688_v13 = vld [vmem:[%s9197_s3 + $0xd8] sm:$0xff]  }
 0x344   :  { %5605 = vmatprep.subr.bf16.mxu1 %v5688_v13 }
 0x34a   :  { %5566 = vmatmul.mubr.msk.bf16.vlgmr.msra.gmra.mxu1 %vm2358_vm10, %v8217_v43  ;;  %v8435_v43 = vld [vmem:[%s9197_s3 + $0x118] sm:$0xff]  }
 0x34b   :  { %5569 = vmatprep.mubr.msk.bf16.mxu1 %vm2358_vm10, %v8285_v45  ;;  %5606 = vmatpush3.bf16.msra.mxu1 %v5688_v13  ;;  %v5689_v45 = vld [vmem:[%s9197_s3 + $0xd0] sm:$0xff]  }
 0x34c   :  { %5637 = vmatprep.subr.bf16.mxu0 %v8435_v43  ;;  %5607 = vmatprep.subr.bf16.mxu1 %v5689_v45 }
 0x34d   :  { %5638 = vmatpush3.bf16.msra.mxu0 %v8435_v43 }
 0x34f   :  { %5608 = vmatpush3.bf16.msra.mxu1 %v5689_v45 }
 0x350   :  { %5609 = vmatprep.subr.bf16.mxu1 %v5691_v39 }
 0x352   :  { %5570 = vmatmul.mubr.msk.bf16.gmra.mxu1 %vm2358_vm10, %v8343_v25  ;;  %v8445_v25 = vld [vmem:[%s9197_s3 + $0x110] sm:$0xff]  }
 0x353   :  { %5573 = vmatprep.mubr.msk.bf16.mxu1 %vm2358_vm10, %v3830_v16  ;;  %5639 = vmatprep.subr.bf16.mxu0 %v8445_v25  ;;  %v4250_v16 = vand.u32 15, %v8504_v29 }
 0x354   :  { %5640 = vmatpush3.bf16.msra.mxu0 %v8445_v25  ;;  %5610 = vmatpush3.bf16.msra.mxu1 %v5691_v39  ;;  %v4259_v39 = vand.u32 15, %v7889_v34 }
 0x355   :  { %5641 = vmatprep.subr.bf16.mxu0 %v8455_v48  ;;  %5611 = vmatprep.subr.bf16.mxu1 %v5694_v44  ;;  %vm8535_vm8 = vcmp.eq.s32.totalorder %v4250_v16, 0 }
 0x356   :  { %vm8696_vm6 = vcmp.eq.s32.totalorder %v4259_v39, 15 }
 0x358   :  { %5642 = vmatpush3.bf16.msra.mxu0 %v8455_v48  ;;  %5612 = vmatpush3.bf16.msra.mxu1 %v5694_v44  ;;  %v9346_v44 = vld [vmem:[#allocation14_spill] sm:$0xff] }
 0x359   :  { %5643 = vmatprep.subr.bf16.mxu0 %v8465_v22  ;;  %5621 = vmatprep.subr.bf16.mxu1 %v8472_v19  ;;  %v4260_v16 = vand.u32 15, %v9346_v44 }
 0x35a   :  { %5574 = vmatmul.mubr.msk.bf16.gmra.mxu1 %vm2358_vm10, %v3831_v47  ;;  %v8559_v47 = vadd.s32 112, %v5755_v5 }
 0x35b   :  { %5577 = vmatprep.mubr.msk.bf16.mxu1 %vm2358_vm10, %v3832_v1  ;;  %vm8700_vm7 = vcmp.eq.s32.totalorder %v4260_v16, 0 }
 0x35c   :  { %5644 = vmatpush3.bf16.msra.mxu0 %v8465_v22 }
 0x362   :  { %5578 = vmatmul.mubr.msk.bf16.gmra.mxu1 %vm2358_vm10, %v3833_v7 }
 0x3d6   :  { %v8475_v52 = vpop.f32.mrf.mxu1  ;;  %v8477_v33 = vpop.f32.mrf.mxu0 }
 0x3d8   :  { %v8479_v38 = vpop.f32.mrf.mxu1  ;;  %v8481_v50 = vpop.f32.mrf.mxu0 }
 0x3d9   :  { %v9355_v28 = vrot.slane %v8481_v50, 1 }
 0x3da   :  { %v8483_v10 = vpop.f32.mrf.mxu1  ;;  %v8485_v40 = vpop.f32.mrf.mxu0 }
 0x3db   :  { %v4395_v21 = vrot.slane %v8485_v40, 1  ;;  %v4394_v40 = vrot.slane %v8477_v33, 1  ;;  %v4283_v6 = vrot.slane %v8483_v10, 7  ;;  %v4280_v33 = vrot.slane %v8479_v38, 7 }
 0x3dc   :  { %v8487_v46 = vpop.f32.mrf.mxu1  ;;  %v8489_v35 = vpop.f32.mrf.mxu0 }
 0x3dd   :  { %v4281_v1 = vrot.slane %v8487_v46, 7  ;;  %v4393_v7 = vrot.slane %v8489_v35, 1  ;;  %v4282_v35 = vrot.slane %v8475_v52, 7 }
 0x3df   :  { %v4309_v38 = vsel %vm342_vm0, %v4281_v1, %v4282_v35  ;;  %v8607_v31 = vsel %vm1446_vm3, %v4393_v7, %v4394_v40  ;;  %v4308_v52 = vsel %vm342_vm0, %v4282_v35, %v4283_v6  ;;  %v4422_v0 = vsel %vm1446_vm3, %v9355_v28, %v4393_v7 }
 0x3e0   :  { %v4346_v12 = vsel %vm8535_vm8, 0.0, %v4309_v38  ;;  %v4310_v60 = vsel %vm342_vm0, %v4280_v33, %v4281_v1 }
 0x3e7   :  { %v8491_v61 = vpop.f32.mrf.mxu1  ;;  %v8493_v9 = vpop.f32.mrf.mxu0 }
 0x3e8   :  { %v4398_v35 = vrot.slane %v8493_v9, 1 }
 0x3e9   :  { %v8495_v2 = vpop.f32.mrf.mxu1  ;;  %v8497_v37 = vpop.f32.mrf.mxu0 }
 0x3ea   :  { %v4284_v36 = vrot.slane %v8495_v2, 7  ;;  %v4396_v46 = vrot.slane %v8497_v37, 1  ;;  %v4420_v2 = vsel %vm1446_vm3, %v4394_v40, %v4395_v21 }
 0x3eb   :  { %v8499_v32 = vpop.f32.mrf.mxu1  ;;  %v8501_v54 = vpop.f32.mrf.mxu0 }
 0x3ec   :  { %v4399_v49 = vrot.slane %v8501_v54, 1  ;;  %v4287_v41 = vrot.slane %v8499_v32, 7  ;;  %v8614_v54 = vsel %vm1446_vm3, %v4395_v21, %v4396_v46  ;;  %v4286_v32 = vrot.slane %v8491_v61, 7 }
 0x3ed   :  { %v8506_v4 = vpop.f32.mrf.mxu1  ;;  %v8511_v14 = vpop.f32.mrf.mxu0  ;;  %v4457_v61 = vsel %vm8544_vm11, 0.0, %v8607_v31  ;;  %v4459_v58 = vsel %vm8540_vm9, 0.0, %v8614_v54 }
 0x3ee   :  { %v4285_v24 = vrot.slane %v8506_v4, 7  ;;  %v8618_v4 = vsel %vm342_vm0, %v4283_v6, %v4284_v36  ;;  %v4397_v10 = vrot.slane %v8511_v14, 1  ;;  %v8664_v18 = vsel %vm1446_vm3, %v4398_v35, %v4399_v49 }
 0x3ef   :  { %v8677_v38 = vsel %vm342_vm0, %v4286_v32, %v4287_v41 }
 0x3f0   :  { %v4305_v8 = vsel %vm342_vm0, %v4285_v24, %v4286_v32  ;;  %v8683_v53 = vsel %vm1446_vm3, %v4396_v46, %v4397_v10 }
 0x3f1   :  { %v4350_v32 = vsel %vm8569_vm13, 0.0, %v4305_v8 }
 0x3f7   :  { %v8513_v56 = vpop.f32.mrf.mxu1  ;;  %v8515_v55 = vpop.f32.mrf.mxu0 }
 0x3f9   :  { %v8521_v62 = vpop.f32.mrf.mxu1  ;;  %v8533_v27 = vpop.f32.mrf.mxu0 }
 0x3fa   :  { %v4288_v1 = vrot.slane %v8521_v62, 7  ;;  %v4400_v31 = vrot.slane %v8533_v27, 1  ;;  %v8687_v62 = vsel %vm342_vm0, %v4284_v36, %v4285_v24  ;;  %v4290_v27 = vrot.slane %v8513_v56, 7 }
 0x3fb   :  { %v8529_v59 = vpop.f32.mrf.mxu1  ;;  %v8567_v13 = vpop.f32.mrf.mxu0  ;;  %v4402_v36 = vrot.slane %v8515_v55, 1 }
 0x3fc   :  { %v4291_v56 = vrot.slane %v8529_v59, 7  ;;  %v4415_v55 = vsel %vm1446_vm3, %v4399_v49, %v4400_v31  ;;  %v8720_v59 = vsel %vm342_vm0, %v4287_v41, %v4288_v1 }
 0x3fd   :  { %v8553_v51 = vpop.f32.mrf.mxu1  ;;  %v8599_v20 = vpop.f32.mrf.mxu0  ;;  %v4352_v8 = vsel %vm8624_vm2, 0.0, %v8720_v59  ;;  %v9376_v59 = vand.u32 15, %v8563_v26 }
 0x3fe   :  { %v4289_v54 = vrot.slane %v8553_v51, 7  ;;  %v4401_v30 = vrot.slane %v8599_v20, 1  ;;  %v8694_v51 = vsel %vm1446_vm3, %v4397_v10, %v4398_v35  ;;  %v8712_v10 = vld [vmem:[%s9200_s4 + $0x1] ss:$0 sm:$0xff] }
 0x3ff   :  { %vm8861_vm11 = vcmp.eq.s32.totalorder %v9376_v59, 15 }
 0x400   :  { %v8728_v3 = vsel %vm342_vm0, %v4289_v54, %v4290_v27  ;;  %v8754_v34 = vsel %vm1446_vm3, %v4400_v31, %v4401_v30 }
 0x402   :  { %v8580_v57 = vpop.f32.mrf.mxu1  ;;  %v8653_v28 = vpop.f32.mrf.mxu0 }
 0x404   :  { %v8601_v44 = vpop.f32.mrf.mxu1  ;;  %v8707_v45 = vpop.f32.mrf.mxu0 }
 0x405   :  { %v9365_v9 = vrot.slane %v8601_v44, 7  ;;  %v9379_v26 = vrot.slane %v8707_v45, 1 }
 0x406   :  { %v8631_v21 = vpop.f32.mrf.mxu1  ;;  %v8749_v49 = vpop.f32.mrf.mxu0 }
 0x407   :  { %v9231_v6 = vrot.slane %v8631_v21, 7 }
 0x408   :  { %v8655_v7 = vpop.f32.mrf.mxu1 }
 0x409   :  { %v4311_v17 = vsel %vm342_vm0, %v9231_v6, %v4280_v33 }
 0x40a   :  { %v5567_v15 = vpop.f32.mrf.mxu1  ;;  %v4344_v16 = vsel %vm8582_vm14, 0.0, %v4311_v17 }
 0x40b   :  { %v4362_v33 = vadd.f32 %v5567_v15, %v4346_v12  ;;  %v4403_v15 = vrot.slane %v8567_v13, 1  ;;  %v8747_v13 = vsel %vm342_vm0, %v4290_v27, %v4291_v56  ;;  %v8761_v27 = vsel %vm342_vm0, %v4288_v1, %v4289_v54 }
 0x40c   :  { %v4055_v39 = vpop.f32.mrf.mxu1  ;;  %v8779_v1 = vsel %vm342_vm0, %v4291_v56, %v9365_v9  ;;  %v4294_v54 = vrot.slane %v8580_v57, 7  ;;  %v9366_v56 = vsel %vm8548_vm12, 0.0, %v8618_v4  ;;  %v9367_v4 = vand.u32 15, %v8559_v47 }
 0x40d   :  { %v4474_v24 = vadd.f32 %v4420_v2, %v4362_v33  ;;  %v4360_v35 = vadd.f32 %v4344_v16, %v4055_v39  ;;  %v8732_v2 = vsel %vm1446_vm3, %v4401_v30, %v4402_v36  ;;  %v4463_v16 = vsel %vm8620_vm1, 0.0, %v4415_v55 }
 0x40e   :  { %v5568_v12 = vpop.f32.mrf.mxu1  ;;  %v8740_v6 = vsel %vm1446_vm3, %v4402_v36, %v4403_v15  ;;  %v4354_v55 = vsel %vm8645_vm4, 0.0, %v8728_v3  ;;  %v9364_v30 = vrot.slane %v8707_v45, 1  ;;  %v4406_v3 = vrot.slane %v8653_v28, 1 }
 0x40f   :  { %v4498_v41 = vadd.f32 %v8712_v10, %v4474_v24  ;;  %v4472_v17 = vadd.f32 %v4422_v0, %v4360_v35  ;;  %v4363_v33 = vadd.f32 %v5568_v12, %v4308_v52  ;;  %vm8803_vm8 = vcmp.eq.s32.totalorder %v9367_v4, 0 }
 0x410   :  { %v4058_v39 = vpop.f32.mrf.mxu1  ;;  %v8773_v31 = vsel %vm1446_vm3, %v4403_v15, %v9364_v30  ;;  %v9381_v59 = vsel %vm8700_vm7, 0.0, %v8779_v1 }
 0x411   :  { %v4496_v52 = vadd.f32 %v8712_v10, %v4472_v17  ;;  %v4475_v0 = vadd.f32 %v4459_v58, %v4363_v33  ;;  %v4361_v24 = vadd.f32 %v4310_v60, %v4058_v39  ;;  %v4514_v36 = vmax.f32 %v4498_v41, 0.0  ;;  %v8784_v39 = vpop.f32.mrf.mxu0 }
 0x412   :  { %v5571_v35 = vpop.f32.mrf.mxu1  ;;  %v4405_v20 = vrot.slane %v8784_v39, 1 }
 0x413   :  { %v8767_v60 = vadd.f32 %v8712_v10, %v4475_v0  ;;  %v4473_v58 = vadd.f32 %v4457_v61, %v4361_v24  ;;  %v4512_v41 = vmax.f32 %v4496_v52, 0.0  ;;  %v4366_v17 = vadd.f32 %v5571_v35, %v4350_v32 }
 0x414   :  { %v4071_v33 = vpop.f32.mrf.mxu1  ;;  %v4407_v61 = vrot.slane %v8749_v49, 1  ;;  %v4530_v30 = vrot.slane %v4514_v36, 1  ;;  %v4467_v32 = vsel %vm8696_vm6, 0.0, %v8773_v31 }
 0x415   :  { %v4515_v15 = vmax.f32 %v8767_v60, 0.0  ;;  %v4497_v0 = vadd.f32 %v8712_v10, %v4473_v58  ;;  %v4364_v24 = vadd.f32 %v9366_v56, %v4071_v33  ;;  %v4478_v57 = vadd.f32 %v8664_v18, %v4366_v17 }
 0x416   :  { %v5572_v9 = vpop.f32.mrf.mxu1  ;;  %v4293_v18 = vrot.slane %v8655_v7, 7  ;;  %v8809_v31 = vrot.slane %v4512_v41, 1  ;;  %v9370_v56 = vand.u32 15, %v9301_v63 }
 0x417   :  { %v4531_v52 = vrot.slane %v4515_v15, 1  ;;  %v4513_v35 = vmax.f32 %v4497_v0, 0.0  ;;  %v4476_v60 = vadd.f32 %v8683_v53, %v4364_v24  ;;  %v4367_v23 = vadd.f32 %v5572_v9, %v8677_v38 }
 0x418   :  { %v4502_v17 = vadd.f32 %v8712_v10, %v4478_v57  ;;  %v4074_v33 = vpop.f32.mrf.mxu1  ;;  %vm8817_vm9 = vcmp.eq.s32.totalorder %v9370_v56, 15  ;;  %v4408_v57 = vsel %vm1446_vm3, %v4406_v3, %v4407_v61 }
 0x419   :  { %v4556_v53 = vsel %vm1446_vm3, %v4530_v30, %v4531_v52  ;;  %v4529_v0 = vrot.slane %v4513_v35, 1  ;;  %v4500_v38 = vadd.f32 %v8712_v10, %v4476_v60  ;;  %v4479_v47 = vadd.f32 %v4463_v16, %v4367_v23 }
 0x41a   :  { %v4562_v9 = vmax.f32 %v4514_v36, %v4556_v53  ;;  %v4518_v4 = vmax.f32 %v4502_v17, 0.0  ;;  %v4365_v49 = vadd.f32 %v8687_v62, %v4074_v33  ;;  %v5575_v12 = vpop.f32.mrf.mxu1  ;;  %v9373_v17 = vsel %vm8592_vm15, 0.0, %v8694_v51 }
 0x41b   :  { %v4557_v60 = vsel %vm1446_vm3, %v4529_v0, %v4530_v30  ;;  %v4558_v63 = vsel %vm1446_vm3, %v8809_v31, %v4529_v0  ;;  %v4516_v16 = vmax.f32 %v4500_v38, 0.0  ;;  %v8832_v23 = vadd.f32 %v8712_v10, %v4479_v47 }
 0x41c   :  { %4578 = vst.msk [vmem:[#allocation2 + $0x10] sm:$0xff] %vm2358_vm10, %v4562_v9  ;;  %v4560_v62 = vmax.f32 %v4512_v41, %v4558_v63  ;;  %v4561_v36 = vmax.f32 %v4513_v35, %v4557_v60  ;;  %v4477_v33 = vadd.f32 %v9373_v17, %v4365_v49  ;;  %v4087_v53 = vpop.f32.mrf.mxu1  ;;  %v9374_v30 = vrot.slane %v8631_v21, 7 }
 0x41d   :  { %v4532_v0 = vrot.slane %v4516_v16, 1  ;;  %v4519_v38 = vmax.f32 %v8832_v23, 0.0  ;;  %v4370_v47 = vadd.f32 %v5575_v12, %v4354_v55  ;;  %v4368_v41 = vadd.f32 %v4352_v8, %v4087_v53 }
 0x41e   :  { %v4296_v56 = vsel %vm342_vm0, %v4294_v54, %v9374_v30  ;;  %4576 = vst.msk [vmem:[#allocation2] sm:$0xff] %vm2358_vm10, %v4560_v62  ;;  %4577 = vst.msk [vmem:[#allocation2 + $0x8] sm:$0xff] %vm2358_vm10, %v4561_v36  ;;  %v4534_v37 = vrot.slane %v4518_v4, 1  ;;  %v4501_v51 = vadd.f32 %v8712_v10, %v4477_v33  ;;  %v5576_v21 = vpop.f32.mrf.mxu1  ;;  %v4297_v49 = vsel %vm342_vm0, %v4293_v18, %v4294_v54 }
 0x41f   :  { %v9375_v55 = vrot.slane %v8481_v50, 1  ;;  %v4555_v12 = vsel %vm1446_vm3, %v4531_v52, %v4532_v0  ;;  %v4535_v35 = vrot.slane %v4519_v38, 1  ;;  %v4482_v9 = vadd.f32 %v8740_v6, %v4370_v47 }
 0x420   :  { %v4480_v60 = vadd.f32 %v8754_v34, %v4368_v41  ;;  %v4563_v54 = vmax.f32 %v4515_v15, %v4555_v12  ;;  %v4517_v63 = vmax.f32 %v4501_v51, 0.0  ;;  %v4371_v50 = vadd.f32 %v5576_v21, %v8747_v13  ;;  %v4090_v23 = vpop.f32.mrf.mxu1 }
 0x421   :  { %v4423_v40 = vsel %vm1446_vm3, %v4407_v61, %v9375_v55  ;;  %v4410_v61 = vsel %vm1446_vm3, %v9379_v26, %v4405_v20  ;;  %v4552_v52 = vsel %vm1446_vm3, %v4534_v37, %v4535_v35  ;;  %v4506_v62 = vadd.f32 %v8712_v10, %v4482_v9 }
 0x422   :  { %v4504_v6 = vadd.f32 %v8712_v10, %v4480_v60  ;;  %v4369_v34 = vadd.f32 %v8761_v27, %v4090_v23  ;;  %4579 = vst.msk [vmem:[#allocation2 + $0x18] sm:$0xff] %vm2358_vm10, %v4563_v54  ;;  %v4566_v13 = vmax.f32 %v4518_v4, %v4552_v52  ;;  %v4533_v15 = vrot.slane %v4517_v63, 1  ;;  %v5579_v17 = vpop.f32.mrf.mxu1 }
 0x423   :  { %v4483_v36 = vadd.f32 %v4467_v32, %v4371_v50  ;;  %v4358_v45 = vsel %vm8803_vm8, 0.0, %v4297_v49  ;;  %v4522_v33 = vmax.f32 %v4506_v62, 0.0  ;;  %v9380_v30 = vsel %vm8649_vm5, 0.0, %v8732_v2 }
 0x424   :  { %v4520_v53 = vmax.f32 %v4504_v6, 0.0  ;;  %v4481_v47 = vadd.f32 %v9380_v30, %v4369_v34  ;;  %v4374_v41 = vadd.f32 %v5579_v17, %v4358_v45  ;;  %4582 = vst.msk [vmem:[#allocation2 + $0x30] sm:$0xff] %vm2358_vm10, %v4566_v13  ;;  %v4553_v27 = vsel %vm1446_vm3, %v4533_v15, %v4534_v37  ;;  %v4103_v58 = vpop.f32.mrf.mxu1 }
 0x425   :  { %v4554_v32 = vsel %vm1446_vm3, %v4532_v0, %v4533_v15  ;;  %v4507_v4 = vadd.f32 %v8712_v10, %v4483_v36  ;;  %v4471_v51 = vsel %vm8817_vm9, 0.0, %v4423_v40  ;;  %v4565_v14 = vmax.f32 %v4517_v63, %v4553_v27 }
 0x426   :  { %v4564_v21 = vmax.f32 %v4516_v16, %v4554_v32  ;;  %v4536_v49 = vrot.slane %v4520_v53, 1  ;;  %v4409_v2 = vsel %vm1446_vm3, %v4405_v20, %v4406_v3  ;;  %v4505_v55 = vadd.f32 %v8712_v10, %v4481_v47  ;;  %v5580_v40 = vpop.f32.mrf.mxu1 }
 0x427   :  { %v4523_v37 = vmax.f32 %v4507_v4, 0.0  ;;  %v4486_v0 = vadd.f32 %v4408_v57, %v4374_v41  ;;  %v4372_v24 = vadd.f32 %v9381_v59, %v4103_v58  ;;  %4581 = vst.msk [vmem:[#allocation2 + $0x28] sm:$0xff] %vm2358_vm10, %v4565_v14  ;;  %v4538_v28 = vrot.slane %v4522_v33, 1  ;;  %v5697_v14 = vld [vmem:[%s9197_s3 + $0xf0] sm:$0xff]  }
 0x428   :  { %4580 = vst.msk [vmem:[#allocation2 + $0x20] sm:$0xff] %vm2358_vm10, %v4564_v21  ;;  %v4551_v39 = vsel %vm1446_vm3, %v4535_v35, %v4536_v49  ;;  %v4375_v16 = vadd.f32 %v5580_v40, %v4296_v56  ;;  %v9382_v3 = vrot.slane %v8601_v44, 7  ;;  %v4521_v57 = vmax.f32 %v4505_v55, 0.0  ;;  %v4106_v9 = vpop.f32.mrf.mxu1  ;;  %v4592_v56 = vld [vmem:[#allocation2] ss:$2 sm:$0xff] }
 0x429   :  { %v4567_v20 = vmax.f32 %v4519_v38, %v4551_v39  ;;  %v4539_v1 = vrot.slane %v4523_v37, 1  ;;  %v4510_v12 = vadd.f32 %v8712_v10, %v4486_v0  ;;  %v4484_v60 = vadd.f32 %v4410_v61, %v4372_v24  ;;  %v4593_v50 = vld [vmem:[#allocation2 + $0x10] ss:$2 sm:$0xff]  ;;  %v5698_v55 = vld [vmem:[%s9197_s3 + $0xe8] sm:$0xff]   ;;  %v5699_v24 = vld [vmem:[%s9197_s3 + $0xe0] sm:$0xff]  }
 0x42a   :  { %v4298_v46 = vsel %vm342_vm0, %v9382_v3, %v4293_v18  ;;  %v4487_v54 = vadd.f32 %v4471_v51, %v4375_v16  ;;  %v4469_v35 = vsel %vm8861_vm11, 0.0, %v4409_v2  ;;  %v4537_v7 = vrot.slane %v4521_v57, 1 }
 0x42b   :  { %v4373_v63 = vadd.f32 %v4298_v46, %v4106_v9  ;;  %4583 = vst.msk [vmem:[#allocation2 + $0x38] sm:$0xff] %vm2358_vm10, %v4567_v20  ;;  %v4548_v44 = vsel %vm1446_vm3, %v4538_v28, %v4539_v1  ;;  %v4526_v18 = vmax.f32 %v4510_v12, 0.0  ;;  %v4600_v38 = vpack.c.bf16 %v4593_v50, %v4592_v56 }
 0x42c   :  { %v4570_v23 = vmax.f32 %v4522_v33, %v4548_v44  ;;  %v4508_v26 = vadd.f32 %v8712_v10, %v4484_v60  ;;  %v4511_v61 = vadd.f32 %v8712_v10, %v4487_v54  ;;  %v4549_v8 = vsel %vm1446_vm3, %v4537_v7, %v4538_v28 }
 0x42d   :  { %v4485_v52 = vadd.f32 %v4469_v35, %v4373_v63  ;;  %v4550_v62 = vsel %vm1446_vm3, %v4536_v49, %v4537_v7  ;;  %5613 = vmatprep.mubr.msk.bf16.mxu1 %vm2358_vm10, %v4600_v38  ;;  %5645 = vmatprep.mubr.msk.bf16.mxu0 %vm2358_vm10, %v4600_v38  ;;  %v4569_v34 = vmax.f32 %v4521_v57, %v4549_v8  ;;  %v4542_v17 = vrot.slane %v4526_v18, 1 }
 0x42e   :  { %4586 = vst.msk [vmem:[#allocation2 + $0x50] sm:$0xff] %vm2358_vm10, %v4570_v23  ;;  %v4568_v6 = vmax.f32 %v4520_v53, %v4550_v62  ;;  %v4524_v13 = vmax.f32 %v4508_v26, 0.0  ;;  %v4527_v15 = vmax.f32 %v4511_v61, 0.0  ;;  %v4910_v50 = vand.u32 7, %v5755_v5 }
 0x42f   :  { %v4509_v36 = vadd.f32 %v8712_v10, %v4485_v52  ;;  %4585 = vst.msk [vmem:[#allocation2 + $0x48] sm:$0xff] %vm2358_vm10, %v4569_v34  ;;  %v4594_v51 = vld [vmem:[#allocation2 + $0x20] ss:$2 sm:$0xff]  ;;  %v4911_v23 = vand.u32 7, %v8509_v11 }
 0x430   :  { %4584 = vst.msk [vmem:[#allocation2 + $0x40] sm:$0xff] %vm2358_vm10, %v4568_v6  ;;  %v4540_v45 = vrot.slane %v4524_v13, 1  ;;  %v4543_v33 = vrot.slane %v4527_v15, 1  ;;  %vm4918_vm14 = vcmp.eq.s32.totalorder %v4910_v50, 0  ;;  %vm4974_vm15 = vcmp.eq.s32.totalorder %v4910_v50, 7 }
 0x431   :  { %v4525_v30 = vmax.f32 %v4509_v36, 0.0  ;;  %vm4919_vm1 = vcmp.eq.s32.totalorder %v4911_v23, 0  ;;  %vm4975_vm2 = vcmp.eq.s32.totalorder %v4911_v23, 7 }
 0x432   :  { %v4547_v47 = vsel %vm1446_vm3, %v4539_v1, %v4540_v45  ;;  %v4544_v41 = vsel %vm1446_vm3, %v4542_v17, %v4543_v33  ;;  %v4559_v53 = vsel %vm1446_vm3, %v4543_v33, %v8809_v31  ;;  %v4595_v27 = vld [vmem:[#allocation2 + $0x30] ss:$2 sm:$0xff]  ;;  %v9029_v33 = vld [vmem:[%s9200_s4 + $0x2] ss:$0 sm:$0xff] }
 0x433   :  { %v4571_v10 = vmax.f32 %v4523_v37, %v4547_v47  ;;  %v4574_v32 = vmax.f32 %v4526_v18, %v4544_v41  ;;  %v4575_v4 = vmax.f32 %v4527_v15, %v4559_v53  ;;  %v4541_v58 = vrot.slane %v4525_v30, 1 }
 0x434   :  { %v4601_v21 = vpack.c.bf16 %v4595_v27, %v4594_v51 }
 0x435   :  { %4587 = vst.msk [vmem:[#allocation2 + $0x58] sm:$0xff] %vm2358_vm10, %v4571_v10  ;;  %4590 = vst.msk [vmem:[#allocation2 + $0x70] sm:$0xff] %vm2358_vm10, %v4574_v32  ;;  %v4545_v31 = vsel %vm1446_vm3, %v4541_v58, %v4542_v17  ;;  %v4546_v49 = vsel %vm1446_vm3, %v4540_v45, %v4541_v58 }
 0x436   :  { %4591 = vst.msk [vmem:[#allocation2 + $0x78] sm:$0xff] %vm2358_vm10, %v4575_v4  ;;  %v4572_v2 = vmax.f32 %v4524_v13, %v4546_v49  ;;  %v4573_v37 = vmax.f32 %v4525_v30, %v4545_v31  ;;  %5614 = vmatmul.mubr.msk.bf16.vlgmr.msra.gmra.mxu1 %vm2358_vm10, %v4601_v21  ;;  %5646 = vmatmul.mubr.msk.bf16.vlgmr.msra.gmra.mxu0 %vm2358_vm10, %v4601_v21  ;;  %v4913_v31 = vand.u32 7, %v9331_v42 }
 0x437   :  { %5622 = vmatpush3.bf16.msra.mxu1 %v8472_v19  ;;  %v4596_v0 = vld [vmem:[#allocation2 + $0x40] ss:$2 sm:$0xff] }
 0x438   :  { %4588 = vst.msk [vmem:[#allocation2 + $0x60] sm:$0xff] %vm2358_vm10, %v4572_v2  ;;  %4589 = vst.msk [vmem:[#allocation2 + $0x68] sm:$0xff] %vm2358_vm10, %v4573_v37  ;;  %5623 = vmatprep.subr.bf16.mxu1 %v5697_v14  ;;  %v9385_v2 = vld [vmem:[#allocation13_spill] sm:$0xff]  ;;  %vm9048_vm4 = vcmp.eq.s32.totalorder %v4913_v31, 0  ;;  %vm9092_vm9 = vcmp.eq.s32.totalorder %v4913_v31, 7 }
 0x439   :  { %v4914_v37 = vand.u32 7, %v9385_v2 }
 0x43b   :  { %5624 = vmatpush3.bf16.msra.mxu1 %v5697_v14  ;;  %vm9052_vm5 = vcmp.eq.s32.totalorder %v4914_v37, 0 }
 0x43c   :  { %v4597_v59 = vld [vmem:[#allocation2 + $0x50] ss:$2 sm:$0xff]  ;;  %5625 = vmatprep.subr.bf16.mxu1 %v5698_v55 }
 0x43d   :  { %v4602_v40 = vpack.c.bf16 %v4597_v59, %v4596_v0  ;;  %v4599_v28 = vld [vmem:[#allocation2 + $0x70] ss:$2 sm:$0xff] }
 0x43f   :  { %5617 = vmatprep.mubr.msk.bf16.mxu1 %vm2358_vm10, %v4602_v40  ;;  %v4598_v19 = vld [vmem:[#allocation2 + $0x60] ss:$2 sm:$0xff]  ;;  %5626 = vmatpush3.bf16.msra.mxu1 %v5698_v55 }
 0x440   :  { %v4603_v39 = vpack.c.bf16 %v4599_v28, %v4598_v19  ;;  %5627 = vmatprep.subr.bf16.mxu1 %v5699_v24  ;;  %v9386_v55 = vld [vmem:[#allocation4_spill] sm:$0xff]  ;;  %v9387_v28 = vld [vmem:[#allocation9_spill] sm:$0xff] }
 0x441   :  { %v4917_v0 = vand.u32 7, %v9386_v55 }
 0x442   :  { %5618 = vmatmul.mubr.msk.bf16.gmra.mxu1 %vm2358_vm10, %v4603_v39 }
 0x443   :  { %5629 = vmatprep.mubr.msk.bf16.mxu1 %vm2358_vm10, %v4600_v38  ;;  %5628 = vmatpush3.bf16.msra.mxu1 %v5699_v24  ;;  %vm9056_vm6 = vcmp.eq.s32.totalorder %v4917_v0, 0 }
 0x444   :  { %5653 = vmatprep.subr.bf16.mxu1 %v8435_v43 }
 0x44a   :  { %5630 = vmatmul.mubr.msk.bf16.vlgmr.msra.gmra.mxu1 %vm2358_vm10, %v4601_v21 }
 0x44b   :  { %5657 = vmatpush3.bf16.msra.mxu1 %v8435_v43  ;;  %5633 = vmatprep.mubr.msk.bf16.mxu1 %vm2358_vm10, %v4602_v40 }
 0x44c   :  { %5654 = vmatprep.subr.bf16.mxu1 %v8445_v25 }
 0x44f   :  { %5658 = vmatpush3.bf16.msra.mxu1 %v8445_v25 }
 0x450   :  { %5655 = vmatprep.subr.bf16.mxu1 %v8455_v48 }
 0x452   :  { %5634 = vmatmul.mubr.msk.bf16.gmra.mxu1 %vm2358_vm10, %v4603_v39 }
 0x453   :  { %5659 = vmatpush3.bf16.msra.mxu1 %v8455_v48  ;;  %5649 = vmatprep.mubr.msk.bf16.mxu1 %vm2358_vm10, %v4602_v40 }
 0x454   :  { %5656 = vmatprep.subr.bf16.mxu1 %v8465_v22 }
 0x457   :  { %5660 = vmatpush3.bf16.msra.mxu1 %v8465_v22  ;;  %v4912_v22 = vand.u32 7, %v8504_v29 }
 0x459   :  { %vm8996_vm12 = vcmp.eq.s32.totalorder %v4912_v22, 0  ;;  %vm4976_vm13 = vcmp.eq.s32.totalorder %v4912_v22, 7 }
 0x45a   :  { %5650 = vmatmul.mubr.msk.bf16.vlgmr.msra.gmra.mxu1 %vm2358_vm10, %v4603_v39  ;;  %v4916_v39 = vand.u32 7, %v9387_v28 }
 0x45c   :  { %vm9072_vm7 = vcmp.eq.s32.totalorder %v4916_v39, 0  ;;  %vm9096_vm11 = vcmp.eq.s32.totalorder %v4916_v39, 7 }
 0x4f6   :  { %v8979_v43 = vpop.f32.mrf.mxu1  ;;  %v5647_v16 = vpop.f32.mrf.mxu0 }
 0x4f7   :  { %v4928_v60 = vrot.slane %v8979_v43, 7  ;;  %v4984_v63 = vrot.slane %v5647_v16, 1 }
 0x4f8   :  { %v4683_v3 = vpop.f32.mrf.mxu1  ;;  %v8981_v46 = vpop.f32.mrf.mxu0 }
 0x4f9   :  { %v4926_v44 = vrot.slane %v4683_v3, 7  ;;  %v4982_v26 = vrot.slane %v8981_v46, 1  ;;  %v9388_v3 = vld [vmem:[#allocation10_spill] sm:$0xff] }
 0x4fa   :  { %v8983_v25 = vpop.f32.mrf.mxu1  ;;  %v8985_v20 = vpop.f32.mrf.mxu0 }
 0x4fb   :  { %v4985_v54 = vrot.slane %v8985_v20, 1  ;;  %v4929_v19 = vrot.slane %v8983_v25, 7 }
 0x4fc   :  { %v4686_v1 = vpop.f32.mrf.mxu1  ;;  %v4882_v12 = vpop.f32.mrf.mxu0 }
 0x4fd   :  { %v4927_v57 = vrot.slane %v4686_v1, 7  ;;  %v4983_v7 = vrot.slane %v4882_v12, 1  ;;  %v4994_v61 = vsel %vm1446_vm3, %v4984_v63, %v4985_v54  ;;  %v4915_v1 = vand.u32 7, %v9388_v3 }
 0x4fe   :  { %v5016_v34 = vsel %vm4976_vm13, 0.0, %v4994_v61  ;;  %vm9106_vm13 = vcmp.eq.s32.totalorder %v4914_v37, 7 }
 0x4ff   :  { %v4939_v29 = vsel %vm342_vm0, %v4927_v57, %v4928_v60  ;;  %v4996_v11 = vsel %vm1446_vm3, %v4982_v26, %v4983_v7  ;;  %v4940_v45 = vsel %vm342_vm0, %v4926_v44, %v4927_v57  ;;  %v4995_v41 = vsel %vm1446_vm3, %v4983_v7, %v4984_v63 }
 0x500   :  { %v4960_v62 = vsel %vm8996_vm12, 0.0, %v4939_v29  ;;  %v5014_v30 = vsel %vm4974_vm15, 0.0, %v4996_v11  ;;  %v4959_v10 = vsel %vm4919_vm1, 0.0, %v4940_v45  ;;  %v5015_v51 = vsel %vm4975_vm2, 0.0, %v4995_v41 }
 0x501   :  { %vm9076_vm8 = vcmp.eq.s32.totalorder %v4915_v1, 0  ;;  %vm9102_vm12 = vcmp.eq.s32.totalorder %v4917_v0, 7 }
 0x502   :  { %v8987_v48 = vpop.f32.mrf.mxu1 }
 0x503   :  { %v4932_v56 = vrot.slane %v8987_v48, 7 }
 0x504   :  { %v8989_v9 = vpop.f32.mrf.mxu1 }
 0x505   :  { %v4930_v29 = vrot.slane %v8989_v9, 7 }
 0x506   :  { %v8994_v35 = vpop.f32.mrf.mxu1 }
 0x507   :  { %v4933_v18 = vrot.slane %v8994_v35, 7 }
 0x508   :  { %v9006_v38 = vpop.f32.mrf.mxu1 }
 0x509   :  { %v4941_v52 = vsel %vm342_vm0, %v4933_v18, %v4926_v44  ;;  %v4931_v42 = vrot.slane %v9006_v38, 7  ;;  %v4938_v38 = vsel %vm342_vm0, %v4928_v60, %v4929_v19  ;;  %v4934_v60 = vsel %vm342_vm0, %v4932_v56, %v4933_v18 }
 0x50a   :  { %v5631_v8 = vpop.f32.mrf.mxu1  ;;  %v4958_v15 = vsel %vm4918_vm14, 0.0, %v4941_v52  ;;  %v4965_v45 = vsel %vm9056_vm6, 0.0, %v4934_v60  ;;  %vm9126_vm14 = vcmp.eq.s32.totalorder %v4915_v1, 7 }
 0x50b   :  { %v4968_v6 = vadd.f32 %v5631_v8, %v4960_v62  ;;  %v4935_v9 = vsel %vm342_vm0, %v4931_v42, %v4932_v56 }
 0x50c   :  { %v4781_v13 = vpop.f32.mrf.mxu1 }
 0x50d   :  { %v5024_v36 = vadd.f32 %v5016_v34, %v4968_v6  ;;  %v4966_v17 = vadd.f32 %v4958_v15, %v4781_v13  ;;  %v4961_v13 = vsel %vm9048_vm4, 0.0, %v4938_v38 }
 0x50e   :  { %v5632_v47 = vpop.f32.mrf.mxu1 }
 0x50f   :  { %v5022_v53 = vadd.f32 %v5014_v30, %v4966_v17  ;;  %v9034_v32 = vadd.f32 %v9029_v33, %v5024_v36  ;;  %v4964_v36 = vsel %vm9072_vm7, 0.0, %v4935_v9  ;;  %v4937_v17 = vsel %vm342_vm0, %v4929_v19, %v4930_v29 }
 0x510   :  { %v4784_v27 = vpop.f32.mrf.mxu1  ;;  %v4936_v30 = vsel %vm342_vm0, %v4930_v29, %v4931_v42 }
 0x511   :  { %v5038_v4 = vadd.f32 %v9029_v33, %v5022_v53  ;;  %v4967_v58 = vadd.f32 %v4959_v10, %v4784_v27  ;;  %v5048_v59 = vmax.f32 %v9034_v32, 0.0  ;;  %v4969_v53 = vadd.f32 %v5632_v47, %v4961_v13 }
 0x512   :  { %v5635_v21 = vpop.f32.mrf.mxu1  ;;  %v4963_v55 = vsel %vm9076_vm8, 0.0, %v4936_v30 }
 0x513   :  { %v5023_v14 = vadd.f32 %v5015_v51, %v4967_v58  ;;  %v5046_v24 = vmax.f32 %v5038_v4, 0.0  ;;  %v9063_v50 = vrot.slane %v5048_v59, 1  ;;  %v4972_v58 = vadd.f32 %v5635_v21, %v4964_v36 }
 0x514   :  { %v9038_v49 = vpop.f32.mrf.mxu1  ;;  %v4962_v21 = vsel %vm9052_vm5, 0.0, %v4937_v17 }
 0x515   :  { %v5039_v40 = vadd.f32 %v9029_v33, %v5023_v14  ;;  %v9065_v44 = vrot.slane %v5046_v24, 1  ;;  %v4970_v28 = vadd.f32 %v4962_v21, %v9038_v49 }
 0x516   :  { %v5636_v16 = vpop.f32.mrf.mxu1 }
 0x517   :  { %v5047_v57 = vmax.f32 %v5039_v40, 0.0  ;;  %v4973_v51 = vadd.f32 %v5636_v16, %v4965_v45 }
 0x518   :  { %v4800_v25 = vpop.f32.mrf.mxu1 }
 0x519   :  { %v5055_v7 = vrot.slane %v5047_v57, 1  ;;  %v4971_v39 = vadd.f32 %v4963_v55, %v4800_v25 }
 0x51a   :  { %v5651_v61 = vpop.f32.mrf.mxu1 }
 0x51b   :  { %v5067_v52 = vsel %vm1446_vm3, %v5055_v7, %v9063_v50  ;;  %v5068_v43 = vsel %vm1446_vm3, %v9065_v44, %v5055_v7  ;;  %v4988_v27 = vrot.slane %v5651_v61, 1 }
 0x51c   :  { %v5070_v62 = vmax.f32 %v5046_v24, %v5068_v43  ;;  %v5071_v11 = vmax.f32 %v5047_v57, %v5067_v52  ;;  %v4895_v34 = vpop.f32.mrf.mxu1 }
 0x51d   :  { %v4986_v35 = vrot.slane %v4895_v34, 1 }
 0x51e   :  { %5078 = vst.msk [vmem:[#allocation2] sm:$0xff] %vm2358_vm10, %v5070_v62  ;;  %5079 = vst.msk [vmem:[#allocation2 + $0x8] sm:$0xff] %vm2358_vm10, %v5071_v11  ;;  %v5652_v41 = vpop.f32.mrf.mxu1 }
 0x51f   :  { %v4993_v10 = vsel %vm1446_vm3, %v4985_v54, %v4986_v35  ;;  %v4989_v4 = vrot.slane %v5652_v41, 1 }
 0x520   :  { %v5017_v14 = vsel %vm9092_vm9, 0.0, %v4993_v10  ;;  %v4898_v31 = vpop.f32.mrf.mxu1 }
 0x521   :  { %v5025_v37 = vadd.f32 %v5017_v14, %v4969_v53  ;;  %v4990_v47 = vsel %vm1446_vm3, %v4988_v27, %v4989_v4  ;;  %v4997_v20 = vsel %vm1446_vm3, %v4989_v4, %v4982_v26  ;;  %v4987_v54 = vrot.slane %v4898_v31, 1 }
 0x522   :  { %v5020_v0 = vsel %vm9096_vm11, 0.0, %v4990_v47  ;;  %v5021_v24 = vsel %vm9102_vm12, 0.0, %v4997_v20 }
 0x523   :  { %v5041_v40 = vadd.f32 %v9029_v33, %v5025_v37  ;;  %v5028_v19 = vadd.f32 %v5020_v0, %v4972_v58  ;;  %v5029_v46 = vadd.f32 %v5021_v24, %v4973_v51  ;;  %v4991_v26 = vsel %vm1446_vm3, %v4987_v54, %v4988_v27 }
 0x524   :  { %v4992_v16 = vsel %vm1446_vm3, %v4986_v35, %v4987_v54  ;;  %v5019_v3 = vsel %vm9126_vm14, 0.0, %v4991_v26 }
 0x525   :  { %v5086_v1 = vld [vmem:[#allocation2] ss:$2 sm:$0xff]  ;;  %v5049_v42 = vmax.f32 %v5041_v40, 0.0  ;;  %v5044_v57 = vadd.f32 %v9029_v33, %v5028_v19  ;;  %v5045_v12 = vadd.f32 %v9029_v33, %v5029_v46  ;;  %v5018_v22 = vsel %vm9106_vm13, 0.0, %v4992_v16 }
 0x526   :  { %5090 = vst.msk [vmem:[%s9201_s5] sm:$0xff] %vm2358_vm10, %v5086_v1  ;;  %v5026_v49 = vadd.f32 %v5018_v22, %v4970_v28  ;;  %v5027_v63 = vadd.f32 %v5019_v3, %v4971_v39 }
 0x527   :  { %v5057_v25 = vrot.slane %v5049_v42, 1  ;;  %v5052_v56 = vmax.f32 %v5044_v57, 0.0  ;;  %v5053_v7 = vmax.f32 %v5045_v12, 0.0 }
 0x528   :  { %v5042_v29 = vadd.f32 %v9029_v33, %v5026_v49  ;;  %v5043_v38 = vadd.f32 %v9029_v33, %v5027_v63 }
 0x529   :  { %v5066_v23 = vsel %vm1446_vm3, %v9063_v50, %v5057_v25  ;;  %v5060_v48 = vrot.slane %v5052_v56, 1  ;;  %v5061_v61 = vrot.slane %v5053_v7, 1 }
 0x52a   :  { %v5072_v52 = vmax.f32 %v5048_v59, %v5066_v23  ;;  %v5050_v43 = vmax.f32 %v5042_v29, 0.0  ;;  %v5051_v9 = vmax.f32 %v5043_v38, 0.0 }
 0x52b   :  { %v5062_v60 = vsel %vm1446_vm3, %v5060_v48, %v5061_v61  ;;  %v5069_v8 = vsel %vm1446_vm3, %v5061_v61, %v9065_v44 }
 0x52c   :  { %5080 = vst.msk [vmem:[#allocation2 + $0x10] sm:$0xff] %vm2358_vm10, %v5072_v52  ;;  %v5076_v33 = vmax.f32 %v5052_v56, %v5062_v60  ;;  %v5077_v62 = vmax.f32 %v5053_v7, %v5069_v8  ;;  %v5058_v11 = vrot.slane %v5050_v43, 1  ;;  %v5059_v50 = vrot.slane %v5051_v9, 1 }
 0x52e   :  { %5084 = vst.msk [vmem:[#allocation2 + $0x30] sm:$0xff] %vm2358_vm10, %v5076_v33  ;;  %5085 = vst.msk [vmem:[#allocation2 + $0x38] sm:$0xff] %vm2358_vm10, %v5077_v62  ;;  %v5063_v32 = vsel %vm1446_vm3, %v5059_v50, %v5060_v48  ;;  %v5064_v59 = vsel %vm1446_vm3, %v5058_v11, %v5059_v50  ;;  %v5065_v6 = vsel %vm1446_vm3, %v5057_v25, %v5058_v11 }
 0x52f   :  { %v5073_v44 = vmax.f32 %v5049_v42, %v5065_v6  ;;  %v5074_v34 = vmax.f32 %v5050_v43, %v5064_v59  ;;  %v5075_v13 = vmax.f32 %v5051_v9, %v5063_v32 }
 0x531   :  { %5081 = vst.msk [vmem:[#allocation2 + $0x18] sm:$0xff] %vm2358_vm10, %v5073_v44  ;;  %5082 = vst.msk [vmem:[#allocation2 + $0x20] sm:$0xff] %vm2358_vm10, %v5074_v34 }
 0x532   :  { %5083 = vst.msk [vmem:[#allocation2 + $0x28] sm:$0xff] %vm2358_vm10, %v5075_v13 }
 0x535   :  { %v5089_v15 = vld [vmem:[#allocation2 + $0x30] ss:$2 sm:$0xff] }
 0x536   :  { %5093 = vst.msk [vmem:[%s9201_s5 + $0x18] sm:$0xff] %vm2358_vm10, %v5089_v15 }
 0x538   :  { %v5087_v35 = vld [vmem:[#allocation2 + $0x10] ss:$2 sm:$0xff] }
 0x539   :  { %v5088_v18 = vld [vmem:[#allocation2 + $0x20] ss:$2 sm:$0xff]  ;;  %5091 = vst.msk [vmem:[%s9201_s5 + $0x8] sm:$0xff] %vm2358_vm10, %v5087_v35 }
 0x53a   :  { %5092 = vst.msk [vmem:[%s9201_s5 + $0x10] sm:$0xff] %vm2358_vm10, %v5088_v18 }

</bundles_post_ra>
